<compile_context>
chip_gen: v7x
topology: tpu7x:2x2x1
jax: 0.10.0
libtpu: 0.0.40
codegen_flags: <defaults>
</compile_context>

<pallas_src>
import functools

import numpy as np
import jax
import jax.numpy as jnp
from jax.experimental import pallas as pl
from jax.experimental.pallas import tpu as pltpu


_VMEM = pl.BlockSpec(memory_space=pltpu.MemorySpace.VMEM)


def _round_up(x, m):
    return (x + m - 1) // m * m


# ----------------------------------------------------------------------------
# Fused Pallas kernel
# ----------------------------------------------------------------------------
def _encoder_kernel(a0_ref, m1_ref, m2_ref,
                    w1_ref, b1_ref, g1w_ref, g1b_ref,
                    w2_ref, b2_ref, g2w_ref, g2b_ref,
                    w3_ref, b3_ref,
                    w4_ref, b4_ref,
                    w5_ref, b5_ref,
                    out_ref,
                    act1_ref, act2_ref, act3_ref,
                    *, batch, w0, n_rows, fc_rows, k1, k2, k3, kf,
                    cnt1, cnt2, eps):
    pad_rows = act1_ref.shape[0] - n_rows

    def offsets(k):
        # row shift mapping output position (h, w) to input position (h+kh, w+kw)
        return [(kh * w0 + kw) * batch for kh in range(k) for kw in range(k)]

    def conv(src_ref, w_ref, b_ref, k, rows):
        """Complex conv: sum over k*k offsets of shifted_rows(src) @ block weight."""
        acc = None
        for i, s in enumerate(offsets(k)):
            x = src_ref[pl.ds(s, rows), :]                       # (rows, 2*Cin)
            d = jnp.dot(x, w_ref[i], preferred_element_type=jnp.float32)
            acc = d if acc is None else acc + d
        return acc + b_ref[...]                                  # (rows, 2*Cout)

    def complex_bn(y, m_ref, gw_ref, gb_ref, count):
        """ComplexBatchNorm2d with train-mode batch statistics over valid rows."""
        # TODO(synk): eval-mode running statistics are not implemented.
        c = gw_ref.shape[1]
        m = m_ref[...]                                           # (n_rows, 1) 0/1
        yr, yi = y[:, :c], y[:, c:]
        inv_n = 1.0 / count
        mean_r = jnp.sum(yr * m, axis=0, keepdims=True) * inv_n
        mean_i = jnp.sum(yi * m, axis=0, keepdims=True) * inv_n
        cr = yr - mean_r
        ci = yi - mean_i
        crm = cr * m
        cim = ci * m
        vrr = jnp.sum(crm * crm, axis=0, keepdims=True) * inv_n + eps
        vii = jnp.sum(cim * cim, axis=0, keepdims=True) * inv_n + eps
        vri = jnp.sum(crm * cim, axis=0, keepdims=True) * inv_n
        det = vrr * vii - vri * vri
        s = jnp.sqrt(det)
        t = jnp.sqrt(vrr + vii + 2.0 * s)
        inv_st = pl.reciprocal(s * t, approx=True)               # EUP slot
        rrr = (vii + s) * inv_st
        rii = (vrr + s) * inv_st
        rri = -vri * inv_st
        xh_r = rrr * cr + rri * ci
        xh_i = rii * ci + rri * cr
        wrr, wii, wri = gw_ref[0:1, :], gw_ref[1:2, :], gw_ref[2:3, :]
        br, bi = gb_ref[0:1, :], gb_ref[1:2, :]
        out_r = wrr * xh_r + wri * xh_i + br
        out_i = wri * xh_r + wii * xh_i + bi
        return jnp.concatenate([out_r, out_i], axis=1)

    def store(dst_ref, y):
        dst_ref[pl.ds(0, n_rows), :] = y
        dst_ref[pl.ds(n_rows, pad_rows), :] = jnp.zeros(
            (pad_rows, y.shape[1]), jnp.float32)

    # conv1 -> complex_relu -> bn1
    y1 = jnp.maximum(conv(a0_ref, w1_ref, b1_ref, k1, n_rows), 0.0)
    y1 = complex_bn(y1, m1_ref, g1w_ref, g1b_ref, cnt1)
    store(act1_ref, y1)

    # conv2 -> complex_relu -> bn2
    y2 = jnp.maximum(conv(act1_ref, w2_ref, b2_ref, k2, n_rows), 0.0)
    y2 = complex_bn(y2, m2_ref, g2w_ref, g2b_ref, cnt2)
    store(act2_ref, y2)

    # conv3 -> complex_relu
    y3 = jnp.maximum(conv(act2_ref, w3_ref, b3_ref, k3, n_rows), 0.0)
    store(act3_ref, y3)

    # fc1 (NCHW flatten folded into the packed weights: a kf x kf "conv" whose
    # only valid output position is (0, 0)) -> complex_relu
    y4 = jnp.maximum(conv(act3_ref, w4_ref, b4_ref, kf, fc_rows), 0.0)

    # fc2
    y5 = jnp.dot(y4, w5_ref[...], preferred_element_type=jnp.float32) + b5_ref[...]

    out_ref[...] = y5[0:batch, :]


# ----------------------------------------------------------------------------
# Parameter init / packing (host-side, one-time)
# ----------------------------------------------------------------------------
def _pack_conv(wr, wi, br, bi):
    """(k,k,cin,cout) complex conv -> (k*k, 2*cin, 2*cout) block weight + folded bias."""
    k, cin, cout = wr.shape[0], wr.shape[2], wr.shape[3]
    w = jnp.concatenate([jnp.concatenate([wr, wi], axis=3),     # real-input rows
                         jnp.concatenate([-wi, wr], axis=3)],   # imag-input rows
                        axis=2)
    w = w.reshape(k * k, 2 * cin, 2 * cout)
    b = jnp.concatenate([br - bi, br + bi]).reshape(1, 2 * cout)
    return w, b


def _pack_fc(wr, wi, br, bi):
    """(K,N) complex linear -> (2K, 2N) block weight + folded bias."""
    w = jnp.concatenate([jnp.concatenate([wr, wi], axis=1),
                         jnp.concatenate([-wi, wr], axis=1)], axis=0)
    b = jnp.concatenate([br - bi, br + bi]).reshape(1, -1)
    return w, b


def init_params(key, k1=2, c1=40, k2=2, c2=100, k3=3, c3=3, d1=96, d2=10):
    ks = jax.random.split(key, 20)

    def w(k, shape, fan_in):
        return jax.random.normal(k, shape, jnp.float32) / np.sqrt(fan_in)

    def b(k, n):
        return 0.1 * jax.random.normal(k, (n,), jnp.float32)

    inv_sqrt2 = 1.0 / np.sqrt(2.0)

    def bn_weight(c):
        return jnp.stack([jnp.full((c,), inv_sqrt2, jnp.float32),   # Wrr
                          jnp.full((c,), inv_sqrt2, jnp.float32),   # Wii
                          jnp.zeros((c,), jnp.float32)])            # Wri

    return {
        "k1": k1, "k2": k2, "k3": k3,
        "c1": c1, "c2": c2, "c3": c3, "d1": d1, "d2": d2,
        "conv1_wr": w(ks[0], (k1, k1, 1, c1), k1 * k1 * 1),
        "conv1_wi": w(ks[1], (k1, k1, 1, c1), k1 * k1 * 1),
        "conv1_br": b(ks[2], c1), "conv1_bi": b(ks[3], c1),
        "conv2_wr": w(ks[4], (k2, k2, c1, c2), k2 * k2 * c1),
        "conv2_wi": w(ks[5], (k2, k2, c1, c2), k2 * k2 * c1),
        "conv2_br": b(ks[6], c2), "conv2_bi": b(ks[7], c2),
        "conv3_wr": w(ks[8], (k3, k3, c2, c3), k3 * k3 * c2),
        "conv3_wi": w(ks[9], (k3, k3, c2, c3), k3 * k3 * c2),
        "conv3_br": b(ks[10], c3), "conv3_bi": b(ks[11], c3),
        "bn1_w": bn_weight(c1), "bn1_b": jnp.zeros((2, c1), jnp.float32),
        "bn2_w": bn_weight(c2), "bn2_b": jnp.zeros((2, c2), jnp.float32),
        # fc1 rows ordered channel-major (c, h, w) to match PyTorch's NCHW
        # .view(-1, 2*2*c3) (a loaded torch Linear weight would be W.T here).
        "fc1_wr": w(ks[12], (2 * 2 * c3, d1), 2 * 2 * c3),
        "fc1_wi": w(ks[13], (2 * 2 * c3, d1), 2 * 2 * c3),
        "fc1_br": b(ks[14], d1), "fc1_bi": b(ks[15], d1),
        "fc2_wr": w(ks[16], (d1, d2), d1),
        "fc2_wi": w(ks[17], (d1, d2), d1),
        "fc2_br": b(ks[18], d2), "fc2_bi": b(ks[19], d2),
    }


def make_encoder_r(params, batch, h0=6, w0=6):
    k1, k2, k3 = params["k1"], params["k2"], params["k3"]
    c1, c2, c3 = params["c1"], params["c2"], params["c3"]
    d1, d2 = params["d1"], params["d2"]

    s1h, s1w = h0 - k1 + 1, w0 - k1 + 1        # conv1 output spatial
    s2h, s2w = s1h - k2 + 1, s1w - k2 + 1      # conv2 output spatial
    s3h, s3w = s2h - k3 + 1, s2w - k3 + 1      # conv3 output spatial
    assert s3h == 2 and s3w == 2, "fc1 expects a 2x2 conv3 output (input must be 6x6)"
    kf = s3h

    n_rows = batch * h0 * w0
    fc_rows = max(8, _round_up(batch, 8))
    max_shift = (max(k1, k2, k3) - 1) * (w0 + 1) * batch
    total_rows = _round_up(max(n_rows + max_shift,
                               fc_rows + (kf - 1) * (w0 + 1) * batch), 8)

    # validity masks for the BN batch statistics (valid conv grid < full grid)
    def valid_mask(ho, wo):
        m = np.zeros((n_rows, 1), np.float32)
        for h in range(ho):
            for w_ in range(wo):
                for b_ in range(batch):
                    m[(h * w0 + w_) * batch + b_, 0] = 1.0
        return jnp.asarray(m)

    m1, cnt1 = valid_mask(s1h, s1w), float(batch * s1h * s1w)
    m2, cnt2 = valid_mask(s2h, s2w), float(batch * s2h * s2w)

    # pack complex weights into block form, fold biases (one-time)
    w1, b1 = _pack_conv(params["conv1_wr"], params["conv1_wi"],
                        params["conv1_br"], params["conv1_bi"])
    w2, b2 = _pack_conv(params["conv2_wr"], params["conv2_wi"],
                        params["conv2_br"], params["conv2_bi"])
    w3, b3 = _pack_conv(params["conv3_wr"], params["conv3_wi"],
                        params["conv3_br"], params["conv3_bi"])
    f1r = params["fc1_wr"].reshape(c3, kf, kf, d1).transpose(1, 2, 0, 3)
    f1i = params["fc1_wi"].reshape(c3, kf, kf, d1).transpose(1, 2, 0, 3)
    w4, b4 = _pack_conv(f1r, f1i, params["fc1_br"], params["fc1_bi"])
    w5, b5 = _pack_fc(params["fc2_wr"], params["fc2_wi"],
                      params["fc2_br"], params["fc2_bi"])

    kernel = functools.partial(
        _encoder_kernel, batch=batch, w0=w0, n_rows=n_rows, fc_rows=fc_rows,
        k1=k1, k2=k2, k3=k3, kf=kf, cnt1=cnt1, cnt2=cnt2, eps=1e-5)

    fused = pl.pallas_call(
        kernel,
        out_shape=jax.ShapeDtypeStruct((batch, 2 * d2), jnp.float32),
        in_specs=[_VMEM] * 17,
        out_specs=_VMEM,
        scratch_shapes=[
            pltpu.VMEM((total_rows, 2 * c1), jnp.float32),
            pltpu.VMEM((total_rows, 2 * c2), jnp.float32),
            pltpu.VMEM((total_rows, 2 * c3), jnp.float32),
        ],
    )
    # TODO(synk): if batch is ever scaled up, add a grid over the row dimension
    # with dimension_semantics=("parallel",) (v7x has 2 TCs and only 64 MiB VMEM).

    @jax.jit
    def forward(xr_nchw, xi_nchw):
        assert xr_nchw.shape == (batch, 1, h0, w0) and xi_nchw.shape == xr_nchw.shape
        # rows ordered (h*w0 + w)*batch + b, lanes [real | imag]
        xr = jnp.transpose(xr_nchw.astype(jnp.float32)[:, 0], (1, 2, 0)).reshape(n_rows)
        xi = jnp.transpose(xi_nchw.astype(jnp.float32)[:, 0], (1, 2, 0)).reshape(n_rows)
        a0 = jnp.stack([xr, xi], axis=-1)
        a0 = jnp.concatenate(
            [a0, jnp.zeros((total_rows - n_rows, 2), jnp.float32)], axis=0)
        out = fused(a0, m1, m2,
                    w1, b1, params["bn1_w"], params["bn1_b"],
                    w2, b2, params["bn2_w"], params["bn2_b"],
                    w3, b3, w4, b4, w5, b5)
        return out[:, :d2], out[:, d2:]

    return forward


if __name__ == "__main__":
    key = jax.random.PRNGKey(0)
    kp, kr, ki = jax.random.split(key, 3)
    params = init_params(kp)

    # Input spatial 6x6 so conv1(k=2)->5x5, conv2(k=2)->4x4, conv3(k=3)->2x2,
    # matching fc1's 2*2*c3 input features.
    B = 2
    xr = jax.random.normal(kr, (B, 1, 6, 6), dtype=jnp.float32)
    xi = jax.random.normal(ki, (B, 1, 6, 6), dtype=jnp.float32)

    forward = make_encoder_r(params, batch=B, h0=6, w0=6)
    out_r, out_i = forward(xr, xi)
    jax.block_until_ready((out_r, out_i))
    assert out_r.shape == (B, 10) and out_i.shape == (B, 10)
    assert out_r.dtype == jnp.float32 and out_i.dtype == jnp.float32
    print("KERNEL_OK")
</pallas_src>

<mosaic_0001>
module attributes {stable_mosaic.version = 11 : i64} {
  func.func @_encoder_kernel(%arg0: memref<104x2xf32, #tpu.memory_space<vmem>>, %arg1: memref<72x1xf32, #tpu.memory_space<vmem>>, %arg2: memref<72x1xf32, #tpu.memory_space<vmem>>, %arg3: memref<4x2x80xf32, #tpu.memory_space<vmem>>, %arg4: memref<1x80xf32, #tpu.memory_space<vmem>>, %arg5: memref<3x40xf32, #tpu.memory_space<vmem>>, %arg6: memref<2x40xf32, #tpu.memory_space<vmem>>, %arg7: memref<4x80x200xf32, #tpu.memory_space<vmem>>, %arg8: memref<1x200xf32, #tpu.memory_space<vmem>>, %arg9: memref<3x100xf32, #tpu.memory_space<vmem>>, %arg10: memref<2x100xf32, #tpu.memory_space<vmem>>, %arg11: memref<9x200x6xf32, #tpu.memory_space<vmem>>, %arg12: memref<1x6xf32, #tpu.memory_space<vmem>>, %arg13: memref<4x6x192xf32, #tpu.memory_space<vmem>>, %arg14: memref<1x192xf32, #tpu.memory_space<vmem>>, %arg15: memref<192x20xf32, #tpu.memory_space<vmem>>, %arg16: memref<1x20xf32, #tpu.memory_space<vmem>>, %arg17: memref<2x20xf32, #tpu.memory_space<vmem>>, %arg18: memref<104x80xf32, #tpu.memory_space<vmem>>, %arg19: memref<104x200xf32, #tpu.memory_space<vmem>>, %arg20: memref<104x6xf32, #tpu.memory_space<vmem>>) attributes {dimension_semantics = [], scalar_prefetch = 0 : i64, scratch_operands = 3 : i64, tpu.core_type = #tpu.core_type<tc>} {
    %c0 = arith.constant 0 : index
    %c0_0 = arith.constant 0 : index
    %0 = vector.load %arg0[%c0, %c0_0] : memref<104x2xf32, #tpu.memory_space<vmem>>, vector<72x2xf32>
    %c0_1 = arith.constant 0 : index
    %c0_2 = arith.constant 0 : index
    %c0_3 = arith.constant 0 : index
    %1 = vector.load %arg3[%c0_1, %c0_2, %c0_3] : memref<4x2x80xf32, #tpu.memory_space<vmem>>, vector<1x2x80xf32>
    %2 = vector.shape_cast %1 : vector<1x2x80xf32> to vector<2x80xf32>
    %cst = arith.constant dense<0.000000e+00> : vector<72x80xf32>
    %3 = tpu.matmul %0, %2, %cst {dimension_numbers = #tpu.dot_dimension_numbers<[1], [0], [0], [1], [0, 0, 1, 1], [], []>} : vector<72x2xf32>, vector<2x80xf32>, vector<72x80xf32> -> vector<72x80xf32>
    %c2 = arith.constant 2 : index
    %c0_4 = arith.constant 0 : index
    %4 = vector.load %arg0[%c2, %c0_4] : memref<104x2xf32, #tpu.memory_space<vmem>>, vector<72x2xf32>
    %c1 = arith.constant 1 : index
    %c0_5 = arith.constant 0 : index
    %c0_6 = arith.constant 0 : index
    %5 = vector.load %arg3[%c1, %c0_5, %c0_6] : memref<4x2x80xf32, #tpu.memory_space<vmem>>, vector<1x2x80xf32>
    %6 = vector.shape_cast %5 : vector<1x2x80xf32> to vector<2x80xf32>
    %cst_7 = arith.constant dense<0.000000e+00> : vector<72x80xf32>
    %7 = tpu.matmul %4, %6, %cst_7 {dimension_numbers = #tpu.dot_dimension_numbers<[1], [0], [0], [1], [0, 0, 1, 1], [], []>} : vector<72x2xf32>, vector<2x80xf32>, vector<72x80xf32> -> vector<72x80xf32>
    %8 = arith.addf %3, %7 : vector<72x80xf32>
    %c12 = arith.constant 12 : index
    %c0_8 = arith.constant 0 : index
    %9 = vector.load %arg0[%c12, %c0_8] : memref<104x2xf32, #tpu.memory_space<vmem>>, vector<72x2xf32>
    %c2_9 = arith.constant 2 : index
    %c0_10 = arith.constant 0 : index
    %c0_11 = arith.constant 0 : index
    %10 = vector.load %arg3[%c2_9, %c0_10, %c0_11] : memref<4x2x80xf32, #tpu.memory_space<vmem>>, vector<1x2x80xf32>
    %11 = vector.shape_cast %10 : vector<1x2x80xf32> to vector<2x80xf32>
    %cst_12 = arith.constant dense<0.000000e+00> : vector<72x80xf32>
    %12 = tpu.matmul %9, %11, %cst_12 {dimension_numbers = #tpu.dot_dimension_numbers<[1], [0], [0], [1], [0, 0, 1, 1], [], []>} : vector<72x2xf32>, vector<2x80xf32>, vector<72x80xf32> -> vector<72x80xf32>
    %13 = arith.addf %8, %12 : vector<72x80xf32>
    %c14 = arith.constant 14 : index
    %c0_13 = arith.constant 0 : index
    %14 = vector.load %arg0[%c14, %c0_13] : memref<104x2xf32, #tpu.memory_space<vmem>>, vector<72x2xf32>
    %c3 = arith.constant 3 : index
    %c0_14 = arith.constant 0 : index
    %c0_15 = arith.constant 0 : index
    %15 = vector.load %arg3[%c3, %c0_14, %c0_15] : memref<4x2x80xf32, #tpu.memory_space<vmem>>, vector<1x2x80xf32>
    %16 = vector.shape_cast %15 : vector<1x2x80xf32> to vector<2x80xf32>
    %cst_16 = arith.constant dense<0.000000e+00> : vector<72x80xf32>
    %17 = tpu.matmul %14, %16, %cst_16 {dimension_numbers = #tpu.dot_dimension_numbers<[1], [0], [0], [1], [0, 0, 1, 1], [], []>} : vector<72x2xf32>, vector<2x80xf32>, vector<72x80xf32> -> vector<72x80xf32>
    %18 = arith.addf %13, %17 : vector<72x80xf32>
    %c0_17 = arith.constant 0 : index
    %c0_18 = arith.constant 0 : index
    %19 = vector.load %arg4[%c0_17, %c0_18] : memref<1x80xf32, #tpu.memory_space<vmem>>, vector<1x80xf32>
    %20 = vector.broadcast %19 : vector<1x80xf32> to vector<72x80xf32>
    %21 = arith.addf %18, %20 : vector<72x80xf32>
    %cst_19 = arith.constant 0.000000e+00 : f32
    %22 = vector.broadcast %cst_19 : f32 to vector<72x80xf32>
    %23 = arith.maximumf %21, %22 : vector<72x80xf32>
    %c0_20 = arith.constant 0 : index
    %c0_21 = arith.constant 0 : index
    %24 = vector.load %arg1[%c0_20, %c0_21] : memref<72x1xf32, #tpu.memory_space<vmem>>, vector<72x1xf32>
    %25 = vector.extract_strided_slice %23 {offsets = [0, 0], sizes = [72, 40], strides = [1, 1]} : vector<72x80xf32> to vector<72x40xf32>
    %26 = vector.extract_strided_slice %23 {offsets = [0, 40], sizes = [72, 40], strides = [1, 1]} : vector<72x80xf32> to vector<72x40xf32>
    %27 = vector.broadcast %24 : vector<72x1xf32> to vector<72x40xf32>
    %28 = arith.mulf %25, %27 : vector<72x40xf32>
    %cst_22 = arith.constant dense<0.000000e+00> : vector<40xf32>
    %29 = vector.multi_reduction <add>, %28, %cst_22 [0] : vector<72x40xf32> to vector<40xf32>
    %30 = vector.shape_cast %29 : vector<40xf32> to vector<1x40xf32>
    %cst_23 = arith.constant 2.000000e-02 : f32
    %31 = vector.broadcast %cst_23 : f32 to vector<1x40xf32>
    %32 = arith.mulf %30, %31 : vector<1x40xf32>
    %33 = vector.broadcast %24 : vector<72x1xf32> to vector<72x40xf32>
    %34 = arith.mulf %26, %33 : vector<72x40xf32>
    %cst_24 = arith.constant dense<0.000000e+00> : vector<40xf32>
    %35 = vector.multi_reduction <add>, %34, %cst_24 [0] : vector<72x40xf32> to vector<40xf32>
    %36 = vector.shape_cast %35 : vector<40xf32> to vector<1x40xf32>
    %cst_25 = arith.constant 2.000000e-02 : f32
    %37 = vector.broadcast %cst_25 : f32 to vector<1x40xf32>
    %38 = arith.mulf %36, %37 : vector<1x40xf32>
    %39 = vector.broadcast %32 : vector<1x40xf32> to vector<72x40xf32>
    %40 = arith.subf %25, %39 : vector<72x40xf32>
    %41 = vector.broadcast %38 : vector<1x40xf32> to vector<72x40xf32>
    %42 = arith.subf %26, %41 : vector<72x40xf32>
    %43 = vector.broadcast %24 : vector<72x1xf32> to vector<72x40xf32>
    %44 = arith.mulf %40, %43 : vector<72x40xf32>
    %45 = vector.broadcast %24 : vector<72x1xf32> to vector<72x40xf32>
    %46 = arith.mulf %42, %45 : vector<72x40xf32>
    %47 = arith.mulf %44, %44 : vector<72x40xf32>
    %cst_26 = arith.constant dense<0.000000e+00> : vector<40xf32>
    %48 = vector.multi_reduction <add>, %47, %cst_26 [0] : vector<72x40xf32> to vector<40xf32>
    %49 = vector.shape_cast %48 : vector<40xf32> to vector<1x40xf32>
    %cst_27 = arith.constant 2.000000e-02 : f32
    %50 = vector.broadcast %cst_27 : f32 to vector<1x40xf32>
    %51 = arith.mulf %49, %50 : vector<1x40xf32>
    %cst_28 = arith.constant 9.99999974E-6 : f32
    %52 = vector.broadcast %cst_28 : f32 to vector<1x40xf32>
    %53 = arith.addf %51, %52 : vector<1x40xf32>
    %54 = arith.mulf %46, %46 : vector<72x40xf32>
    %cst_29 = arith.constant dense<0.000000e+00> : vector<40xf32>
    %55 = vector.multi_reduction <add>, %54, %cst_29 [0] : vector<72x40xf32> to vector<40xf32>
    %56 = vector.shape_cast %55 : vector<40xf32> to vector<1x40xf32>
    %cst_30 = arith.constant 2.000000e-02 : f32
    %57 = vector.broadcast %cst_30 : f32 to vector<1x40xf32>
    %58 = arith.mulf %56, %57 : vector<1x40xf32>
    %cst_31 = arith.constant 9.99999974E-6 : f32
    %59 = vector.broadcast %cst_31 : f32 to vector<1x40xf32>
    %60 = arith.addf %58, %59 : vector<1x40xf32>
    %61 = arith.mulf %44, %46 : vector<72x40xf32>
    %cst_32 = arith.constant dense<0.000000e+00> : vector<40xf32>
    %62 = vector.multi_reduction <add>, %61, %cst_32 [0] : vector<72x40xf32> to vector<40xf32>
    %63 = vector.shape_cast %62 : vector<40xf32> to vector<1x40xf32>
    %cst_33 = arith.constant 2.000000e-02 : f32
    %64 = vector.broadcast %cst_33 : f32 to vector<1x40xf32>
    %65 = arith.mulf %63, %64 : vector<1x40xf32>
    %66 = arith.mulf %53, %60 : vector<1x40xf32>
    %67 = arith.mulf %65, %65 : vector<1x40xf32>
    %68 = arith.subf %66, %67 : vector<1x40xf32>
    %69 = math.sqrt %68 : vector<1x40xf32>
    %70 = arith.addf %53, %60 : vector<1x40xf32>
    %cst_34 = arith.constant 2.000000e+00 : f32
    %71 = vector.broadcast %cst_34 : f32 to vector<1x40xf32>
    %72 = arith.mulf %71, %69 : vector<1x40xf32>
    %73 = arith.addf %70, %72 : vector<1x40xf32>
    %74 = math.sqrt %73 : vector<1x40xf32>
    %75 = arith.mulf %69, %74 : vector<1x40xf32>
    %76 = tpu.reciprocal %75 {approx = true} : vector<1x40xf32> -> vector<1x40xf32>
    %77 = arith.addf %60, %69 : vector<1x40xf32>
    %78 = arith.mulf %77, %76 : vector<1x40xf32>
    %79 = arith.addf %53, %69 : vector<1x40xf32>
    %80 = arith.mulf %79, %76 : vector<1x40xf32>
    %cst_35 = arith.constant 0.000000e+00 : f32
    %81 = vector.broadcast %cst_35 : f32 to vector<1x40xf32>
    %82 = arith.subf %81, %65 : vector<1x40xf32>
    %83 = arith.mulf %82, %76 : vector<1x40xf32>
    %84 = vector.broadcast %78 : vector<1x40xf32> to vector<72x40xf32>
    %85 = arith.mulf %84, %40 : vector<72x40xf32>
    %86 = vector.broadcast %83 : vector<1x40xf32> to vector<72x40xf32>
    %87 = arith.mulf %86, %42 : vector<72x40xf32>
    %88 = arith.addf %85, %87 : vector<72x40xf32>
    %89 = vector.broadcast %80 : vector<1x40xf32> to vector<72x40xf32>
    %90 = arith.mulf %89, %42 : vector<72x40xf32>
    %91 = vector.broadcast %83 : vector<1x40xf32> to vector<72x40xf32>
    %92 = arith.mulf %91, %40 : vector<72x40xf32>
    %93 = arith.addf %90, %92 : vector<72x40xf32>
    %c0_36 = arith.constant 0 : index
    %c0_37 = arith.constant 0 : index
    %94 = vector.load %arg5[%c0_36, %c0_37] : memref<3x40xf32, #tpu.memory_space<vmem>>, vector<1x40xf32>
    %c1_38 = arith.constant 1 : index
    %c0_39 = arith.constant 0 : index
    %95 = vector.load %arg5[%c1_38, %c0_39] : memref<3x40xf32, #tpu.memory_space<vmem>>, vector<1x40xf32>
    %c2_40 = arith.constant 2 : index
    %c0_41 = arith.constant 0 : index
    %96 = vector.load %arg5[%c2_40, %c0_41] : memref<3x40xf32, #tpu.memory_space<vmem>>, vector<1x40xf32>
    %c0_42 = arith.constant 0 : index
    %c0_43 = arith.constant 0 : index
    %97 = vector.load %arg6[%c0_42, %c0_43] : memref<2x40xf32, #tpu.memory_space<vmem>>, vector<1x40xf32>
    %c1_44 = arith.constant 1 : index
    %c0_45 = arith.constant 0 : index
    %98 = vector.load %arg6[%c1_44, %c0_45] : memref<2x40xf32, #tpu.memory_space<vmem>>, vector<1x40xf32>
    %99 = vector.broadcast %94 : vector<1x40xf32> to vector<72x40xf32>
    %100 = arith.mulf %99, %88 : vector<72x40xf32>
    %101 = vector.broadcast %96 : vector<1x40xf32> to vector<72x40xf32>
    %102 = arith.mulf %101, %93 : vector<72x40xf32>
    %103 = arith.addf %100, %102 : vector<72x40xf32>
    %104 = vector.broadcast %97 : vector<1x40xf32> to vector<72x40xf32>
    %105 = arith.addf %103, %104 : vector<72x40xf32>
    %106 = vector.broadcast %96 : vector<1x40xf32> to vector<72x40xf32>
    %107 = arith.mulf %106, %88 : vector<72x40xf32>
    %108 = vector.broadcast %95 : vector<1x40xf32> to vector<72x40xf32>
    %109 = arith.mulf %108, %93 : vector<72x40xf32>
    %110 = arith.addf %107, %109 : vector<72x40xf32>
    %111 = vector.broadcast %98 : vector<1x40xf32> to vector<72x40xf32>
    %112 = arith.addf %110, %111 : vector<72x40xf32>
    %113 = tpu.concatenate %105, %112 in 1 : vector<72x40xf32>, vector<72x40xf32> -> vector<72x80xf32>
    %c0_46 = arith.constant 0 : index
    %c0_47 = arith.constant 0 : index
    %114 = vector.load %arg18[%c0_46, %c0_47] : memref<104x80xf32, #tpu.memory_space<vmem>>, vector<72x80xf32>
    tpu.vector_store %arg18[%c0_46, %c0_47], %113 {strides = array<i32>} : memref<104x80xf32, #tpu.memory_space<vmem>>, vector<72x80xf32>,
    %cst_48 = arith.constant 0.000000e+00 : f32
    %115 = vector.broadcast %cst_48 : f32 to vector<32x80xf32>
    %c72 = arith.constant 72 : index
    %c0_49 = arith.constant 0 : index
    %116 = vector.load %arg18[%c72, %c0_49] : memref<104x80xf32, #tpu.memory_space<vmem>>, vector<32x80xf32>
    tpu.vector_store %arg18[%c72, %c0_49], %115 {strides = array<i32>} : memref<104x80xf32, #tpu.memory_space<vmem>>, vector<32x80xf32>,
    %c0_50 = arith.constant 0 : index
    %c0_51 = arith.constant 0 : index
    %117 = vector.load %arg18[%c0_50, %c0_51] : memref<104x80xf32, #tpu.memory_space<vmem>>, vector<72x80xf32>
    %c0_52 = arith.constant 0 : index
    %c0_53 = arith.constant 0 : index
    %c0_54 = arith.constant 0 : index
    %118 = vector.load %arg7[%c0_52, %c0_53, %c0_54] : memref<4x80x200xf32, #tpu.memory_space<vmem>>, vector<1x80x200xf32>
    %119 = vector.shape_cast %118 : vector<1x80x200xf32> to vector<80x200xf32>
    %cst_55 = arith.constant dense<0.000000e+00> : vector<72x200xf32>
    %120 = tpu.matmul %117, %119, %cst_55 {dimension_numbers = #tpu.dot_dimension_numbers<[1], [0], [0], [1], [0, 0, 1, 1], [], []>} : vector<72x80xf32>, vector<80x200xf32>, vector<72x200xf32> -> vector<72x200xf32>
    %c2_56 = arith.constant 2 : index
    %c0_57 = arith.constant 0 : index
    %121 = vector.load %arg18[%c2_56, %c0_57] : memref<104x80xf32, #tpu.memory_space<vmem>>, vector<72x80xf32>
    %c1_58 = arith.constant 1 : index
    %c0_59 = arith.constant 0 : index
    %c0_60 = arith.constant 0 : index
    %122 = vector.load %arg7[%c1_58, %c0_59, %c0_60] : memref<4x80x200xf32, #tpu.memory_space<vmem>>, vector<1x80x200xf32>
    %123 = vector.shape_cast %122 : vector<1x80x200xf32> to vector<80x200xf32>
    %cst_61 = arith.constant dense<0.000000e+00> : vector<72x200xf32>
    %124 = tpu.matmul %121, %123, %cst_61 {dimension_numbers = #tpu.dot_dimension_numbers<[1], [0], [0], [1], [0, 0, 1, 1], [], []>} : vector<72x80xf32>, vector<80x200xf32>, vector<72x200xf32> -> vector<72x200xf32>
    %125 = arith.addf %120, %124 : vector<72x200xf32>
    %c12_62 = arith.constant 12 : index
    %c0_63 = arith.constant 0 : index
    %126 = vector.load %arg18[%c12_62, %c0_63] : memref<104x80xf32, #tpu.memory_space<vmem>>, vector<72x80xf32>
    %c2_64 = arith.constant 2 : index
    %c0_65 = arith.constant 0 : index
    %c0_66 = arith.constant 0 : index
    %127 = vector.load %arg7[%c2_64, %c0_65, %c0_66] : memref<4x80x200xf32, #tpu.memory_space<vmem>>, vector<1x80x200xf32>
    %128 = vector.shape_cast %127 : vector<1x80x200xf32> to vector<80x200xf32>
    %cst_67 = arith.constant dense<0.000000e+00> : vector<72x200xf32>
    %129 = tpu.matmul %126, %128, %cst_67 {dimension_numbers = #tpu.dot_dimension_numbers<[1], [0], [0], [1], [0, 0, 1, 1], [], []>} : vector<72x80xf32>, vector<80x200xf32>, vector<72x200xf32> -> vector<72x200xf32>
    %130 = arith.addf %125, %129 : vector<72x200xf32>
    %c14_68 = arith.constant 14 : index
    %c0_69 = arith.constant 0 : index
    %131 = vector.load %arg18[%c14_68, %c0_69] : memref<104x80xf32, #tpu.memory_space<vmem>>, vector<72x80xf32>
    %c3_70 = arith.constant 3 : index
    %c0_71 = arith.constant 0 : index
    %c0_72 = arith.constant 0 : index
    %132 = vector.load %arg7[%c3_70, %c0_71, %c0_72] : memref<4x80x200xf32, #tpu.memory_space<vmem>>, vector<1x80x200xf32>
    %133 = vector.shape_cast %132 : vector<1x80x200xf32> to vector<80x200xf32>
    %cst_73 = arith.constant dense<0.000000e+00> : vector<72x200xf32>
    %134 = tpu.matmul %131, %133, %cst_73 {dimension_numbers = #tpu.dot_dimension_numbers<[1], [0], [0], [1], [0, 0, 1, 1], [], []>} : vector<72x80xf32>, vector<80x200xf32>, vector<72x200xf32> -> vector<72x200xf32>
    %135 = arith.addf %130, %134 : vector<72x200xf32>
    %c0_74 = arith.constant 0 : index
    %c0_75 = arith.constant 0 : index
    %136 = vector.load %arg8[%c0_74, %c0_75] : memref<1x200xf32, #tpu.memory_space<vmem>>, vector<1x200xf32>
    %137 = vector.broadcast %136 : vector<1x200xf32> to vector<72x200xf32>
    %138 = arith.addf %135, %137 : vector<72x200xf32>
    %cst_76 = arith.constant 0.000000e+00 : f32
    %139 = vector.broadcast %cst_76 : f32 to vector<72x200xf32>
    %140 = arith.maximumf %138, %139 : vector<72x200xf32>
    %c0_77 = arith.constant 0 : index
    %c0_78 = arith.constant 0 : index
    %141 = vector.load %arg2[%c0_77, %c0_78] : memref<72x1xf32, #tpu.memory_space<vmem>>, vector<72x1xf32>
    %142 = vector.extract_strided_slice %140 {offsets = [0, 0], sizes = [72, 100], strides = [1, 1]} : vector<72x200xf32> to vector<72x100xf32>
    %143 = vector.extract_strided_slice %140 {offsets = [0, 100], sizes = [72, 100], strides = [1, 1]} : vector<72x200xf32> to vector<72x100xf32>
    %144 = vector.broadcast %141 : vector<72x1xf32> to vector<72x100xf32>
    %145 = arith.mulf %142, %144 : vector<72x100xf32>
    %cst_79 = arith.constant dense<0.000000e+00> : vector<100xf32>
    %146 = vector.multi_reduction <add>, %145, %cst_79 [0] : vector<72x100xf32> to vector<100xf32>
    %147 = vector.shape_cast %146 : vector<100xf32> to vector<1x100xf32>
    %cst_80 = arith.constant 3.125000e-02 : f32
    %148 = vector.broadcast %cst_80 : f32 to vector<1x100xf32>
    %149 = arith.mulf %147, %148 : vector<1x100xf32>
    %150 = vector.broadcast %141 : vector<72x1xf32> to vector<72x100xf32>
    %151 = arith.mulf %143, %150 : vector<72x100xf32>
    %cst_81 = arith.constant dense<0.000000e+00> : vector<100xf32>
    %152 = vector.multi_reduction <add>, %151, %cst_81 [0] : vector<72x100xf32> to vector<100xf32>
    %153 = vector.shape_cast %152 : vector<100xf32> to vector<1x100xf32>
    %cst_82 = arith.constant 3.125000e-02 : f32
    %154 = vector.broadcast %cst_82 : f32 to vector<1x100xf32>
    %155 = arith.mulf %153, %154 : vector<1x100xf32>
    %156 = vector.broadcast %149 : vector<1x100xf32> to vector<72x100xf32>
    %157 = arith.subf %142, %156 : vector<72x100xf32>
    %158 = vector.broadcast %155 : vector<1x100xf32> to vector<72x100xf32>
    %159 = arith.subf %143, %158 : vector<72x100xf32>
    %160 = vector.broadcast %141 : vector<72x1xf32> to vector<72x100xf32>
    %161 = arith.mulf %157, %160 : vector<72x100xf32>
    %162 = vector.broadcast %141 : vector<72x1xf32> to vector<72x100xf32>
    %163 = arith.mulf %159, %162 : vector<72x100xf32>
    %164 = arith.mulf %161, %161 : vector<72x100xf32>
    %cst_83 = arith.constant dense<0.000000e+00> : vector<100xf32>
    %165 = vector.multi_reduction <add>, %164, %cst_83 [0] : vector<72x100xf32> to vector<100xf32>
    %166 = vector.shape_cast %165 : vector<100xf32> to vector<1x100xf32>
    %cst_84 = arith.constant 3.125000e-02 : f32
    %167 = vector.broadcast %cst_84 : f32 to vector<1x100xf32>
    %168 = arith.mulf %166, %167 : vector<1x100xf32>
    %cst_85 = arith.constant 9.99999974E-6 : f32
    %169 = vector.broadcast %cst_85 : f32 to vector<1x100xf32>
    %170 = arith.addf %168, %169 : vector<1x100xf32>
    %171 = arith.mulf %163, %163 : vector<72x100xf32>
    %cst_86 = arith.constant dense<0.000000e+00> : vector<100xf32>
    %172 = vector.multi_reduction <add>, %171, %cst_86 [0] : vector<72x100xf32> to vector<100xf32>
    %173 = vector.shape_cast %172 : vector<100xf32> to vector<1x100xf32>
    %cst_87 = arith.constant 3.125000e-02 : f32
    %174 = vector.broadcast %cst_87 : f32 to vector<1x100xf32>
    %175 = arith.mulf %173, %174 : vector<1x100xf32>
    %cst_88 = arith.constant 9.99999974E-6 : f32
    %176 = vector.broadcast %cst_88 : f32 to vector<1x100xf32>
    %177 = arith.addf %175, %176 : vector<1x100xf32>
    %178 = arith.mulf %161, %163 : vector<72x100xf32>
    %cst_89 = arith.constant dense<0.000000e+00> : vector<100xf32>
    %179 = vector.multi_reduction <add>, %178, %cst_89 [0] : vector<72x100xf32> to vector<100xf32>
    %180 = vector.shape_cast %179 : vector<100xf32> to vector<1x100xf32>
    %cst_90 = arith.constant 3.125000e-02 : f32
    %181 = vector.broadcast %cst_90 : f32 to vector<1x100xf32>
    %182 = arith.mulf %180, %181 : vector<1x100xf32>
    %183 = arith.mulf %170, %177 : vector<1x100xf32>
    %184 = arith.mulf %182, %182 : vector<1x100xf32>
    %185 = arith.subf %183, %184 : vector<1x100xf32>
    %186 = math.sqrt %185 : vector<1x100xf32>
    %187 = arith.addf %170, %177 : vector<1x100xf32>
    %cst_91 = arith.constant 2.000000e+00 : f32
    %188 = vector.broadcast %cst_91 : f32 to vector<1x100xf32>
    %189 = arith.mulf %188, %186 : vector<1x100xf32>
    %190 = arith.addf %187, %189 : vector<1x100xf32>
    %191 = math.sqrt %190 : vector<1x100xf32>
    %192 = arith.mulf %186, %191 : vector<1x100xf32>
    %193 = tpu.reciprocal %192 {approx = true} : vector<1x100xf32> -> vector<1x100xf32>
    %194 = arith.addf %177, %186 : vector<1x100xf32>
    %195 = arith.mulf %194, %193 : vector<1x100xf32>
    %196 = arith.addf %170, %186 : vector<1x100xf32>
    %197 = arith.mulf %196, %193 : vector<1x100xf32>
    %cst_92 = arith.constant 0.000000e+00 : f32
    %198 = vector.broadcast %cst_92 : f32 to vector<1x100xf32>
    %199 = arith.subf %198, %182 : vector<1x100xf32>
    %200 = arith.mulf %199, %193 : vector<1x100xf32>
    %201 = vector.broadcast %195 : vector<1x100xf32> to vector<72x100xf32>
    %202 = arith.mulf %201, %157 : vector<72x100xf32>
    %203 = vector.broadcast %200 : vector<1x100xf32> to vector<72x100xf32>
    %204 = arith.mulf %203, %159 : vector<72x100xf32>
    %205 = arith.addf %202, %204 : vector<72x100xf32>
    %206 = vector.broadcast %197 : vector<1x100xf32> to vector<72x100xf32>
    %207 = arith.mulf %206, %159 : vector<72x100xf32>
    %208 = vector.broadcast %200 : vector<1x100xf32> to vector<72x100xf32>
    %209 = arith.mulf %208, %157 : vector<72x100xf32>
    %210 = arith.addf %207, %209 : vector<72x100xf32>
    %c0_93 = arith.constant 0 : index
    %c0_94 = arith.constant 0 : index
    %211 = vector.load %arg9[%c0_93, %c0_94] : memref<3x100xf32, #tpu.memory_space<vmem>>, vector<1x100xf32>
    %c1_95 = arith.constant 1 : index
    %c0_96 = arith.constant 0 : index
    %212 = vector.load %arg9[%c1_95, %c0_96] : memref<3x100xf32, #tpu.memory_space<vmem>>, vector<1x100xf32>
    %c2_97 = arith.constant 2 : index
    %c0_98 = arith.constant 0 : index
    %213 = vector.load %arg9[%c2_97, %c0_98] : memref<3x100xf32, #tpu.memory_space<vmem>>, vector<1x100xf32>
    %c0_99 = arith.constant 0 : index
    %c0_100 = arith.constant 0 : index
    %214 = vector.load %arg10[%c0_99, %c0_100] : memref<2x100xf32, #tpu.memory_space<vmem>>, vector<1x100xf32>
    %c1_101 = arith.constant 1 : index
    %c0_102 = arith.constant 0 : index
    %215 = vector.load %arg10[%c1_101, %c0_102] : memref<2x100xf32, #tpu.memory_space<vmem>>, vector<1x100xf32>
    %216 = vector.broadcast %211 : vector<1x100xf32> to vector<72x100xf32>
    %217 = arith.mulf %216, %205 : vector<72x100xf32>
    %218 = vector.broadcast %213 : vector<1x100xf32> to vector<72x100xf32>
    %219 = arith.mulf %218, %210 : vector<72x100xf32>
    %220 = arith.addf %217, %219 : vector<72x100xf32>
    %221 = vector.broadcast %214 : vector<1x100xf32> to vector<72x100xf32>
    %222 = arith.addf %220, %221 : vector<72x100xf32>
    %223 = vector.broadcast %213 : vector<1x100xf32> to vector<72x100xf32>
    %224 = arith.mulf %223, %205 : vector<72x100xf32>
    %225 = vector.broadcast %212 : vector<1x100xf32> to vector<72x100xf32>
    %226 = arith.mulf %225, %210 : vector<72x100xf32>
    %227 = arith.addf %224, %226 : vector<72x100xf32>
    %228 = vector.broadcast %215 : vector<1x100xf32> to vector<72x100xf32>
    %229 = arith.addf %227, %228 : vector<72x100xf32>
    %230 = tpu.concatenate %222, %229 in 1 : vector<72x100xf32>, vector<72x100xf32> -> vector<72x200xf32>
    %c0_103 = arith.constant 0 : index
    %c0_104 = arith.constant 0 : index
    %231 = vector.load %arg19[%c0_103, %c0_104] : memref<104x200xf32, #tpu.memory_space<vmem>>, vector<72x200xf32>
    tpu.vector_store %arg19[%c0_103, %c0_104], %230 {strides = array<i32>} : memref<104x200xf32, #tpu.memory_space<vmem>>, vector<72x200xf32>,
    %cst_105 = arith.constant 0.000000e+00 : f32
    %232 = vector.broadcast %cst_105 : f32 to vector<32x200xf32>
    %c72_106 = arith.constant 72 : index
    %c0_107 = arith.constant 0 : index
    %233 = vector.load %arg19[%c72_106, %c0_107] : memref<104x200xf32, #tpu.memory_space<vmem>>, vector<32x200xf32>
    tpu.vector_store %arg19[%c72_106, %c0_107], %232 {strides = array<i32>} : memref<104x200xf32, #tpu.memory_space<vmem>>, vector<32x200xf32>,
    %c0_108 = arith.constant 0 : index
    %c0_109 = arith.constant 0 : index
    %234 = vector.load %arg19[%c0_108, %c0_109] : memref<104x200xf32, #tpu.memory_space<vmem>>, vector<72x200xf32>
    %c0_110 = arith.constant 0 : index
    %c0_111 = arith.constant 0 : index
    %c0_112 = arith.constant 0 : index
    %235 = vector.load %arg11[%c0_110, %c0_111, %c0_112] : memref<9x200x6xf32, #tpu.memory_space<vmem>>, vector<1x200x6xf32>
    %236 = vector.shape_cast %235 : vector<1x200x6xf32> to vector<200x6xf32>
    %cst_113 = arith.constant dense<0.000000e+00> : vector<72x6xf32>
    %237 = tpu.matmul %234, %236, %cst_113 {dimension_numbers = #tpu.dot_dimension_numbers<[1], [0], [0], [1], [0, 0, 1, 1], [], []>} : vector<72x200xf32>, vector<200x6xf32>, vector<72x6xf32> -> vector<72x6xf32>
    %c2_114 = arith.constant 2 : index
    %c0_115 = arith.constant 0 : index
    %238 = vector.load %arg19[%c2_114, %c0_115] : memref<104x200xf32, #tpu.memory_space<vmem>>, vector<72x200xf32>
    %c1_116 = arith.constant 1 : index
    %c0_117 = arith.constant 0 : index
    %c0_118 = arith.constant 0 : index
    %239 = vector.load %arg11[%c1_116, %c0_117, %c0_118] : memref<9x200x6xf32, #tpu.memory_space<vmem>>, vector<1x200x6xf32>
    %240 = vector.shape_cast %239 : vector<1x200x6xf32> to vector<200x6xf32>
    %cst_119 = arith.constant dense<0.000000e+00> : vector<72x6xf32>
    %241 = tpu.matmul %238, %240, %cst_119 {dimension_numbers = #tpu.dot_dimension_numbers<[1], [0], [0], [1], [0, 0, 1, 1], [], []>} : vector<72x200xf32>, vector<200x6xf32>, vector<72x6xf32> -> vector<72x6xf32>
    %242 = arith.addf %237, %241 : vector<72x6xf32>
    %c4 = arith.constant 4 : index
    %c0_120 = arith.constant 0 : index
    %243 = vector.load %arg19[%c4, %c0_120] : memref<104x200xf32, #tpu.memory_space<vmem>>, vector<72x200xf32>
    %c2_121 = arith.constant 2 : index
    %c0_122 = arith.constant 0 : index
    %c0_123 = arith.constant 0 : index
    %244 = vector.load %arg11[%c2_121, %c0_122, %c0_123] : memref<9x200x6xf32, #tpu.memory_space<vmem>>, vector<1x200x6xf32>
    %245 = vector.shape_cast %244 : vector<1x200x6xf32> to vector<200x6xf32>
    %cst_124 = arith.constant dense<0.000000e+00> : vector<72x6xf32>
    %246 = tpu.matmul %243, %245, %cst_124 {dimension_numbers = #tpu.dot_dimension_numbers<[1], [0], [0], [1], [0, 0, 1, 1], [], []>} : vector<72x200xf32>, vector<200x6xf32>, vector<72x6xf32> -> vector<72x6xf32>
    %247 = arith.addf %242, %246 : vector<72x6xf32>
    %c12_125 = arith.constant 12 : index
    %c0_126 = arith.constant 0 : index
    %248 = vector.load %arg19[%c12_125, %c0_126] : memref<104x200xf32, #tpu.memory_space<vmem>>, vector<72x200xf32>
    %c3_127 = arith.constant 3 : index
    %c0_128 = arith.constant 0 : index
    %c0_129 = arith.constant 0 : index
    %249 = vector.load %arg11[%c3_127, %c0_128, %c0_129] : memref<9x200x6xf32, #tpu.memory_space<vmem>>, vector<1x200x6xf32>
    %250 = vector.shape_cast %249 : vector<1x200x6xf32> to vector<200x6xf32>
    %cst_130 = arith.constant dense<0.000000e+00> : vector<72x6xf32>
    %251 = tpu.matmul %248, %250, %cst_130 {dimension_numbers = #tpu.dot_dimension_numbers<[1], [0], [0], [1], [0, 0, 1, 1], [], []>} : vector<72x200xf32>, vector<200x6xf32>, vector<72x6xf32> -> vector<72x6xf32>
    %252 = arith.addf %247, %251 : vector<72x6xf32>
    %c14_131 = arith.constant 14 : index
    %c0_132 = arith.constant 0 : index
    %253 = vector.load %arg19[%c14_131, %c0_132] : memref<104x200xf32, #tpu.memory_space<vmem>>, vector<72x200xf32>
    %c4_133 = arith.constant 4 : index
    %c0_134 = arith.constant 0 : index
    %c0_135 = arith.constant 0 : index
    %254 = vector.load %arg11[%c4_133, %c0_134, %c0_135] : memref<9x200x6xf32, #tpu.memory_space<vmem>>, vector<1x200x6xf32>
    %255 = vector.shape_cast %254 : vector<1x200x6xf32> to vector<200x6xf32>
    %cst_136 = arith.constant dense<0.000000e+00> : vector<72x6xf32>
    %256 = tpu.matmul %253, %255, %cst_136 {dimension_numbers = #tpu.dot_dimension_numbers<[1], [0], [0], [1], [0, 0, 1, 1], [], []>} : vector<72x200xf32>, vector<200x6xf32>, vector<72x6xf32> -> vector<72x6xf32>
    %257 = arith.addf %252, %256 : vector<72x6xf32>
    %c16 = arith.constant 16 : index
    %c0_137 = arith.constant 0 : index
    %258 = vector.load %arg19[%c16, %c0_137] : memref<104x200xf32, #tpu.memory_space<vmem>>, vector<72x200xf32>
    %c5 = arith.constant 5 : index
    %c0_138 = arith.constant 0 : index
    %c0_139 = arith.constant 0 : index
    %259 = vector.load %arg11[%c5, %c0_138, %c0_139] : memref<9x200x6xf32, #tpu.memory_space<vmem>>, vector<1x200x6xf32>
    %260 = vector.shape_cast %259 : vector<1x200x6xf32> to vector<200x6xf32>
    %cst_140 = arith.constant dense<0.000000e+00> : vector<72x6xf32>
    %261 = tpu.matmul %258, %260, %cst_140 {dimension_numbers = #tpu.dot_dimension_numbers<[1], [0], [0], [1], [0, 0, 1, 1], [], []>} : vector<72x200xf32>, vector<200x6xf32>, vector<72x6xf32> -> vector<72x6xf32>
    %262 = arith.addf %257, %261 : vector<72x6xf32>
    %c24 = arith.constant 24 : index
    %c0_141 = arith.constant 0 : index
    %263 = vector.load %arg19[%c24, %c0_141] : memref<104x200xf32, #tpu.memory_space<vmem>>, vector<72x200xf32>
    %c6 = arith.constant 6 : index
    %c0_142 = arith.constant 0 : index
    %c0_143 = arith.constant 0 : index
    %264 = vector.load %arg11[%c6, %c0_142, %c0_143] : memref<9x200x6xf32, #tpu.memory_space<vmem>>, vector<1x200x6xf32>
    %265 = vector.shape_cast %264 : vector<1x200x6xf32> to vector<200x6xf32>
    %cst_144 = arith.constant dense<0.000000e+00> : vector<72x6xf32>
    %266 = tpu.matmul %263, %265, %cst_144 {dimension_numbers = #tpu.dot_dimension_numbers<[1], [0], [0], [1], [0, 0, 1, 1], [], []>} : vector<72x200xf32>, vector<200x6xf32>, vector<72x6xf32> -> vector<72x6xf32>
    %267 = arith.addf %262, %266 : vector<72x6xf32>
    %c26 = arith.constant 26 : index
    %c0_145 = arith.constant 0 : index
    %268 = vector.load %arg19[%c26, %c0_145] : memref<104x200xf32, #tpu.memory_space<vmem>>, vector<72x200xf32>
    %c7 = arith.constant 7 : index
    %c0_146 = arith.constant 0 : index
    %c0_147 = arith.constant 0 : index
    %269 = vector.load %arg11[%c7, %c0_146, %c0_147] : memref<9x200x6xf32, #tpu.memory_space<vmem>>, vector<1x200x6xf32>
    %270 = vector.shape_cast %269 : vector<1x200x6xf32> to vector<200x6xf32>
    %cst_148 = arith.constant dense<0.000000e+00> : vector<72x6xf32>
    %271 = tpu.matmul %268, %270, %cst_148 {dimension_numbers = #tpu.dot_dimension_numbers<[1], [0], [0], [1], [0, 0, 1, 1], [], []>} : vector<72x200xf32>, vector<200x6xf32>, vector<72x6xf32> -> vector<72x6xf32>
    %272 = arith.addf %267, %271 : vector<72x6xf32>
    %c28 = arith.constant 28 : index
    %c0_149 = arith.constant 0 : index
    %273 = vector.load %arg19[%c28, %c0_149] : memref<104x200xf32, #tpu.memory_space<vmem>>, vector<72x200xf32>
    %c8 = arith.constant 8 : index
    %c0_150 = arith.constant 0 : index
    %c0_151 = arith.constant 0 : index
    %274 = vector.load %arg11[%c8, %c0_150, %c0_151] : memref<9x200x6xf32, #tpu.memory_space<vmem>>, vector<1x200x6xf32>
    %275 = vector.shape_cast %274 : vector<1x200x6xf32> to vector<200x6xf32>
    %cst_152 = arith.constant dense<0.000000e+00> : vector<72x6xf32>
    %276 = tpu.matmul %273, %275, %cst_152 {dimension_numbers = #tpu.dot_dimension_numbers<[1], [0], [0], [1], [0, 0, 1, 1], [], []>} : vector<72x200xf32>, vector<200x6xf32>, vector<72x6xf32> -> vector<72x6xf32>
    %277 = arith.addf %272, %276 : vector<72x6xf32>
    %c0_153 = arith.constant 0 : index
    %c0_154 = arith.constant 0 : index
    %278 = vector.load %arg12[%c0_153, %c0_154] : memref<1x6xf32, #tpu.memory_space<vmem>>, vector<1x6xf32>
    %279 = vector.broadcast %278 : vector<1x6xf32> to vector<72x6xf32>
    %280 = arith.addf %277, %279 : vector<72x6xf32>
    %cst_155 = arith.constant 0.000000e+00 : f32
    %281 = vector.broadcast %cst_155 : f32 to vector<72x6xf32>
    %282 = arith.maximumf %280, %281 : vector<72x6xf32>
    %c0_156 = arith.constant 0 : index
    %c0_157 = arith.constant 0 : index
    %283 = vector.load %arg20[%c0_156, %c0_157] : memref<104x6xf32, #tpu.memory_space<vmem>>, vector<72x6xf32>
    tpu.vector_store %arg20[%c0_156, %c0_157], %282 {strides = array<i32>} : memref<104x6xf32, #tpu.memory_space<vmem>>, vector<72x6xf32>,
    %cst_158 = arith.constant 0.000000e+00 : f32
    %284 = vector.broadcast %cst_158 : f32 to vector<32x6xf32>
    %c72_159 = arith.constant 72 : index
    %c0_160 = arith.constant 0 : index
    %285 = vector.load %arg20[%c72_159, %c0_160] : memref<104x6xf32, #tpu.memory_space<vmem>>, vector<32x6xf32>
    tpu.vector_store %arg20[%c72_159, %c0_160], %284 {strides = array<i32>} : memref<104x6xf32, #tpu.memory_space<vmem>>, vector<32x6xf32>,
    %c0_161 = arith.constant 0 : index
    %c0_162 = arith.constant 0 : index
    %286 = vector.load %arg20[%c0_161, %c0_162] : memref<104x6xf32, #tpu.memory_space<vmem>>, vector<8x6xf32>
    %c0_163 = arith.constant 0 : index
    %c0_164 = arith.constant 0 : index
    %c0_165 = arith.constant 0 : index
    %287 = vector.load %arg13[%c0_163, %c0_164, %c0_165] : memref<4x6x192xf32, #tpu.memory_space<vmem>>, vector<1x6x192xf32>
    %288 = vector.shape_cast %287 : vector<1x6x192xf32> to vector<6x192xf32>
    %cst_166 = arith.constant dense<0.000000e+00> : vector<8x192xf32>
    %289 = tpu.matmul %286, %288, %cst_166 {dimension_numbers = #tpu.dot_dimension_numbers<[1], [0], [0], [1], [0, 0, 1, 1], [], []>} : vector<8x6xf32>, vector<6x192xf32>, vector<8x192xf32> -> vector<8x192xf32>
    %c2_167 = arith.constant 2 : index
    %c0_168 = arith.constant 0 : index
    %290 = vector.load %arg20[%c2_167, %c0_168] : memref<104x6xf32, #tpu.memory_space<vmem>>, vector<8x6xf32>
    %c1_169 = arith.constant 1 : index
    %c0_170 = arith.constant 0 : index
    %c0_171 = arith.constant 0 : index
    %291 = vector.load %arg13[%c1_169, %c0_170, %c0_171] : memref<4x6x192xf32, #tpu.memory_space<vmem>>, vector<1x6x192xf32>
    %292 = vector.shape_cast %291 : vector<1x6x192xf32> to vector<6x192xf32>
    %cst_172 = arith.constant dense<0.000000e+00> : vector<8x192xf32>
    %293 = tpu.matmul %290, %292, %cst_172 {dimension_numbers = #tpu.dot_dimension_numbers<[1], [0], [0], [1], [0, 0, 1, 1], [], []>} : vector<8x6xf32>, vector<6x192xf32>, vector<8x192xf32> -> vector<8x192xf32>
    %294 = arith.addf %289, %293 : vector<8x192xf32>
    %c12_173 = arith.constant 12 : index
    %c0_174 = arith.constant 0 : index
    %295 = vector.load %arg20[%c12_173, %c0_174] : memref<104x6xf32, #tpu.memory_space<vmem>>, vector<8x6xf32>
    %c2_175 = arith.constant 2 : index
    %c0_176 = arith.constant 0 : index
    %c0_177 = arith.constant 0 : index
    %296 = vector.load %arg13[%c2_175, %c0_176, %c0_177] : memref<4x6x192xf32, #tpu.memory_space<vmem>>, vector<1x6x192xf32>
    %297 = vector.shape_cast %296 : vector<1x6x192xf32> to vector<6x192xf32>
    %cst_178 = arith.constant dense<0.000000e+00> : vector<8x192xf32>
    %298 = tpu.matmul %295, %297, %cst_178 {dimension_numbers = #tpu.dot_dimension_numbers<[1], [0], [0], [1], [0, 0, 1, 1], [], []>} : vector<8x6xf32>, vector<6x192xf32>, vector<8x192xf32> -> vector<8x192xf32>
    %299 = arith.addf %294, %298 : vector<8x192xf32>
    %c14_179 = arith.constant 14 : index
    %c0_180 = arith.constant 0 : index
    %300 = vector.load %arg20[%c14_179, %c0_180] : memref<104x6xf32, #tpu.memory_space<vmem>>, vector<8x6xf32>
    %c3_181 = arith.constant 3 : index
    %c0_182 = arith.constant 0 : index
    %c0_183 = arith.constant 0 : index
    %301 = vector.load %arg13[%c3_181, %c0_182, %c0_183] : memref<4x6x192xf32, #tpu.memory_space<vmem>>, vector<1x6x192xf32>
    %302 = vector.shape_cast %301 : vector<1x6x192xf32> to vector<6x192xf32>
    %cst_184 = arith.constant dense<0.000000e+00> : vector<8x192xf32>
    %303 = tpu.matmul %300, %302, %cst_184 {dimension_numbers = #tpu.dot_dimension_numbers<[1], [0], [0], [1], [0, 0, 1, 1], [], []>} : vector<8x6xf32>, vector<6x192xf32>, vector<8x192xf32> -> vector<8x192xf32>
    %304 = arith.addf %299, %303 : vector<8x192xf32>
    %c0_185 = arith.constant 0 : index
    %c0_186 = arith.constant 0 : index
    %305 = vector.load %arg14[%c0_185, %c0_186] : memref<1x192xf32, #tpu.memory_space<vmem>>, vector<1x192xf32>
    %306 = vector.broadcast %305 : vector<1x192xf32> to vector<8x192xf32>
    %307 = arith.addf %304, %306 : vector<8x192xf32>
    %cst_187 = arith.constant 0.000000e+00 : f32
    %308 = vector.broadcast %cst_187 : f32 to vector<8x192xf32>
    %309 = arith.maximumf %307, %308 : vector<8x192xf32>
    %c0_188 = arith.constant 0 : index
    %c0_189 = arith.constant 0 : index
    %310 = vector.load %arg15[%c0_188, %c0_189] : memref<192x20xf32, #tpu.memory_space<vmem>>, vector<192x20xf32>
    %cst_190 = arith.constant dense<0.000000e+00> : vector<8x20xf32>
    %311 = tpu.matmul %309, %310, %cst_190 {dimension_numbers = #tpu.dot_dimension_numbers<[1], [0], [0], [1], [0, 0, 1, 1], [], []>} : vector<8x192xf32>, vector<192x20xf32>, vector<8x20xf32> -> vector<8x20xf32>
    %c0_191 = arith.constant 0 : index
    %c0_192 = arith.constant 0 : index
    %312 = vector.load %arg16[%c0_191, %c0_192] : memref<1x20xf32, #tpu.memory_space<vmem>>, vector<1x20xf32>
    %313 = vector.broadcast %312 : vector<1x20xf32> to vector<8x20xf32>
    %314 = arith.addf %311, %313 : vector<8x20xf32>
    %315 = vector.extract_strided_slice %314 {offsets = [0, 0], sizes = [2, 20], strides = [1, 1]} : vector<8x20xf32> to vector<2x20xf32>
    %c0_193 = arith.constant 0 : index
    %c0_194 = arith.constant 0 : index
    %316 = vector.load %arg17[%c0_193, %c0_194] : memref<2x20xf32, #tpu.memory_space<vmem>>, vector<2x20xf32>
    tpu.vector_store %arg17[%c0_193, %c0_194], %315 {strides = array<i32>} : memref<2x20xf32, #tpu.memory_space<vmem>>, vector<2x20xf32>,
    return
  }
}

</mosaic_0001>

<bundles_post_ra>
// kernel: forward.1
= control target key start
LH: loop header
LB: loop body
LE: loop exit
PB: predicated region body
PF: predicated region fallthrough
CT: control target
= control target key end

     0   :  { %s8977_s0 = inlined_call_operand.vmem [shape: f32[104,2], index: 0, kind: input, shape index: {}]   ;;  %s8978_s1 = inlined_call_operand.vmem [shape: f32[72,1], index: 1, kind: input, shape index: {}]   ;;  %s8979_s2 = inlined_call_operand.vmem [shape: f32[72,1], index: 2, kind: input, shape index: {}]   ;;  %s8980_s3 = inlined_call_operand.vmem [shape: f32[4,2,80], index: 3, kind: input, shape index: {}]   ;;  %s8981_s4 = inlined_call_operand.vmem [shape: f32[1,80], index: 4, kind: input, shape index: {}]   ;;  %s8982_s5 = inlined_call_operand.vmem [shape: f32[3,40], index: 5, kind: input, shape index: {}]   ;;  %s8983_s6 = inlined_call_operand.vmem [shape: f32[2,40], index: 6, kind: input, shape index: {}]   ;;  %s8984_s7 = inlined_call_operand.hbm [shape: f32[4,80,200], index: 7, kind: input, shape index: {}]   ;;  %s8985_s8 = inlined_call_operand.vmem [shape: f32[1,200], index: 8, kind: input, shape index: {}]   ;;  %s8986_s9 = inlined_call_operand.vmem [shape: f32[3,100], index: 9, kind: input, shape index: {}]   ;;  %s8987_s10 = inlined_call_operand.vmem [shape: f32[2,100], index: 10, kind: input, shape index: {}]   ;;  %s8988_s11 = inlined_call_operand.hbm [shape: f32[9,200,6], index: 11, kind: input, shape index: {}]   ;;  %s8989_s12 = inlined_call_operand.vmem [shape: f32[1,6], index: 12, kind: input, shape index: {}]   ;;  %s8990_s13 = inlined_call_operand.vmem [shape: f32[4,6,192], index: 13, kind: input, shape index: {}]   ;;  %s8991_s14 = inlined_call_operand.vmem [shape: f32[1,192], index: 14, kind: input, shape index: {}]   ;;  %s8992_s15 = inlined_call_operand.vmem [shape: f32[192,20], index: 15, kind: input, shape index: {}]   ;;  %s8993_s16 = inlined_call_operand.vmem [shape: f32[1,20], index: 16, kind: input, shape index: {}]   ;;  %s8994_s17 = inlined_call_operand.vmem [shape: f32[2,20], index: 17, kind: output, shape index: {}]  }
   0x1   :  { %9016 = sst [smem:[#allocation25_spill]] %s8977_s0 }
   0x2   :  { %9017 = sst [smem:[#allocation26_spill]] %s8978_s1 }
   0x3   :  { %22 = vsyncpa [#allocation6], 0 }
   0x4   :  { %23 = vsyncpa [#allocation8], 0  ;;  %s6490_s24 = smov [#allocation5]   ;;  %s6442_s28 = scalar_lea.hbm %s8984_s7, 10240 }
   0x5   :  { %s43_s25 = sshll.u32 %s6490_s24, 4  ;;  %p6443_p0 = scmp.ne.s32.totalorder %s8984_s7, %s6442_s28  ;;  %s44_s25 = int_to_ptr.vmem [resolvable:$true] %s43_s25 }
   0x6   :  { %p6446_p1 = scmp.lt.u32.totalorder %s6442_s28, %s8984_s7 }
   0x8   :  { %p6448_p2 = pnand %p6446_p1, %p6443_p0 }
   0xa   :  { %6451 = shalt.err (!%p6448_p2)
}
   0xb   :  { %s6452_s19 = scalar_lea.vmem %s44_s25, 10240  ;;  %p6457_p4 = scmp.lt.s32.totalorder %s44_s25, %s44_s25 }
   0xc   :  { %p6453_p3 = scmp.ne.s32.totalorder %s44_s25, %s6452_s19  ;;  %p6458_p5 = scmp.lt.s32.totalorder %s6452_s19, %s6452_s19 }
   0xe   :  { %p6459_p6 = por %p6458_p5, %p6457_p4 }
  0x10   :  { %p6460_p7 = pnand %p6459_p6, %p6453_p3 }
  0x12   :  { %6463 = shalt.err (!%p6460_p7)
}
  0x13   :  { %s6491_s1 = smov 256   ;;  %s6492_s20 = smov 16  }
  0x14   :  { %49 = dma.hbm_to_vmem [thread:$0]  %s8984_s7, 10240, %s44_s25, [#allocation6], %s6491_s1, %s6491_s1, %s6492_s20  }
  0x15   :  { %s6493_s23 = smov [#allocation7]   ;;  %s6464_s28 = scalar_lea.hbm %s8988_s11, 28800 }
  0x16   :  { %s61_s24 = sshll.u32 %s6493_s23, 4  ;;  %p6465_p8 = scmp.ne.s32.totalorder %s8988_s11, %s6464_s28  ;;  %s62_s24 = int_to_ptr.vmem [resolvable:$true] %s61_s24 }
  0x17   :  { %p6468_p9 = scmp.lt.u32.totalorder %s6464_s28, %s8988_s11 }
  0x19   :  { %p6470_p10 = pnand %p6468_p9, %p6465_p8 }
  0x1b   :  { %6473 = shalt.err (!%p6470_p10)
}
  0x1c   :  { %s6474_s19 = scalar_lea.vmem %s62_s24, 28800  ;;  %p6479_p12 = scmp.lt.s32.totalorder %s62_s24, %s62_s24 }
  0x1d   :  { %p6475_p11 = scmp.ne.s32.totalorder %s62_s24, %s6474_s19  ;;  %p6480_p13 = scmp.lt.s32.totalorder %s6474_s19, %s6474_s19 }
  0x1f   :  { %p6481_p0 = por %p6480_p13, %p6479_p12 }
  0x21   :  { %p6482_p1 = pnand %p6481_p0, %p6475_p11 }
  0x23   :  { %6485 = shalt.err (!%p6482_p1)
}
  0x24   :  { %s6494_s7 = smov 128   ;;  %s6495_s25 = smov 8  }
  0x25   :  { %67 = dma.hbm_to_vmem [thread:$0]  %s8988_s11, 28800, %s62_s24, [#allocation8], %s6494_s7, %s6494_s7, %s6495_s25  }
  0x26   :  { %6486 = dma.done.wait [#allocation6], 10240  }
  0x27   :  { %6487 = vsyncadd [#allocation6], 4294957056 }
  0x28   :  { %6488 = dma.done.wait [#allocation8], 28800  }
  0x29   :  { %6489 = vsyncadd [#allocation8], 4294938496  ;;  %vm1410_vm0 = vcmask 654336   ;;  %v6496_v0 = vmov 0.0   ;;  %vm6497_vm1 = vmmov 0   ;;  %v6498_v1 = vmov 0  }
  0x2a   :  { %1420 = vst.msk [vmem:[#allocation2 + $0x48] sm:$0xff] %vm1410_vm0, %v6496_v0  ;;  %1421 = vst.msk [vmem:[#allocation2 + $0x50] sm:$0xff] %vm1410_vm0, %v6496_v0  ;;  %5786 = vmatprep.subr.mxu0 %v6496_v0  ;;  %5815 = vmatprep.subr.mxu1 %v6496_v0  ;;  %vm133_vm2 = vcmask 1041408   ;;  %vm105_vm3 = vcmask 15360   ;;  %v5554_v2 = vld [vmem:[%s8980_s3 + $0x2] sm:$0x3] }
  0x2b   :  { %3130 = vst [vmem:[#allocation3 + $0x90] sm:$0xff] %v6496_v0  ;;  %3132 = vst [vmem:[#allocation3 + $0xa0] sm:$0xff] %v6496_v0  ;;  %5788 = vmatprep.mubr.msk.f32.mxu0 %vm6497_vm1, %v6496_v0  ;;  %5817 = vmatprep.mubr.msk.f32.mxu1 %vm6497_vm1, %v6496_v0  ;;  %v93_v3 = vld [vmem:[%s8980_s3] sm:$0x3]  ;;  %s9018_s27 = sld [smem:[#allocation25_spill]]  ;;  %s9019_s30 = sld [smem:[#allocation26_spill]] }
  0x2c   :  { %3136 = vst [vmem:[#allocation3 + $0xc0] sm:$0xff] %v6496_v0  ;;  %6416 = vset.pattern.permute.xlu0 %v6498_v1  ;;  %6417 = vset.pattern.permute.xlu1 %v6498_v1  ;;  %v5575_v6 = vld [vmem:[%s8980_s3 + $0x4] sm:$0x3]  ;;  %v5586_v7 = vld [vmem:[%s8980_s3 + $0x6] sm:$0x3]  ;;  %vm795_vm4 = vcmask 326656  }
  0x2d   :  { %5787 = vmatpush3.msk.msra.mxu0 %vm133_vm2, %v5554_v2  ;;  %5816 = vmatpush3.msk.msra.mxu1 %vm133_vm2, %v93_v3  ;;  %vm820_vm5 = vcmask 654656   ;;  %s6500_s3 = smov 40   ;;  %vm2332_vm10 = vcmask 588800   ;;  %vm2274_vm11 = vcmask 818176   ;;  %vm2308_vm12 = vcmask 1048352   ;;  %s6502_s0 = smov 100  }
  0x2e   :  { %5844 = vmatprep.subr.mxu0 %v6496_v0  ;;  %5873 = vmatprep.subr.mxu1 %v6496_v0  ;;  %vm2568_vm13 = vcmask 228352  }
  0x31   :  { %v94_v4 = vld [vmem:[%s9018_s27 + $0x2] sm:$0xff]  ;;  %v95_v8 = vld [vmem:[%s9018_s27 + $0xa] sm:$0xff]  ;;  %v96_v10 = vld [vmem:[%s9018_s27 + $0x12] sm:$0xff] }
  0x32   :  { %v84_v5 = vld [vmem:[%s9018_s27] sm:$0xff]  ;;  %5789 = vmatmul.mubr.msk.f32.vlgmr.msra.gmra.mrb[0].mxu0 %vm105_vm3, %v94_v4  ;;  %v85_v9 = vld [vmem:[%s9018_s27 + $0x8] sm:$0xff]  ;;  %v86_v11 = vld [vmem:[%s9018_s27 + $0x10] sm:$0xff] }
  0x33   :  { %5818 = vmatmul.mubr.msk.f32.vlgmr.msra.gmra.mrb[0].mxu1 %vm105_vm3, %v84_v5  ;;  %5845 = vmatpush3.msk.msra.mxu0 %vm133_vm2, %v5575_v6  ;;  %v97_v12 = vld [vmem:[%s9018_s27 + $0x1a] sm:$0xff]  ;;  %v734_v15 = vld [vmem:[%s9019_s30 + $0x10] sm:$0xff]  ;;  %v98_v16 = vld [vmem:[%s9018_s27 + $0x22] sm:$0xff] }
  0x34   :  { %5791 = vmatprep.mubr.msk.f32.mxu0 %vm6497_vm1, %v6496_v0  ;;  %5820 = vmatprep.mubr.msk.f32.mxu1 %vm6497_vm1, %v6496_v0  ;;  %v87_v13 = vld [vmem:[%s9018_s27 + $0x18] sm:$0xff]  ;;  %v732_v14 = vld [vmem:[%s9019_s30] sm:$0xff]  ;;  %v733_v18 = vld [vmem:[%s9019_s30 + $0x8] sm:$0xff] }
  0x35   :  { %5874 = vmatpush3.msk.msra.mxu1 %vm133_vm2, %v5586_v7  ;;  %v88_v17 = vld [vmem:[%s9018_s27 + $0x20] sm:$0xff]  ;;  %743 = vperm.xlu0 %6416, %v732_v14   ;;  %v735_v19 = vld [vmem:[%s9019_s30 + $0x18] sm:$0xff]  ;;  %v99_v20 = vld [vmem:[%s9018_s27 + $0x2a] sm:$0xff] }
  0x36   :  { %5792 = vmatmul.mubr.msk.f32.gmra.mrb[2].mxu0 %vm105_vm3, %v95_v8  ;;  %753 = vperm.xlu1 %6417, %v734_v15   ;;  %v89_v21 = vld [vmem:[%s9018_s27 + $0x28] sm:$0xff]  ;;  %v736_v22 = vld [vmem:[%s9019_s30 + $0x20] sm:$0xff]  ;;  %v100_v24 = vld [vmem:[%s9018_s27 + $0x32] sm:$0xff] }
  0x37   :  { %5821 = vmatmul.mubr.msk.f32.gmra.mrb[2].mxu1 %vm105_vm3, %v85_v9  ;;  %5794 = vmatprep.mubr.msk.f32.mxu0 %vm6497_vm1, %v6496_v0  ;;  %v737_v23 = vld [vmem:[%s9019_s30 + $0x28] sm:$0xff]  ;;  %v90_v25 = vld [vmem:[%s9018_s27 + $0x30] sm:$0xff]  ;;  %v739_v27 = vld [vmem:[%s9019_s30 + $0x38] sm:$0xff] }
  0x38   :  { %5823 = vmatprep.mubr.msk.f32.mxu1 %vm6497_vm1, %v6496_v0  ;;  %v738_v26 = vld [vmem:[%s9019_s30 + $0x30] sm:$0xff]  ;;  %v101_v28 = vld [vmem:[%s9018_s27 + $0x3a] sm:$0xff]  ;;  %v102_v31 = vld [vmem:[%s9018_s27 + $0x42] sm:$0xff] }
  0x39   :  { %748 = vperm.xlu0 %6416, %v733_v18   ;;  %v91_v29 = vld [vmem:[%s9018_s27 + $0x38] sm:$0xff]  ;;  %v740_v30 = vld [vmem:[%s9019_s30 + $0x40] sm:$0xff]  ;;  %v387_v33 = vld [vmem:[%s9018_s27 + $0xc] sm:$0xff] }
  0x3a   :  { %5795 = vmatmul.mubr.msk.f32.gmra.mrb[4].mxu0 %vm105_vm3, %v96_v10  ;;  %758 = vperm.xlu1 %6417, %v735_v19   ;;  %v92_v32 = vld [vmem:[%s9018_s27 + $0x40] sm:$0xff]  ;;  %v547_v34 = vld [vmem:[%s9018_s27 + $0xe] sm:$0xff]  ;;  %v548_v36 = vld [vmem:[%s9018_s27 + $0x16] sm:$0xff] }
  0x3b   :  { %5824 = vmatmul.mubr.msk.f32.gmra.mrb[4].mxu1 %vm105_vm3, %v86_v11  ;;  %5797 = vmatprep.mubr.msk.f32.mxu0 %vm6497_vm1, %v6496_v0  ;;  %v388_v35 = vld [vmem:[%s9018_s27 + $0x14] sm:$0xff]  ;;  %v389_v37 = vld [vmem:[%s9018_s27 + $0x1c] sm:$0xff]  ;;  %v390_v39 = vld [vmem:[%s9018_s27 + $0x24] sm:$0xff] }
  0x3c   :  { %5826 = vmatprep.mubr.msk.f32.mxu1 %vm6497_vm1, %v6496_v0  ;;  %v549_v38 = vld [vmem:[%s9018_s27 + $0x1e] sm:$0xff]  ;;  %v550_v40 = vld [vmem:[%s9018_s27 + $0x26] sm:$0xff]  ;;  %v551_v42 = vld [vmem:[%s9018_s27 + $0x2e] sm:$0xff] }
  0x3d   :  { %763 = vperm.xlu0 %6416, %v736_v22   ;;  %v391_v41 = vld [vmem:[%s9018_s27 + $0x2c] sm:$0xff]  ;;  %v392_v43 = vld [vmem:[%s9018_s27 + $0x34] sm:$0xff]  ;;  %v393_v45 = vld [vmem:[%s9018_s27 + $0x3c] sm:$0xff] }
  0x3e   :  { %5798 = vmatmul.mubr.msk.f32.gmra.mrb[6].mxu0 %vm105_vm3, %v97_v12  ;;  %768 = vperm.xlu1 %6417, %v737_v23   ;;  %v552_v44 = vld [vmem:[%s9018_s27 + $0x36] sm:$0xff]  ;;  %v553_v46 = vld [vmem:[%s9018_s27 + $0x3e] sm:$0xff]  ;;  %v554_v48 = vld [vmem:[%s9018_s27 + $0x46] sm:$0xff] }
  0x3f   :  { %5827 = vmatmul.mubr.msk.f32.gmra.mrb[6].mxu1 %vm105_vm3, %v87_v13  ;;  %5800 = vmatprep.mubr.msk.f32.mxu0 %vm6497_vm1, %v6496_v0  ;;  %v394_v47 = vld [vmem:[%s9018_s27 + $0x44] sm:$0xff]  ;;  %v395_v49 = vld [vmem:[%s9018_s27 + $0x4c] sm:$0xff] }
  0x40   :  { %5829 = vmatprep.mubr.msk.f32.mxu1 %vm6497_vm1, %v6496_v0  ;;  %v555_v50 = vld [vmem:[%s9018_s27 + $0x4e] sm:$0xff] }
  0x41   :  { %773 = vperm.xlu0 %6416, %v738_v26  }
  0x42   :  { %5801 = vmatmul.mubr.msk.f32.gmra.mrb[8].mxu0 %vm105_vm3, %v98_v16  ;;  %778 = vperm.xlu1 %6417, %v739_v27  }
  0x43   :  { %5830 = vmatmul.mubr.msk.f32.gmra.mrb[8].mxu1 %vm105_vm3, %v88_v17  ;;  %5803 = vmatprep.mubr.msk.f32.mxu0 %vm6497_vm1, %v6496_v0 }
  0x44   :  { %5832 = vmatprep.mubr.msk.f32.mxu1 %vm6497_vm1, %v6496_v0 }
  0x45   :  { %783 = vperm.xlu0 %6416, %v740_v30  }
  0x46   :  { %5804 = vmatmul.mubr.msk.f32.gmra.mrb[10].mxu0 %vm105_vm3, %v99_v20 }
  0x47   :  { %5833 = vmatmul.mubr.msk.f32.gmra.mrb[10].mxu1 %vm105_vm3, %v89_v21  ;;  %5806 = vmatprep.mubr.msk.f32.mxu0 %vm6497_vm1, %v6496_v0 }
  0x48   :  { %5835 = vmatprep.mubr.msk.f32.mxu1 %vm6497_vm1, %v6496_v0 }
  0x4a   :  { %5807 = vmatmul.mubr.msk.f32.gmra.mrb[12].mxu0 %vm105_vm3, %v100_v24 }
  0x4b   :  { %5836 = vmatmul.mubr.msk.f32.gmra.mrb[12].mxu1 %vm105_vm3, %v90_v25  ;;  %5809 = vmatprep.mubr.msk.f32.mxu0 %vm6497_vm1, %v6496_v0 }
  0x4c   :  { %5838 = vmatprep.mubr.msk.f32.mxu1 %vm6497_vm1, %v6496_v0 }
  0x4e   :  { %5810 = vmatmul.mubr.msk.f32.gmra.mrb[14].mxu0 %vm105_vm3, %v101_v28 }
  0x4f   :  { %5839 = vmatmul.mubr.msk.f32.gmra.mrb[14].mxu1 %vm105_vm3, %v91_v29  ;;  %5812 = vmatprep.mubr.msk.f32.mxu0 %vm6497_vm1, %v6496_v0 }
  0x50   :  { %5841 = vmatprep.mubr.msk.f32.mxu1 %vm6497_vm1, %v6496_v0 }
  0x52   :  { %5813 = vmatmul.mubr.msk.f32.gmra.mrb[16].mxu0 %vm105_vm3, %v102_v31 }
  0x53   :  { %5842 = vmatmul.mubr.msk.f32.gmra.mrb[16].mxu1 %vm105_vm3, %v92_v32  ;;  %5846 = vmatprep.mubr.msk.f32.mxu0 %vm6497_vm1, %v6496_v0 }
  0x54   :  { %5875 = vmatprep.mubr.msk.f32.mxu1 %vm6497_vm1, %v6496_v0 }
  0x56   :  { %5847 = vmatmul.mubr.msk.f32.vlgmr.msra.gmra.mrb[18].mxu0 %vm105_vm3, %v387_v33 }
  0x57   :  { %5876 = vmatmul.mubr.msk.f32.vlgmr.msra.gmra.mrb[18].mxu1 %vm105_vm3, %v547_v34  ;;  %5849 = vmatprep.mubr.msk.f32.mxu0 %vm6497_vm1, %v6496_v0 }
  0x58   :  { %5878 = vmatprep.mubr.msk.f32.mxu1 %vm6497_vm1, %v6496_v0 }
  0x5a   :  { %5850 = vmatmul.mubr.msk.f32.gmra.mrb[20].mxu0 %vm105_vm3, %v388_v35 }
  0x5b   :  { %5879 = vmatmul.mubr.msk.f32.gmra.mrb[20].mxu1 %vm105_vm3, %v548_v36  ;;  %5852 = vmatprep.mubr.msk.f32.mxu0 %vm6497_vm1, %v6496_v0 }
  0x5c   :  { %5881 = vmatprep.mubr.msk.f32.mxu1 %vm6497_vm1, %v6496_v0 }
  0x5e   :  { %5853 = vmatmul.mubr.msk.f32.gmra.mrb[22].mxu0 %vm105_vm3, %v389_v37  ;;  %v6902_v37 = vld [vmem:[%s8981_s4] ss:$0 sm:$0xff]  ;;  %s6499_s4 = smov 88  }
  0x5f   :  { %5882 = vmatmul.mubr.msk.f32.gmra.mrb[22].mxu1 %vm105_vm3, %v549_v38  ;;  %5855 = vmatprep.mubr.msk.f32.mxu0 %vm6497_vm1, %v6496_v0 }
  0x60   :  { %5884 = vmatprep.mubr.msk.f32.mxu1 %vm6497_vm1, %v6496_v0 }
  0x62   :  { %5856 = vmatmul.mubr.msk.f32.gmra.mrb[24].mxu0 %vm105_vm3, %v390_v39 }
  0x63   :  { %5885 = vmatmul.mubr.msk.f32.gmra.mrb[24].mxu1 %vm105_vm3, %v550_v40  ;;  %5858 = vmatprep.mubr.msk.f32.mxu0 %vm6497_vm1, %v6496_v0 }
  0x64   :  { %5887 = vmatprep.mubr.msk.f32.mxu1 %vm6497_vm1, %v6496_v0 }
  0x66   :  { %5859 = vmatmul.mubr.msk.f32.gmra.mrb[26].mxu0 %vm105_vm3, %v391_v41 }
  0x67   :  { %5888 = vmatmul.mubr.msk.f32.gmra.mrb[26].mxu1 %vm105_vm3, %v551_v42  ;;  %5861 = vmatprep.mubr.msk.f32.mxu0 %vm6497_vm1, %v6496_v0 }
  0x68   :  { %5890 = vmatprep.mubr.msk.f32.mxu1 %vm6497_vm1, %v6496_v0 }
  0x6a   :  { %5862 = vmatmul.mubr.msk.f32.gmra.mrb[28].mxu0 %vm105_vm3, %v392_v43 }
  0x6b   :  { %5891 = vmatmul.mubr.msk.f32.gmra.mrb[28].mxu1 %vm105_vm3, %v552_v44  ;;  %5864 = vmatprep.mubr.msk.f32.mxu0 %vm6497_vm1, %v6496_v0 }
  0x6c   :  { %5893 = vmatprep.mubr.msk.f32.mxu1 %vm6497_vm1, %v6496_v0 }
  0x6e   :  { %5865 = vmatmul.mubr.msk.f32.gmra.mrb[30].mxu0 %vm105_vm3, %v393_v45 }
  0x6f   :  { %5894 = vmatmul.mubr.msk.f32.gmra.mrb[30].mxu1 %vm105_vm3, %v553_v46  ;;  %5867 = vmatprep.mubr.msk.f32.mxu0 %vm6497_vm1, %v6496_v0 }
  0x70   :  { %5896 = vmatprep.mubr.msk.f32.mxu1 %vm6497_vm1, %v6496_v0 }
  0x72   :  { %5868 = vmatmul.mubr.msk.f32.gmra.mrb[32].mxu0 %vm105_vm3, %v394_v47 }
  0x73   :  { %5897 = vmatmul.mubr.msk.f32.gmra.mrb[32].mxu1 %vm105_vm3, %v554_v48  ;;  %5870 = vmatprep.mubr.msk.f32.mxu0 %vm6497_vm1, %v6496_v0 }
  0x74   :  { %5899 = vmatprep.mubr.msk.f32.mxu1 %vm6497_vm1, %v6496_v0 }
  0x76   :  { %5871 = vmatmul.mubr.msk.f32.gmra.mrb[34].mxu0 %vm105_vm3, %v395_v49 }
  0x77   :  { %5900 = vmatmul.mubr.msk.f32.gmra.mrb[34].mxu1 %vm105_vm3, %v555_v50  ;;  %1574 = vmatprep.mubr.f32.mxu0 %v6496_v0  ;;  %vm3231_vm3 = vcmask 1045504  }
  0xb4   :  { %v6904_v39 = vpop.permute.xlu0 %743 }
 0x105   :  { %v203_v51 = vpop.f32.mrb[0].mxu0 }
 0x106   :  { %v343_v52 = vpop.f32.mrb[0].mxu1  ;;  %v5790_v54 = vpop.f32.mrb[1].mxu0 }
 0x107   :  { %v344_v53 = vadd.f32 %v343_v52, %v203_v51  ;;  %v5819_v55 = vpop.f32.mrb[1].mxu1 }
 0x109   :  { %v208_v56 = vpop.f32.mrb[2].mxu0 }
 0x10a   :  { %v348_v57 = vpop.f32.mrb[2].mxu1  ;;  %v5793_v59 = vpop.f32.mrb[3].mxu0 }
 0x10b   :  { %v349_v58 = vadd.f32 %v348_v57, %v208_v56  ;;  %v5822_v60 = vpop.f32.mrb[3].mxu1  ;;  %v6914_v57 = vpop.permute.xlu0 %748 }
 0x10d   :  { %v213_v61 = vpop.f32.mrb[4].mxu0 }
 0x10e   :  { %v353_v62 = vpop.f32.mrb[4].mxu1  ;;  %v5796_v1 = vpop.f32.mrb[5].mxu0 }
 0x10f   :  { %v354_v63 = vadd.f32 %v353_v62, %v213_v61  ;;  %v5825_v2 = vpop.f32.mrb[5].mxu1 }
 0x111   :  { %v218_v3 = vpop.f32.mrb[6].mxu0 }
 0x112   :  { %v358_v4 = vpop.f32.mrb[6].mxu1  ;;  %v5799_v6 = vpop.f32.mrb[7].mxu0 }
 0x113   :  { %v359_v5 = vadd.f32 %v358_v4, %v218_v3  ;;  %v5828_v0 = vpop.f32.mrb[7].mxu1 }
 0x115   :  { %v223_v7 = vpop.f32.mrb[8].mxu0 }
 0x116   :  { %v363_v8 = vpop.f32.mrb[8].mxu1  ;;  %v5802_v10 = vpop.f32.mrb[9].mxu0 }
 0x117   :  { %v6889_v9 = vadd.f32 %v363_v8, %v223_v7  ;;  %v5831_v11 = vpop.f32.mrb[9].mxu1 }
 0x119   :  { %v228_v12 = vpop.f32.mrb[10].mxu0 }
 0x11a   :  { %v368_v13 = vpop.f32.mrb[10].mxu1  ;;  %v5805_v15 = vpop.f32.mrb[11].mxu0 }
 0x11b   :  { %v6891_v14 = vadd.f32 %v368_v13, %v228_v12  ;;  %v5834_v16 = vpop.f32.mrb[11].mxu1 }
 0x11d   :  { %v233_v17 = vpop.f32.mrb[12].mxu0 }
 0x11e   :  { %v373_v18 = vpop.f32.mrb[12].mxu1  ;;  %v5808_v20 = vpop.f32.mrb[13].mxu0 }
 0x11f   :  { %v6893_v19 = vadd.f32 %v373_v18, %v233_v17  ;;  %v5837_v21 = vpop.f32.mrb[13].mxu1 }
 0x121   :  { %v238_v22 = vpop.f32.mrb[14].mxu0 }
 0x122   :  { %v378_v23 = vpop.f32.mrb[14].mxu1  ;;  %v5811_v25 = vpop.f32.mrb[15].mxu0 }
 0x123   :  { %v6895_v24 = vadd.f32 %v378_v23, %v238_v22  ;;  %v5840_v26 = vpop.f32.mrb[15].mxu1 }
 0x125   :  { %v243_v27 = vpop.f32.mrb[16].mxu0 }
 0x126   :  { %v383_v28 = vpop.f32.mrb[16].mxu1  ;;  %v5814_v30 = vpop.f32.mrb[17].mxu0 }
 0x127   :  { %v6897_v29 = vadd.f32 %v383_v28, %v243_v27  ;;  %v5843_v31 = vpop.f32.mrb[17].mxu1 }
 0x129   :  { %v494_v32 = vpop.f32.mrb[18].mxu0 }
 0x12a   :  { %v654_v33 = vpop.f32.mrb[18].mxu1  ;;  %v538_v34 = vadd.f32 %v494_v32, %v344_v53  ;;  %v5848_v35 = vpop.f32.mrb[19].mxu0 }
 0x12b   :  { %v5877_v36 = vpop.f32.mrb[19].mxu1  ;;  %v6941_v35 = vpop.permute.xlu0 %763 }
 0x12c   :  { %v698_v38 = vadd.f32 %v654_v33, %v538_v34 }
 0x12d   :  { %v499_v40 = vpop.f32.mrb[20].mxu0 }
 0x12e   :  { %v659_v41 = vpop.f32.mrb[20].mxu1  ;;  %v714_v42 = vadd.f32 %v6902_v37, %v698_v38  ;;  %v539_v43 = vadd.f32 %v499_v40, %v349_v58  ;;  %v5851_v44 = vpop.f32.mrb[21].mxu0 }
 0x12f   :  { %v5880_v45 = vpop.f32.mrb[21].mxu1  ;;  %v6916_v58 = vpop.permute.xlu1 %753 }
 0x130   :  { %v6907_v46 = vmax.f32 %v714_v42, 0.0  ;;  %v699_v47 = vadd.f32 %v659_v41, %v539_v43 }
 0x131   :  { %v504_v48 = vpop.f32.mrb[22].mxu0 }
 0x132   :  { %v664_v49 = vpop.f32.mrb[22].mxu1  ;;  %v715_v50 = vadd.f32 %v6902_v37, %v699_v47  ;;  %v540_v51 = vadd.f32 %v504_v48, %v354_v63  ;;  %v5854_v52 = vpop.f32.mrb[23].mxu0  ;;  %v786_v54 = vmul.f32 %v6904_v39, %v6907_v46 }
 0x133   :  { %v5883_v53 = vpop.f32.mrb[23].mxu1  ;;  %v6935_v25 = vpop.permute.xlu1 %758 }
 0x134   :  { %v6912_v55 = vmax.f32 %v715_v50, 0.0  ;;  %v700_v56 = vadd.f32 %v664_v49, %v540_v51  ;;  %v796_v3 = vsel %vm795_vm4, %v786_v54, 0.0  ;;  %v821_v4 = vsel %vm820_vm5, %v786_v54, 0.0 }
 0x135   :  { %v509_v59 = vpop.f32.mrb[24].mxu0 }
 0x136   :  { %v669_v60 = vpop.f32.mrb[24].mxu1  ;;  %v716_v61 = vadd.f32 %v6902_v37, %v700_v56  ;;  %v787_v62 = vmul.f32 %v6914_v57, %v6912_v55  ;;  %v541_v63 = vadd.f32 %v509_v59, %v359_v5  ;;  %v5857_v1 = vpop.f32.mrb[25].mxu0 }
 0x137   :  { %v5886_v2 = vpop.f32.mrb[25].mxu1  ;;  %v6955_v54 = vpop.permute.xlu1 %768 }
 0x138   :  { %v6923_v6 = vmax.f32 %v716_v61, 0.0  ;;  %v797_v0 = vsel %vm795_vm4, %v787_v62, 0.0  ;;  %v822_v7 = vsel %vm820_vm5, %v787_v62, 0.0  ;;  %v701_v8 = vadd.f32 %v669_v60, %v541_v63 }
 0x139   :  { %v798_v10 = vadd.f32 %v797_v0, %v796_v3  ;;  %v823_v11 = vadd.f32 %v822_v7, %v821_v4  ;;  %v514_v12 = vpop.f32.mrb[26].mxu0  ;;  %v6961_v4 = vpop.permute.xlu0 %773 }
 0x13a   :  { %v674_v13 = vpop.f32.mrb[26].mxu1  ;;  %v717_v15 = vadd.f32 %v6902_v37, %v701_v8  ;;  %v788_v5 = vmul.f32 %v6916_v58, %v6923_v6  ;;  %v542_v16 = vadd.f32 %v514_v12, %v6889_v9  ;;  %v5860_v17 = vpop.f32.mrb[27].mxu0 }
 0x13b   :  { %v5889_v18 = vpop.f32.mrb[27].mxu1 }
 0x13c   :  { %v6931_v20 = vmax.f32 %v717_v15, 0.0  ;;  %v799_v21 = vsel %vm795_vm4, %v788_v5, 0.0  ;;  %v824_v22 = vsel %vm820_vm5, %v788_v5, 0.0  ;;  %v702_v23 = vadd.f32 %v674_v13, %v542_v16 }
 0x13d   :  { %v800_v26 = vadd.f32 %v799_v21, %v798_v10  ;;  %v825_v27 = vadd.f32 %v824_v22, %v823_v11  ;;  %v519_v28 = vpop.f32.mrb[28].mxu0 }
 0x13e   :  { %v679_v30 = vpop.f32.mrb[28].mxu1  ;;  %v718_v31 = vadd.f32 %v6902_v37, %v702_v23  ;;  %v789_v9 = vmul.f32 %v6935_v25, %v6931_v20  ;;  %v543_v32 = vadd.f32 %v519_v28, %v6891_v14  ;;  %v5863_v33 = vpop.f32.mrb[29].mxu0 }
 0x13f   :  { %v5892_v34 = vpop.f32.mrb[29].mxu1 }
 0x140   :  { %v6943_v36 = vmax.f32 %v718_v31, 0.0  ;;  %v801_v38 = vsel %vm795_vm4, %v789_v9, 0.0  ;;  %v826_v40 = vsel %vm820_vm5, %v789_v9, 0.0  ;;  %v703_v41 = vadd.f32 %v679_v30, %v543_v32  ;;  %v6975_v30 = vpop.permute.xlu1 %778  ;;  %v6982_v34 = vpop.permute.xlu0 %783 }
 0x141   :  { %v802_v42 = vadd.f32 %v801_v38, %v800_v26  ;;  %v827_v43 = vadd.f32 %v826_v40, %v825_v27  ;;  %v524_v44 = vpop.f32.mrb[30].mxu0 }
 0x142   :  { %v684_v45 = vpop.f32.mrb[30].mxu1  ;;  %v790_v47 = vmul.f32 %v6941_v35, %v6943_v36  ;;  %v719_v14 = vadd.f32 %v6902_v37, %v703_v41  ;;  %v544_v48 = vadd.f32 %v524_v44, %v6893_v19  ;;  %v5866_v49 = vpop.f32.mrb[31].mxu0 }
 0x143   :  { %v5895_v50 = vpop.f32.mrb[31].mxu1 }
 0x144   :  { %v803_v51 = vsel %vm795_vm4, %v790_v47, 0.0  ;;  %v828_v52 = vsel %vm820_vm5, %v790_v47, 0.0  ;;  %v6953_v53 = vmax.f32 %v719_v14, 0.0  ;;  %v704_v56 = vadd.f32 %v684_v45, %v544_v48 }
 0x145   :  { %v804_v59 = vadd.f32 %v803_v51, %v802_v42  ;;  %v829_v60 = vadd.f32 %v828_v52, %v827_v43  ;;  %v529_v61 = vpop.f32.mrb[32].mxu0 }
 0x146   :  { %v689_v62 = vpop.f32.mrb[32].mxu1  ;;  %v791_v63 = vmul.f32 %v6955_v54, %v6953_v53  ;;  %v720_v19 = vadd.f32 %v6902_v37, %v704_v56  ;;  %v545_v1 = vadd.f32 %v529_v61, %v6895_v24  ;;  %v5869_v2 = vpop.f32.mrb[33].mxu0 }
 0x147   :  { %v5898_v3 = vpop.f32.mrb[33].mxu1 }
 0x148   :  { %v805_v0 = vsel %vm795_vm4, %v791_v63, 0.0  ;;  %v830_v7 = vsel %vm820_vm5, %v791_v63, 0.0  ;;  %v6965_v8 = vmax.f32 %v720_v19, 0.0  ;;  %v705_v10 = vadd.f32 %v689_v62, %v545_v1 }
 0x149   :  { %v806_v11 = vadd.f32 %v805_v0, %v804_v59  ;;  %v831_v12 = vadd.f32 %v830_v7, %v829_v60  ;;  %v534_v13 = vpop.f32.mrb[34].mxu0 }
 0x14a   :  { %v694_v15 = vpop.f32.mrb[34].mxu1  ;;  %v792_v5 = vmul.f32 %v6961_v4, %v6965_v8  ;;  %v721_v24 = vadd.f32 %v6902_v37, %v705_v10  ;;  %v546_v16 = vadd.f32 %v534_v13, %v6897_v29  ;;  %v5872_v17 = vpop.f32.mrb[35].mxu0 }
 0x14b   :  { %v5901_v18 = vpop.f32.mrb[35].mxu1 }
 0x14c   :  { %v807_v21 = vsel %vm795_vm4, %v792_v5, 0.0  ;;  %v832_v22 = vsel %vm820_vm5, %v792_v5, 0.0  ;;  %v6973_v23 = vmax.f32 %v721_v24, 0.0  ;;  %v706_v26 = vadd.f32 %v694_v15, %v546_v16 }
 0x14d   :  { %v808_v27 = vadd.f32 %v807_v21, %v806_v11  ;;  %v833_v28 = vadd.f32 %v832_v22, %v831_v12 }
 0x14e   :  { %v793_v31 = vmul.f32 %v6975_v30, %v6973_v23  ;;  %v722_v9 = vadd.f32 %v6902_v37, %v706_v26 }
 0x150   :  { %v809_v29 = vsel %vm795_vm4, %v793_v31, 0.0  ;;  %v834_v32 = vsel %vm820_vm5, %v793_v31, 0.0  ;;  %v731_v33 = vmax.f32 %v722_v9, 0.0 }
 0x151   :  { %v810_v38 = vadd.f32 %v809_v29, %v808_v27  ;;  %v835_v40 = vadd.f32 %v834_v32, %v833_v28 }
 0x152   :  { %v794_v41 = vmul.f32 %v6982_v34, %v731_v33 }
 0x154   :  { %v811_v42 = vsel %vm795_vm4, %v794_v41, 0.0  ;;  %v836_v43 = vsel %vm820_vm5, %v794_v41, 0.0 }
 0x155   :  { %v812_v44 = vadd.f32 %v811_v42, %v810_v38  ;;  %v837_v45 = vadd.f32 %v836_v43, %v835_v40 }
 0x157   :  { %v813_v47 = vrot.slane %v812_v44, 4  ;;  %v838_v14 = vrot.slane %v837_v45, 4 }
 0x159   :  { %v814_v37 = vadd.f32 %v813_v47, %v812_v44  ;;  %v839_v48 = vadd.f32 %v838_v14, %v837_v45 }
 0x15b   :  { %v815_v49 = vrot.slane %v814_v37, 2  ;;  %v840_v50 = vrot.slane %v839_v48, 2 }
 0x15d   :  { %v816_v51 = vadd.f32 %v815_v49, %v814_v37  ;;  %v841_v52 = vadd.f32 %v840_v50, %v839_v48 }
 0x15f   :  { %v817_v56 = vrot.slane %v816_v51, 1  ;;  %v842_v59 = vrot.slane %v841_v52, 1 }
 0x161   :  { %v818_v60 = vadd.f32 %v817_v56, %v816_v51  ;;  %v843_v61 = vadd.f32 %v842_v59, %v841_v52 }
 0x163   :  { %v819_v62 = vmul.f32 0.02, %v818_v60  ;;  %v844_v63 = vmul.f32 0.02, %v843_v61 }
 0x165   :  { %v6987_v19 = vsub.f32 %v731_v33, %v819_v62  ;;  %v6990_v1 = vsub.f32 %v6912_v55, %v844_v63  ;;  %v854_v2 = vsub.f32 %v6907_v46, %v844_v63  ;;  %v6994_v3 = vsub.f32 %v6931_v20, %v844_v63 }
 0x166   :  { %v856_v0 = vsub.f32 %v6923_v6, %v844_v63  ;;  %v6998_v7 = vsub.f32 %v6953_v53, %v844_v63  ;;  %v7001_v10 = vsub.f32 %v6943_v36, %v844_v63  ;;  %v7004_v11 = vsub.f32 %v6973_v23, %v844_v63 }
 0x167   :  { %v873_v12 = vmul.f32 %v6990_v1, %v6914_v57  ;;  %v872_v13 = vmul.f32 %v854_v2, %v6904_v39  ;;  %v875_v15 = vmul.f32 %v6994_v3, %v6935_v25  ;;  %v860_v5 = vsub.f32 %v6965_v8, %v844_v63 }
 0x168   :  { %v874_v24 = vmul.f32 %v856_v0, %v6916_v58  ;;  %v876_v16 = vmul.f32 %v7001_v10, %v6941_v35  ;;  %v877_v28 = vmul.f32 %v6998_v7, %v6955_v54  ;;  %v862_v38 = vsub.f32 %v731_v33, %v844_v63 }
 0x169   :  { %960 = vrot.lane.b32.xlu0 %v873_v12, %s6499_s4  ;;  %v916_v17 = vmul.f32 %v873_v12, %v873_v12  ;;  %958 = vrot.lane.b32.xlu1 %v872_v13, %s6499_s4  ;;  %v915_v18 = vmul.f32 %v872_v13, %v872_v13  ;;  %v918_v27 = vmul.f32 %v875_v15, %v875_v15 }
 0x16a   :  { %v917_v21 = vmul.f32 %v874_v24, %v874_v24  ;;  %v919_v9 = vmul.f32 %v876_v16, %v876_v16  ;;  %v878_v32 = vmul.f32 %v860_v5, %v6961_v4  ;;  %v7026_v40 = vsub.f32 %v6912_v55, %v819_v62 }
 0x16b   :  { %v925_v22 = vsel %vm820_vm5, %v916_v17, 0.0  ;;  %v924_v26 = vsel %vm820_vm5, %v915_v18, 0.0  ;;  %v7029_v42 = vsub.f32 %v6907_v46, %v819_v62  ;;  %v7032_v43 = vsub.f32 %v6931_v20, %v819_v62 }
 0x16c   :  { %v926_v31 = vadd.f32 %v925_v22, %v924_v26  ;;  %v927_v29 = vsel %vm820_vm5, %v917_v21, 0.0  ;;  %v7035_v44 = vsub.f32 %v6923_v6, %v819_v62  ;;  %v929_v45 = vsel %vm820_vm5, %v918_v27, 0.0 }
 0x16d   :  { %964 = vrot.lane.b32.xlu0 %v875_v15, %s6499_s4  ;;  %962 = vrot.lane.b32.xlu1 %v874_v24, %s6499_s4  ;;  %v920_v47 = vmul.f32 %v877_v28, %v877_v28  ;;  %v879_v14 = vmul.f32 %v7004_v11, %v6975_v30  ;;  %v7041_v33 = vsub.f32 %v6953_v53, %v819_v62  ;;  %v931_v46 = vsel %vm820_vm5, %v919_v9, 0.0 }
 0x16e   :  { %v928_v41 = vadd.f32 %v927_v29, %v926_v31  ;;  %v921_v20 = vmul.f32 %v878_v32, %v878_v32  ;;  %v880_v6 = vmul.f32 %v862_v38, %v6982_v34  ;;  %v7049_v50 = vsub.f32 %v6943_v36, %v819_v62 }
 0x16f   :  { %v933_v48 = vsel %vm820_vm5, %v920_v47, 0.0  ;;  %v922_v49 = vmul.f32 %v879_v14, %v879_v14  ;;  %v7055_v56 = vsub.f32 %v6973_v23, %v819_v62  ;;  %v7058_v60 = vsub.f32 %v6965_v8, %v819_v62 }
 0x170   :  { %v930_v55 = vadd.f32 %v929_v45, %v928_v41  ;;  %v935_v53 = vsel %vm820_vm5, %v921_v20, 0.0  ;;  %v923_v52 = vmul.f32 %v880_v6, %v880_v6 }
 0x171   :  { %968 = vrot.lane.b32.xlu0 %v877_v28, %s6499_s4  ;;  %966 = vrot.lane.b32.xlu1 %v876_v16, %s6499_s4  ;;  %v937_v61 = vsel %vm820_vm5, %v922_v49, 0.0 }
 0x172   :  { %v932_v37 = vadd.f32 %v931_v46, %v930_v55  ;;  %v939_v36 = vsel %vm820_vm5, %v923_v52, 0.0  ;;  %vm5472_vm5 = vcmask 523264  }
 0x174   :  { %v934_v51 = vadd.f32 %v933_v48, %v932_v37 }
 0x175   :  { %972 = vrot.lane.b32.xlu0 %v879_v14, %s6499_s4  ;;  %970 = vrot.lane.b32.xlu1 %v878_v32, %s6499_s4 }
 0x176   :  { %v936_v59 = vadd.f32 %v935_v53, %v934_v51 }
 0x178   :  { %v938_v63 = vadd.f32 %v937_v61, %v936_v59 }
 0x179   :  { %974 = vrot.lane.b32.xlu1 %v880_v6, %s6499_s4 }
 0x17a   :  { %v940_v12 = vadd.f32 %v939_v36, %v938_v63 }
 0x17c   :  { %v941_v13 = vrot.slane %v940_v12, 4 }
 0x17d   :  { %1120 = vrot.lane.b32.xlu1 %v854_v2, %s6499_s4  ;;  %v864_v2 = vmul.f32 %v7026_v40, %v6914_v57 }
 0x17e   :  { %v942_v15 = vadd.f32 %v941_v13, %v940_v12 }
 0x180   :  { %v943_v24 = vrot.slane %v942_v15, 2 }
 0x181   :  { %1124 = vrot.lane.b32.xlu1 %v856_v0, %s6499_s4  ;;  %v863_v0 = vmul.f32 %v7029_v42, %v6904_v39  ;;  %v867_v39 = vmul.f32 %v7049_v50, %v6941_v35  ;;  %v870_v35 = vmul.f32 %v7055_v56, %v6975_v30 }
 0x182   :  { %v944_v23 = vadd.f32 %v943_v24, %v942_v15 }
 0x183   :  { %v885_v28 = vmul.f32 %v867_v39, %v867_v39  ;;  %v888_v47 = vmul.f32 %v870_v35, %v870_v35 }
 0x184   :  { %v945_v16 = vrot.slane %v944_v23, 1 }
 0x185   :  { %1128 = vrot.lane.b32.xlu1 %v7001_v10, %s6499_s4  ;;  %v882_v10 = vmul.f32 %v864_v2, %v864_v2  ;;  %v897_v29 = vsel %vm795_vm4, %v885_v28, 0.0  ;;  %v903_v46 = vsel %vm795_vm4, %v888_v47, 0.0 }
 0x186   :  { %v946_v8 = vadd.f32 %v945_v16, %v944_v23 }
 0x187   :  { %v891_v18 = vsel %vm795_vm4, %v882_v10, 0.0 }
 0x188   :  { %v947_v62 = vmul.f32 0.02, %v946_v8 }
 0x189   :  { %1132 = vrot.lane.b32.xlu1 %v860_v5, %s6499_s4  ;;  %v881_v5 = vmul.f32 %v863_v0, %v863_v0 }
 0x18a   :  { %v7068_v17 = vadd.f32 1e-05, %v947_v62 }
 0x18c   :  { %1019 = vrot.lane.b32.xlu0 %v7068_v17, %s6499_s4 }
 0x18d   :  { %1136 = vrot.lane.b32.xlu1 %v862_v38, %s6499_s4 }
 0x190   :  { %1122 = vrot.lane.b32.xlu0 %v6990_v1, %s6499_s4  ;;  %v865_v1 = vmul.f32 %v7035_v44, %v6916_v58  ;;  %v868_v58 = vmul.f32 %v7041_v33, %v6955_v54  ;;  %v871_v54 = vmul.f32 %v6987_v19, %v6982_v34 }
 0x192   :  { %v883_v21 = vmul.f32 %v865_v1, %v865_v1  ;;  %v886_v9 = vmul.f32 %v868_v58, %v868_v58  ;;  %v889_v20 = vmul.f32 %v871_v54, %v871_v54 }
 0x194   :  { %1126 = vrot.lane.b32.xlu0 %v6994_v3, %s6499_s4  ;;  %v890_v3 = vsel %vm795_vm4, %v881_v5, 0.0  ;;  %v893_v57 = vsel %vm795_vm4, %v883_v21, 0.0  ;;  %v899_v38 = vsel %vm795_vm4, %v886_v9, 0.0  ;;  %v905_v51 = vsel %vm795_vm4, %v889_v20, 0.0 }
 0x198   :  { %1130 = vrot.lane.b32.xlu0 %v6998_v7, %s6499_s4  ;;  %v866_v7 = vmul.f32 %v7032_v43, %v6935_v25  ;;  %v869_v25 = vmul.f32 %v7058_v60, %v6961_v4 }
 0x19a   :  { %v884_v22 = vmul.f32 %v866_v7, %v866_v7  ;;  %v887_v41 = vmul.f32 %v869_v25, %v869_v25 }
 0x19c   :  { %1134 = vrot.lane.b32.xlu0 %v7004_v11, %s6499_s4  ;;  %v892_v11 = vadd.f32 %v891_v18, %v890_v3  ;;  %v895_v27 = vsel %vm795_vm4, %v884_v22, 0.0  ;;  %v901_v14 = vsel %vm795_vm4, %v887_v41, 0.0 }
 0x19e   :  { %v894_v26 = vadd.f32 %v893_v57, %v892_v11 }
 0x1a0   :  { %v896_v31 = vadd.f32 %v895_v27, %v894_v26 }
 0x1a2   :  { %v898_v32 = vadd.f32 %v897_v29, %v896_v31 }
 0x1a4   :  { %v900_v45 = vadd.f32 %v899_v38, %v898_v32 }
 0x1a6   :  { %v902_v55 = vadd.f32 %v901_v14, %v900_v45 }
 0x1a8   :  { %v904_v6 = vadd.f32 %v903_v46, %v902_v55 }
 0x1aa   :  { %v906_v30 = vadd.f32 %v905_v51, %v904_v6 }
 0x1ac   :  { %v907_v12 = vrot.slane %v906_v30, 4 }
 0x1db   :  { %v961_v4 = vpop.permute.xlu0 %960  ;;  %v959_v37 = vpop.permute.xlu1 %958 }
 0x1dc   :  { %v986_v48 = vmul.f32 %v961_v4, %v864_v2  ;;  %v985_v49 = vmul.f32 %v959_v37, %v863_v0  ;;  %v908_v0 = vadd.f32 %v907_v12, %v906_v30 }
 0x1de   :  { %v995_v53 = vsel %vm795_vm4, %v986_v48, 0.0  ;;  %v994_v52 = vsel %vm795_vm4, %v985_v49, 0.0  ;;  %v909_v22 = vrot.slane %v908_v0, 2 }
 0x1df   :  { %v965_v59 = vpop.permute.xlu0 %964  ;;  %v963_v61 = vpop.permute.xlu1 %962  ;;  %v996_v36 = vadd.f32 %v995_v53, %v994_v52 }
 0x1e0   :  { %v988_v63 = vmul.f32 %v965_v59, %v866_v7  ;;  %v987_v34 = vmul.f32 %v963_v61, %v865_v1  ;;  %v910_v31 = vadd.f32 %v909_v22, %v908_v0 }
 0x1e2   :  { %v997_v13 = vsel %vm795_vm4, %v987_v34, 0.0  ;;  %v999_v16 = vsel %vm795_vm4, %v988_v63, 0.0  ;;  %v911_v38 = vrot.slane %v910_v31, 1 }
 0x1e3   :  { %v998_v15 = vadd.f32 %v997_v13, %v996_v36  ;;  %v969_v24 = vpop.permute.xlu0 %968  ;;  %v967_v23 = vpop.permute.xlu1 %966 }
 0x1e4   :  { %v990_v8 = vmul.f32 %v969_v24, %v868_v58  ;;  %v989_v62 = vmul.f32 %v967_v23, %v867_v39 }
 0x1e5   :  { %v1000_v2 = vadd.f32 %v999_v16, %v998_v15 }
 0x1e6   :  { %v1001_v10 = vsel %vm795_vm4, %v989_v62, 0.0  ;;  %v1003_v1 = vsel %vm795_vm4, %v990_v8, 0.0  ;;  %v1058_v62 = vlaneseq }
 0x1e7   :  { %v1002_v5 = vadd.f32 %v1001_v10, %v1000_v2  ;;  %v973_v18 = vpop.permute.xlu0 %972  ;;  %v971_v3 = vpop.permute.xlu1 %970 }
 0x1e8   :  { %v992_v7 = vmul.f32 %v973_v18, %v870_v35  ;;  %v991_v21 = vmul.f32 %v971_v3, %v869_v25  ;;  %v912_v35 = vadd.f32 %v911_v38, %v910_v31  ;;  %v7120_v0 = vshrl.u32 %v1058_v62, 7 }
 0x1e9   :  { %v1004_v11 = vadd.f32 %v1003_v1, %v1002_v5 }
 0x1ea   :  { %v1005_v57 = vsel %vm795_vm4, %v991_v21, 0.0  ;;  %v1007_v58 = vsel %vm795_vm4, %v992_v7, 0.0  ;;  %v913_v14 = vmul.f32 0.02, %v912_v35  ;;  %9020 = vst [vmem:[#allocation11_spill] sm:$0xff] %v7120_v0  ;;  %v7123_v18 = vsub.s32 0, %v7120_v0 }
 0x1eb   :  { %v1006_v26 = vadd.f32 %v1005_v57, %v1004_v11  ;;  %v975_v27 = vpop.permute.xlu1 %974 }
 0x1ec   :  { %v993_v39 = vmul.f32 %v975_v27, %v871_v54  ;;  %v914_v46 = vadd.f32 1e-05, %v913_v14  ;;  %9021 = vst [vmem:[#allocation12_spill] sm:$0xff] %v7123_v18 }
 0x1ed   :  { %v1008_v28 = vadd.f32 %v1007_v58, %v1006_v26 }
 0x1ee   :  { %v1009_v9 = vsel %vm795_vm4, %v993_v39, 0.0 }
 0x1ef   :  { %v1010_v29 = vadd.f32 %v1009_v9, %v1008_v28  ;;  %v1121_v34 = vpop.permute.xlu1 %1120 }
 0x1f1   :  { %v1011_v32 = vrot.slane %v1010_v29, 4 }
 0x1f3   :  { %v1012_v41 = vadd.f32 %v1011_v32, %v1010_v29  ;;  %v1125_v15 = vpop.permute.xlu1 %1124 }
 0x1f5   :  { %v1013_v45 = vrot.slane %v1012_v41, 2 }
 0x1f7   :  { %v1014_v25 = vadd.f32 %v1013_v45, %v1012_v41  ;;  %v1129_v2 = vpop.permute.xlu1 %1128 }
 0x1f9   :  { %v1015_v47 = vrot.slane %v1014_v25, 1 }
 0x1fb   :  { %v1016_v55 = vadd.f32 %v1015_v47, %v1014_v25  ;;  %v1133_v5 = vpop.permute.xlu1 %1132 }
 0x1fd   :  { %v1017_v20 = vmul.f32 0.02, %v1016_v55 }
 0x1fe   :  { %v1020_v6 = vpop.permute.xlu0 %1019 }
 0x1ff   :  { %v1022_v4 = vmul.f32 %v1020_v6, %v914_v46  ;;  %v1023_v37 = vmul.f32 %v1017_v20, %v1017_v20  ;;  %v1032_v52 = vadd.f32 %v1020_v6, %v914_v46  ;;  %v1056_v3 = vsub.f32 0.0, %v1017_v20  ;;  %v1137_v26 = vpop.permute.xlu1 %1136 }
 0x201   :  { %v1024_v54 = vsub.f32 %v1022_v4, %v1023_v37 }
 0x202   :  { %v1123_v8 = vpop.permute.xlu0 %1122 }
 0x203   :  { %6418 = vrsqrt.f32 %v1024_v54  ;;  %vm1027_vm6 = vcmp.eq.f32.partialorder %v1024_v54, inf  ;;  %v1030_v51 = vand.u32 2147483648, %v1024_v54  ;;  %vm1029_vm7 = vcmp.eq.f32.partialorder %v1024_v54, 0.0 }
 0x206   :  { %v1127_v10 = vpop.permute.xlu0 %1126 }
 0x20a   :  { %v1131_v11 = vpop.permute.xlu0 %1130 }
 0x20d   :  { %v6419_v48 = vpop.eup %6418 }
 0x20e   :  { %v1026_v49 = vmul.f32 %v6419_v48, %v1024_v54  ;;  %v1135_v41 = vpop.permute.xlu0 %1134 }
 0x210   :  { %v1028_v30 = vsel %vm1027_vm6, %v1024_v54, %v1026_v49  ;;  %vm5546_vm6 = vcmask 156672  }
 0x211   :  { %v1031_v53 = vsel %vm1029_vm7, %v1030_v51, %v1028_v30 }
 0x212   :  { %v1033_v59 = vmul.f32 2.0, %v1031_v53  ;;  %v1054_v61 = vadd.f32 %v1031_v53, %v914_v46  ;;  %1045 = vrot.lane.b32.xlu0 %v1031_v53, %s6500_s3 }
 0x214   :  { %v1034_v63 = vadd.f32 %v1033_v59, %v1032_v52 }
 0x216   :  { %6420 = vrsqrt.f32 %v1034_v63  ;;  %1071 = vrot.lane.b32.xlu0 %v7029_v42, %s6500_s3  ;;  %vm1037_vm8 = vcmp.eq.f32.partialorder %v1034_v63, inf  ;;  %v1040_v13 = vand.u32 2147483648, %v1034_v63  ;;  %vm1039_vm9 = vcmp.eq.f32.partialorder %v1034_v63, 0.0 }
 0x220   :  { %v6421_v36 = vpop.eup %6420 }
 0x221   :  { %v1036_v12 = vmul.f32 %v6421_v36, %v1034_v63 }
 0x223   :  { %v1038_v24 = vsel %vm1037_vm8, %v1034_v63, %v1036_v12 }
 0x224   :  { %v1041_v23 = vsel %vm1039_vm9, %v1040_v13, %v1038_v24 }
 0x225   :  { %v1042_v16 = vmul.f32 %v1041_v23, %v1031_v53 }
 0x227   :  { %6422 = vrcp.f32 %v1042_v16 }
 0x231   :  { %v6423_v1 = vpop.eup %6422 }
 0x232   :  { %v1055_v7 = vmul.f32 %v6423_v1, %v1054_v61  ;;  %v1057_v21 = vmul.f32 %v6423_v1, %v1056_v3  ;;  %1050 = vrot.lane.b32.xlu1 %v6423_v1, %s6500_s3 }
 0x234   :  { %v1110_v22 = vrot.slane %v1057_v21, %v7123_v18  ;;  %v1204_v57 = vrot.slane %v1055_v7, %v7123_v18 }
 0x236   :  { %v1213_v27 = vmul.f32 %v1204_v57, %v1137_v26  ;;  %v1222_v58 = vmul.f32 %v1110_v22, %v6987_v19  ;;  %1073 = vrot.lane.b32.xlu1 %v7026_v40, %s6500_s3  ;;  %v1206_v39 = vmul.f32 %v1204_v57, %v1123_v8  ;;  %v1215_v28 = vmul.f32 %v1110_v22, %v7026_v40 }
 0x237   :  { %v1208_v31 = vmul.f32 %v1204_v57, %v1127_v10  ;;  %v1148_v29 = vmul.f32 %v1123_v8, %v1110_v22  ;;  %v1217_v32 = vmul.f32 %v1110_v22, %v7032_v43  ;;  %v1210_v38 = vmul.f32 %v1204_v57, %v1131_v11 }
 0x238   :  { %v7132_v9 = vadd.f32 %v1222_v58, %v1213_v27  ;;  %v7135_v45 = vadd.f32 %v1215_v28, %v1206_v39  ;;  %v1219_v35 = vmul.f32 %v1110_v22, %v7041_v33  ;;  %v1212_v25 = vmul.f32 %v1204_v57, %v1135_v41 }
 0x239   :  { %v7138_v47 = vadd.f32 %v1217_v32, %v1208_v31  ;;  %v1221_v14 = vmul.f32 %v1110_v22, %v7055_v56  ;;  %v1147_v55 = vmul.f32 %v1121_v34, %v1110_v22  ;;  %v1214_v46 = vmul.f32 %v1110_v22, %v7029_v42 }
 0x23a   :  { %1167 = vrot.lane.b32.xlu1 %v1148_v29, %s6500_s3  ;;  %v7142_v40 = vadd.f32 %v1219_v35, %v1210_v38  ;;  %v1149_v6 = vmul.f32 %v1125_v15, %v1110_v22  ;;  %v1205_v4 = vmul.f32 %v1204_v57, %v1121_v34  ;;  %v1216_v37 = vmul.f32 %v1110_v22, %v7035_v44 }
 0x23b   :  { %v7145_v20 = vadd.f32 %v1221_v14, %v1212_v25  ;;  %1165 = vrot.lane.b32.xlu0 %v1147_v55, %s6500_s3  ;;  %v1207_v54 = vmul.f32 %v1204_v57, %v1125_v15  ;;  %v1218_v49 = vmul.f32 %v1110_v22, %v7049_v50  ;;  %v1209_v51 = vmul.f32 %v1204_v57, %v1129_v2 }
 0x23c   :  { %v7150_v48 = vadd.f32 %v1214_v46, %v1205_v4  ;;  %v1220_v42 = vmul.f32 %v1110_v22, %v7058_v60  ;;  %v1211_v53 = vmul.f32 %v1204_v57, %v1133_v5  ;;  %v1150_v52 = vmul.f32 %v1127_v10, %v1110_v22 }
 0x23d   :  { %v7153_v30 = vadd.f32 %v1216_v37, %v1207_v54  ;;  %v7158_v59 = vadd.f32 %v1218_v49, %v1209_v51  ;;  %v1151_v63 = vmul.f32 %v1129_v2, %v1110_v22  ;;  %v1152_v34 = vmul.f32 %v1131_v11, %v1110_v22  ;;  %v1464_v37 = vld [vmem:[#allocation5 + $0xa8] sm:$0xff]  ;;  %v1466_v54 = vld [vmem:[#allocation5 + $0xb8] sm:$0xff]  ;;  %v1463_v51 = vld [vmem:[#allocation5 + $0xa0] sm:$0xff] }
 0x23e   :  { %1169 = vrot.lane.b32.xlu1 %v1149_v6, %s6500_s3  ;;  %v7160_v61 = vadd.f32 %v1220_v42, %v1211_v53  ;;  %v1154_v36 = vmul.f32 %v1135_v41, %v1110_v22  ;;  %v5902_v49 = vpack.c.bf16 %v1466_v54, %v1464_v37  ;;  %v1465_v42 = vld [vmem:[#allocation5 + $0xb0] sm:$0xff]  ;;  %v1468_v53 = vld [vmem:[#allocation5 + $0xc8] sm:$0xff] }
 0x23f   :  { %1075 = vrot.lane.b32.xlu0 %v7035_v44, %s6500_s3  ;;  %v1153_v44 = vmul.f32 %v1133_v5, %v1110_v22 }
 0x240   :  { %5903 = vmatprep.subr.bf16.mxu0 %v5902_v49 }
 0x242   :  { %1171 = vrot.lane.b32.xlu1 %v1150_v52, %s6500_s3  ;;  %v5904_v52 = vpack.c.bf16 %v1465_v42, %v1463_v51 }
 0x243   :  { %1077 = vrot.lane.b32.xlu0 %v7032_v43, %s6500_s3  ;;  %v1155_v43 = vmul.f32 %v1137_v26, %v1110_v22 }
 0x244   :  { %5905 = vmatpush1.bf16.msra.mxu0 %v5904_v52 }
 0x246   :  { %1173 = vrot.lane.b32.xlu1 %v1151_v63, %s6500_s3  ;;  %v1470_v63 = vld [vmem:[#allocation5 + $0xd8] sm:$0xff] }
 0x247   :  { %1079 = vrot.lane.b32.xlu0 %v7049_v50, %s6500_s3 }
 0x24a   :  { %1175 = vrot.lane.b32.xlu1 %v1152_v34, %s6500_s3  ;;  %v1467_v34 = vld [vmem:[#allocation5 + $0xc0] sm:$0xff] }
 0x24b   :  { %1081 = vrot.lane.b32.xlu0 %v7041_v33, %s6500_s3 }
 0x24e   :  { %1177 = vrot.lane.b32.xlu1 %v1153_v44, %s6500_s3  ;;  %v1469_v44 = vld [vmem:[#allocation5 + $0xd0] sm:$0xff] }
 0x24f   :  { %1083 = vrot.lane.b32.xlu0 %v7058_v60, %s6500_s3 }
 0x252   :  { %1179 = vrot.lane.b32.xlu1 %v1154_v36, %s6500_s3  ;;  %v5906_v36 = vpack.c.bf16 %v1470_v63, %v1468_v53 }
 0x253   :  { %1085 = vrot.lane.b32.xlu0 %v7055_v56, %s6500_s3 }
 0x254   :  { %5907 = vmatprep.subr.bf16.mxu0 %v5906_v36 }
 0x256   :  { %1181 = vrot.lane.b32.xlu1 %v1155_v43, %s6500_s3  ;;  %v1472_v43 = vld [vmem:[#allocation5 + $0xe8] sm:$0xff] }
 0x257   :  { %1087 = vrot.lane.b32.xlu0 %v6987_v19, %s6500_s3 }
 0x284   :  { %v1046_v50 = vpop.permute.xlu0 %1045 }
 0x285   :  { %v1048_v33 = vadd.f32 %v1046_v50, %v7068_v17  ;;  %v1474_v50 = vld [vmem:[#allocation5 + $0xf8] sm:$0xff] }
 0x288   :  { %v1072_v60 = vpop.permute.xlu0 %1071 }
 0x2a4   :  { %v1051_v12 = vpop.permute.xlu1 %1050 }
 0x2a5   :  { %v1053_v13 = vmul.f32 %v1051_v12, %v1048_v33  ;;  %v5908_v33 = vpack.c.bf16 %v1469_v44, %v1467_v34  ;;  %v5910_v12 = vpack.c.bf16 %v1474_v50, %v1472_v43 }
 0x2a7   :  { %v1061_v15 = vrot.slane %v1053_v13, %v7123_v18  ;;  %v1471_v13 = vld [vmem:[#allocation5 + $0xe0] sm:$0xff]  ;;  %5909 = vmatpush1.bf16.msra.mxu0 %v5908_v33 }
 0x2a8   :  { %v1074_v24 = vpop.permute.xlu1 %1073  ;;  %5911 = vmatprep.subr.bf16.mxu0 %v5910_v12 }
 0x2a9   :  { %v1099_v23 = vmul.f32 %v1074_v24, %v1061_v15  ;;  %v1098_v16 = vmul.f32 %v1072_v60, %v1061_v15  ;;  %v1476_v24 = vld [vmem:[#allocation5 + $0x108] sm:$0xff]  ;;  %v1478_v60 = vld [vmem:[#allocation5 + $0x118] sm:$0xff] }
 0x2ac   :  { %v1168_v8 = vpop.permute.xlu1 %1167 }
 0x2ad   :  { %v1193_v62 = vadd.f32 %v1168_v8, %v1099_v23  ;;  %v1166_v2 = vpop.permute.xlu0 %1165  ;;  %v1475_v8 = vld [vmem:[#allocation5 + $0x100] sm:$0xff] }
 0x2ae   :  { %v1192_v56 = vadd.f32 %v1166_v2, %v1098_v16  ;;  %v5914_v16 = vpack.c.bf16 %v1478_v60, %v1476_v24 }
 0x2af   :  { %1252 = vrot.lane.b32.xlu1 %v1193_v62, %s6499_s4  ;;  %v1477_v62 = vld [vmem:[#allocation5 + $0x110] sm:$0xff] }
 0x2b0   :  { %v1170_v10 = vpop.permute.xlu1 %1169  ;;  %1250 = vrot.lane.b32.xlu0 %v1192_v56, %s6499_s4  ;;  %v5916_v2 = vpack.c.bf16 %v1477_v62, %v1475_v8  ;;  %v1480_v56 = vld [vmem:[#allocation5 + $0x128] sm:$0xff] }
 0x2b1   :  { %v1076_v19 = vpop.permute.xlu0 %1075 }
 0x2b2   :  { %v1100_v5 = vmul.f32 %v1076_v19, %v1061_v15  ;;  %v1479_v19 = vld [vmem:[#allocation5 + $0x120] sm:$0xff] }
 0x2b4   :  { %v1172_v17 = vpop.permute.xlu1 %1171  ;;  %v1194_v3 = vadd.f32 %v1170_v10, %v1100_v5  ;;  %v1482_v10 = vld [vmem:[#allocation5 + $0x138] sm:$0xff]  ;;  %v5601_v5 = vld [vmem:[%s8982_s5 + $0x1] ss:$0 sm:$0xff] }
 0x2b5   :  { %v1078_v1 = vpop.permute.xlu0 %1077  ;;  %v1338_v42 = vmul.f32 %v5601_v5, %v7158_v59  ;;  %v1339_v44 = vmul.f32 %v5601_v5, %v7142_v40  ;;  %v1340_v12 = vmul.f32 %v5601_v5, %v7160_v61 }
 0x2b6   :  { %v1101_v7 = vmul.f32 %v1078_v1, %v1061_v15  ;;  %1254 = vrot.lane.b32.xlu0 %v1194_v3, %s6499_s4  ;;  %v1481_v3 = vld [vmem:[#allocation5 + $0x130] sm:$0xff] }
 0x2b7   :  { %v5920_v1 = vpack.c.bf16 %v1481_v3, %v1479_v19 }
 0x2b8   :  { %v1174_v21 = vpop.permute.xlu1 %1173  ;;  %v1195_v11 = vadd.f32 %v1172_v17, %v1101_v7  ;;  %v5918_v17 = vpack.c.bf16 %v1482_v10, %v1480_v56  ;;  %v7197_v7 = vld [vmem:[%s8982_s5 + $0x2] ss:$0 sm:$0xff]  ;;  %v1342_v56 = vmul.f32 %v5601_v5, %v7132_v9 }
 0x2b9   :  { %v1080_v22 = vpop.permute.xlu0 %1079 }
 0x2ba   :  { %v1102_v57 = vmul.f32 %v1080_v22, %v1061_v15  ;;  %1256 = vrot.lane.b32.xlu1 %v1195_v11, %s6499_s4  ;;  %v1335_v22 = vmul.f32 %v5601_v5, %v7135_v45 }
 0x2bc   :  { %v1176_v26 = vpop.permute.xlu1 %1175  ;;  %v1196_v27 = vadd.f32 %v1174_v21, %v1102_v57 }
 0x2bd   :  { %v1082_v58 = vpop.permute.xlu0 %1081 }
 0x2be   :  { %v1103_v39 = vmul.f32 %v1082_v58, %v1061_v15  ;;  %1258 = vrot.lane.b32.xlu0 %v1196_v27, %s6499_s4  ;;  %v1334_v27 = vmul.f32 %v5601_v5, %v7150_v48 }
 0x2c0   :  { %v1178_v28 = vpop.permute.xlu1 %1177  ;;  %v1197_v31 = vadd.f32 %v1176_v26, %v1103_v39  ;;  %v5602_v39 = vld [vmem:[%s8983_s6 + $0x1] ss:$0 sm:$0xff] }
 0x2c1   :  { %v1084_v29 = vpop.permute.xlu0 %1083 }
 0x2c2   :  { %v1104_v32 = vmul.f32 %v1084_v29, %v1061_v15  ;;  %1260 = vrot.lane.b32.xlu1 %v1197_v31, %s6499_s4 }
 0x2c4   :  { %v1180_v38 = vpop.permute.xlu1 %1179  ;;  %v1198_v41 = vadd.f32 %v1178_v28, %v1104_v32  ;;  %v1434_v32 = vld [vmem:[#allocation5 + $0x8] sm:$0xff] }
 0x2c5   :  { %v1086_v35 = vpop.permute.xlu0 %1085 }
 0x2c6   :  { %v1105_v25 = vmul.f32 %v1086_v35, %v1061_v15  ;;  %1262 = vrot.lane.b32.xlu0 %v1198_v41, %s6499_s4 }
 0x2c8   :  { %v1199_v14 = vadd.f32 %v1180_v38, %v1105_v25  ;;  %v1182_v46 = vpop.permute.xlu1 %1181  ;;  %v1436_v38 = vld [vmem:[#allocation5 + $0x18] sm:$0xff] }
 0x2c9   :  { %v1088_v55 = vpop.permute.xlu0 %1087  ;;  %v5922_v35 = vpack.c.bf16 %v1436_v38, %v1434_v32  ;;  %v1291_v32 = vmul.f32 %v7197_v7, %v7135_v45  ;;  %v1290_v38 = vmul.f32 %v7197_v7, %v7150_v48 }
 0x2ca   :  { %v1106_v6 = vmul.f32 %v1088_v55, %v1061_v15  ;;  %1264 = vrot.lane.b32.xlu1 %v1199_v14, %s6499_s4  ;;  %v1473_v15 = vld [vmem:[#allocation5 + $0xf0] sm:$0xff]  ;;  %v1336_v14 = vmul.f32 %v5601_v5, %v7153_v30 }
 0x2cb   :  { %v5912_v23 = vpack.c.bf16 %v1473_v15, %v1471_v13 }
 0x2cc   :  { %v1200_v4 = vadd.f32 %v1182_v46, %v1106_v6 }
 0x2cd   :  { %5913 = vmatpush1.bf16.msra.mxu0 %v5912_v23  ;;  %v1341_v23 = vmul.f32 %v5601_v5, %v7145_v20 }
 0x2ce   :  { %1266 = vrot.lane.b32.xlu0 %v1200_v4, %s6499_s4  ;;  %5915 = vmatprep.subr.bf16.mxu0 %v5914_v16  ;;  %v1337_v4 = vmul.f32 %v5601_v5, %v7138_v47  ;;  %v2212_v5 = vld [vmem:[%s8979_s2 + $0x8] sm:$0xff] }
 0x2d1   :  { %5917 = vmatpush1.bf16.msra.mxu0 %v5916_v2 }
 0x2d2   :  { %5919 = vmatprep.subr.bf16.mxu0 %v5918_v17  ;;  %v2211_v17 = vld [vmem:[%s8979_s2] sm:$0xff] }
 0x2d5   :  { %5921 = vmatpush1.bf16.msra.mxu0 %v5920_v1  ;;  %v2213_v1 = vld [vmem:[%s8979_s2 + $0x10] sm:$0xff] }
 0x2d6   :  { %5923 = vmatprep.subr.bf16.mxu0 %v5922_v35 }
 0x321   :  { %v7199_v21 = vpop.permute.xlu1 %1252 }
 0x322   :  { %v1322_v11 = vmul.f32 %v7197_v7, %v7199_v21  ;;  %v7204_v57 = vpop.permute.xlu0 %1250 }
 0x323   :  { %v1321_v26 = vmul.f32 %v7197_v7, %v7204_v57 }
 0x324   :  { %v1344_v58 = vadd.f32 %v1335_v22, %v1322_v11  ;;  %v2215_v11 = vld [vmem:[%s8979_s2 + $0x20] sm:$0xff]  ;;  %v2214_v22 = vld [vmem:[%s8979_s2 + $0x18] sm:$0xff] }
 0x325   :  { %v1343_v28 = vadd.f32 %v1334_v27, %v1321_v26  ;;  %v2217_v26 = vld [vmem:[%s8979_s2 + $0x30] sm:$0xff]  ;;  %v2216_v27 = vld [vmem:[%s8979_s2 + $0x28] sm:$0xff] }
 0x326   :  { %v1357_v31 = vadd.f32 %v5602_v39, %v1344_v58  ;;  %v2219_v58 = vld [vmem:[%s8979_s2 + $0x40] sm:$0xff] }
 0x327   :  { %v1356_v29 = vadd.f32 %v5602_v39, %v1343_v28  ;;  %v7286_v28 = vld [vmem:[%s8982_s5] ss:$0 sm:$0xff] }
 0x328   :  { %1376 = vrot.lane.b32.xlu0 %v1357_v31, %s6500_s3  ;;  %v7213_v41 = vpop.permute.xlu0 %1254  ;;  %v1278_v31 = vmul.f32 %v7286_v28, %v7199_v21 }
 0x329   :  { %v1323_v25 = vmul.f32 %v7197_v7, %v7213_v41  ;;  %1374 = vrot.lane.b32.xlu1 %v1356_v29, %s6500_s3  ;;  %v1277_v29 = vmul.f32 %v7286_v28, %v7204_v57  ;;  %v1292_v57 = vmul.f32 %v7197_v7, %v7153_v30  ;;  %v1435_v30 = vld [vmem:[#allocation5 + $0x10] sm:$0xff] }
 0x32a   :  { %v1300_v35 = vadd.f32 %v1291_v32, %v1278_v31 }
 0x32b   :  { %v1345_v55 = vadd.f32 %v1336_v14, %v1323_v25  ;;  %v1299_v25 = vadd.f32 %v1290_v38, %v1277_v29  ;;  %v7299_v14 = vld [vmem:[%s8983_s6] ss:$0 sm:$0xff]  ;;  %v1447_v38 = vld [vmem:[#allocation5 + $0x70] sm:$0xff] }
 0x32c   :  { %v7219_v46 = vpop.permute.xlu1 %1256  ;;  %v1313_v21 = vadd.f32 %v7299_v14, %v1300_v35 }
 0x32d   :  { %v1324_v6 = vmul.f32 %v7197_v7, %v7219_v46  ;;  %v1358_v37 = vadd.f32 %v5602_v39, %v1345_v55  ;;  %v1279_v55 = vmul.f32 %v7286_v28, %v7213_v41  ;;  %v1312_v45 = vadd.f32 %v7299_v14, %v1299_v25 }
 0x32e   :  { %v1293_v41 = vmul.f32 %v7197_v7, %v7138_v47 }
 0x32f   :  { %v1346_v54 = vadd.f32 %v1337_v4, %v1324_v6  ;;  %1378 = vrot.lane.b32.xlu1 %v1358_v37, %s6500_s3  ;;  %v1301_v37 = vadd.f32 %v1292_v57, %v1279_v55  ;;  %v1297_v57 = vmul.f32 %v7197_v7, %v7145_v20  ;;  %v1786_v20 = vld [vmem:[#allocation5 + $0x148] sm:$0xff] }
 0x330   :  { %v7225_v49 = vpop.permute.xlu0 %1258 }
 0x331   :  { %v1325_v51 = vmul.f32 %v7197_v7, %v7225_v49  ;;  %v1359_v53 = vadd.f32 %v5602_v39, %v1346_v54  ;;  %v1280_v54 = vmul.f32 %v7286_v28, %v7219_v46  ;;  %v1294_v46 = vmul.f32 %v7197_v7, %v7158_v59 }
 0x332   :  { %v1295_v59 = vmul.f32 %v7197_v7, %v7142_v40 }
 0x333   :  { %v1347_v52 = vadd.f32 %v1338_v42, %v1325_v51  ;;  %1380 = vrot.lane.b32.xlu0 %v1359_v53, %s6500_s3  ;;  %v1433_v42 = vld [vmem:[#allocation5] sm:$0xff]  ;;  %v1302_v53 = vadd.f32 %v1293_v41, %v1280_v54  ;;  %v1451_v54 = vld [vmem:[#allocation5 + $0x90] sm:$0xff] }
 0x334   :  { %v7231_v63 = vpop.permute.xlu1 %1260 }
 0x335   :  { %v1326_v34 = vmul.f32 %v7197_v7, %v7231_v63  ;;  %v1360_v36 = vadd.f32 %v5602_v39, %v1347_v52  ;;  %v1281_v52 = vmul.f32 %v7286_v28, %v7225_v49  ;;  %v1282_v49 = vmul.f32 %v7286_v28, %v7231_v63 }
 0x337   :  { %v1348_v43 = vadd.f32 %v1339_v44, %v1326_v34  ;;  %1382 = vrot.lane.b32.xlu1 %v1360_v36, %s6500_s3  ;;  %v1314_v34 = vadd.f32 %v7299_v14, %v1301_v37  ;;  %v1438_v44 = vld [vmem:[#allocation5 + $0x28] sm:$0xff]  ;;  %v1440_v36 = vld [vmem:[#allocation5 + $0x38] sm:$0xff]  ;;  %v1449_v37 = vld [vmem:[#allocation5 + $0x80] sm:$0xff] }
 0x338   :  { %v7237_v50 = vpop.permute.xlu0 %1262  ;;  %v5926_v47 = vpack.c.bf16 %v1440_v36, %v1438_v44  ;;  %v5940_v36 = vpack.c.bf16 %v1451_v54, %v1449_v37 }
 0x339   :  { %v1327_v33 = vmul.f32 %v7197_v7, %v7237_v50  ;;  %v1361_v13 = vadd.f32 %v5602_v39, %v1348_v43 }
 0x33b   :  { %v1349_v15 = vadd.f32 %v1340_v12, %v1327_v33  ;;  %1384 = vrot.lane.b32.xlu0 %v1361_v13, %s6500_s3  ;;  %v5924_v12 = vpack.c.bf16 %v1435_v30, %v1433_v42  ;;  %v1437_v13 = vld [vmem:[#allocation5 + $0x20] sm:$0xff]  ;;  %v1788_v30 = vld [vmem:[#allocation5 + $0x158] sm:$0xff] }
 0x33c   :  { %v7243_v24 = vpop.permute.xlu1 %1264 }
 0x33d   :  { %v1328_v60 = vmul.f32 %v7197_v7, %v7243_v24  ;;  %v1362_v16 = vadd.f32 %v5602_v39, %v1349_v15  ;;  %v1439_v15 = vld [vmem:[#allocation5 + $0x30] sm:$0xff]  ;;  %v1284_v25 = vmul.f32 %v7286_v28, %v7243_v24 }
 0x33f   :  { %v1350_v8 = vadd.f32 %v1341_v23, %v1328_v60  ;;  %1386 = vrot.lane.b32.xlu1 %v1362_v16, %s6500_s3  ;;  %v1303_v60 = vadd.f32 %v1294_v46, %v1281_v52  ;;  %v1315_v23 = vadd.f32 %v7299_v14, %v1302_v53  ;;  %v1298_v52 = vmul.f32 %v7197_v7, %v7132_v9 }
 0x340   :  { %v7249_v62 = vpop.permute.xlu0 %1266 }
 0x341   :  { %v1329_v2 = vmul.f32 %v7197_v7, %v7249_v62  ;;  %v1363_v10 = vadd.f32 %v5602_v39, %v1350_v8  ;;  %v1442_v8 = vld [vmem:[#allocation5 + $0x48] sm:$0xff]  ;;  %v1316_v40 = vadd.f32 %v7299_v14, %v1303_v60  ;;  %v1285_v41 = vmul.f32 %v7286_v28, %v7249_v62 }
 0x342   :  { %v5942_v62 = vpack.c.bf16 %v1788_v30, %v1786_v20  ;;  %v1984_v20 = vld [vmem:[#allocation5 + $0x208] sm:$0xff]  ;;  %v1986_v30 = vld [vmem:[#allocation5 + $0x218] sm:$0xff] }
 0x343   :  { %v1351_v19 = vadd.f32 %v1342_v56, %v1329_v2  ;;  %1388 = vrot.lane.b32.xlu0 %v1363_v10, %s6500_s3  ;;  %v1444_v2 = vld [vmem:[#allocation5 + $0x58] sm:$0xff] }
 0x344   :  { %v5930_v63 = vpack.c.bf16 %v1444_v2, %v1442_v8  ;;  %v1792_v8 = vld [vmem:[#allocation5 + $0x178] sm:$0xff] }
 0x345   :  { %v1364_v3 = vadd.f32 %v5602_v39, %v1351_v19  ;;  %v2218_v39 = vld [vmem:[%s8979_s2 + $0x38] sm:$0xff] }
 0x346   :  { %v7329_v19 = vld [vmem:[#allocation3 + $0x90] sm:$0xff] }
 0x347   :  { %2222 = vperm.xlu0 %6416, %v2211_v17   ;;  %1390 = vrot.lane.b32.xlu1 %v1364_v3, %s6500_s3  ;;  %v5928_v17 = vpack.c.bf16 %v1439_v15, %v1437_v13  ;;  %v1441_v3 = vld [vmem:[#allocation5 + $0x40] sm:$0xff]  ;;  %3131 = vst.msk [vmem:[#allocation3 + $0x98] sm:$0xff] %vm2332_vm10, %v7329_v19  ;;  %3133 = vst.msk [vmem:[#allocation3 + $0xa8] sm:$0xff] %vm2332_vm10, %v7329_v19 }
 0x348   :  { %3135 = vst.msk [vmem:[#allocation3 + $0xb8] sm:$0xff] %vm2332_vm10, %v7329_v19  ;;  %3137 = vst.msk [vmem:[#allocation3 + $0xc8] sm:$0xff] %vm2332_vm10, %v7329_v19 }
 0x34b   :  { %2232 = vperm.xlu0 %6416, %v2213_v1   ;;  %2227 = vperm.xlu1 %6417, %v2212_v5   ;;  %v1443_v1 = vld [vmem:[#allocation5 + $0x50] sm:$0xff]  ;;  %v1304_v5 = vadd.f32 %v1295_v59, %v1282_v49  ;;  %v1789_v59 = vld [vmem:[#allocation5 + $0x160] sm:$0xff] }
 0x34c   :  { %v5932_v29 = vpack.c.bf16 %v1443_v1, %v1441_v3  ;;  %v1787_v49 = vld [vmem:[#allocation5 + $0x150] sm:$0xff]  ;;  %v1796_v3 = vld [vmem:[#allocation5 + $0x198] sm:$0xff] }
 0x34d   :  { %v1317_v55 = vadd.f32 %v7299_v14, %v1304_v5 }
 0x34f   :  { %2242 = vperm.xlu0 %6416, %v2215_v11   ;;  %2237 = vperm.xlu1 %6417, %v2214_v22   ;;  %v1283_v11 = vmul.f32 %v7286_v28, %v7237_v50  ;;  %v1446_v22 = vld [vmem:[#allocation5 + $0x68] sm:$0xff]  ;;  %v1445_v50 = vld [vmem:[#allocation5 + $0x60] sm:$0xff]  ;;  %v1307_v28 = vadd.f32 %v1298_v52, %v1285_v41  ;;  %v1981_v41 = vld [vmem:[#allocation5 + $0x1f0] sm:$0xff]  ;;  %v5966_v52 = vpack.c.bf16 %v1986_v30, %v1984_v20 }
 0x353   :  { %2252 = vperm.xlu0 %6416, %v2217_v26   ;;  %2247 = vperm.xlu1 %6417, %v2216_v27   ;;  %v1448_v26 = vld [vmem:[#allocation5 + $0x78] sm:$0xff] }
 0x354   :  { %v5934_v32 = vpack.c.bf16 %v1448_v26, %v1446_v22  ;;  %v1798_v26 = vld [vmem:[#allocation5 + $0x1a8] sm:$0xff] }
 0x357   :  { %2262 = vperm.xlu0 %6416, %v2219_v58   ;;  %2257 = vperm.xlu1 %6417, %v2218_v39   ;;  %v1296_v58 = vmul.f32 %v7197_v7, %v7160_v61  ;;  %v1450_v61 = vld [vmem:[#allocation5 + $0x88] sm:$0xff]  ;;  %v1320_v7 = vadd.f32 %v7299_v14, %v1307_v28  ;;  %v1990_v28 = vld [vmem:[#allocation5 + $0x238] sm:$0xff] }
 0x359   :  { %v1305_v35 = vadd.f32 %v1296_v58, %v1283_v11  ;;  %v1793_v11 = vld [vmem:[#allocation5 + $0x180] sm:$0xff] }
 0x35b   :  { %v1318_v42 = vadd.f32 %v7299_v14, %v1305_v35 }
 0x39a   :  { %v1377_v6 = vpop.permute.xlu0 %1376 }
 0x39b   :  { %v1402_v48 = vsel %vm795_vm4, %v1313_v21, %v1377_v6  ;;  %v1375_v4 = vpop.permute.xlu1 %1374  ;;  %v1452_v21 = vld [vmem:[#allocation5 + $0x98] sm:$0xff] }
 0x39c   :  { %1412 = vst.msk [vmem:[#allocation2 + $0x8] sm:$0xff] %vm1410_vm0, %v1402_v48  ;;  %v1401_v51 = vsel %vm795_vm4, %v1312_v45, %v1375_v4  ;;  %v5936_v4 = vpack.c.bf16 %v1447_v38, %v1445_v50  ;;  %v5938_v24 = vpack.c.bf16 %v1452_v21, %v1450_v61  ;;  %v1802_v50 = vld [vmem:[#allocation5 + $0x1c8] sm:$0xff]  ;;  %v1804_v38 = vld [vmem:[#allocation5 + $0x1d8] sm:$0xff]  ;;  %v1803_v61 = vld [vmem:[#allocation5 + $0x1d0] sm:$0xff] }
 0x39d   :  { %1411 = vst.msk [vmem:[#allocation2] sm:$0xff] %vm1410_vm0, %v1401_v51  ;;  %v1306_v51 = vadd.f32 %v1297_v57, %v1284_v25  ;;  %v5958_v25 = vpack.c.bf16 %v1804_v38, %v1802_v50  ;;  %v1982_v57 = vld [vmem:[#allocation5 + $0x1f8] sm:$0xff]  ;;  %v2163_v50 = vld [vmem:[%s8985_s8] sm:$0x3]  ;;  %v8997_v38 = vsub.s32 1, %v7120_v0  ;;  %s6501_s8 = smov 28  }
 0x3a1   :  { %v1379_v43 = vpop.permute.xlu1 %1378 }
 0x3a2   :  { %v1403_v33 = vsel %vm795_vm4, %v1314_v34, %v1379_v43  ;;  %v1319_v43 = vadd.f32 %v7299_v14, %v1306_v51  ;;  %v1785_v14 = vld [vmem:[#allocation5 + $0x140] sm:$0xff] }
 0x3a3   :  { %1413 = vst.msk [vmem:[#allocation2 + $0x10] sm:$0xff] %vm1410_vm0, %v1403_v33  ;;  %v5944_v2 = vpack.c.bf16 %v1787_v49, %v1785_v14  ;;  %v1425_v22 = vld [vmem:[#allocation2 + $0x8] sm:$0xff]  ;;  %v1979_v51 = vld [vmem:[#allocation5 + $0x1e0] sm:$0xff]  ;;  %v1993_v14 = vld [vmem:[#allocation5 + $0x250] sm:$0xff] }
 0x3a4   :  { %v1453_v16 = vld [vmem:[#allocation2 + $0x2] sm:$0xff] }
 0x3a5   :  { %v1381_v56 = vpop.permute.xlu0 %1380  ;;  %5603 = vmatmul.mubr.msk.f32.vlgmr.msra.gmra.mrb[36].mxu0 %vm1410_vm0, %v1453_v16  ;;  %v1790_v16 = vld [vmem:[#allocation5 + $0x168] sm:$0xff] }
 0x3a6   :  { %v1404_v10 = vsel %vm795_vm4, %v1315_v23, %v1381_v56  ;;  %5925 = vmatpush1.bf16.msra.mxu0 %v5924_v12  ;;  %1580 = vmatprep.mubr.f32.mxu0 %v7329_v19  ;;  %v5946_v56 = vpack.c.bf16 %v1792_v8, %v1790_v16  ;;  %v1998_v16 = vld [vmem:[#allocation5 + $0x278] sm:$0xff] }
 0x3a7   :  { %1414 = vst.msk [vmem:[#allocation2 + $0x18] sm:$0xff] %vm1410_vm0, %v1404_v10  ;;  %5927 = vmatprep.subr.bf16.mxu0 %v5926_v47  ;;  %v1791_v10 = vld [vmem:[#allocation5 + $0x170] sm:$0xff] }
 0x3a8   :  { %v5948_v1 = vpack.c.bf16 %v1791_v10, %v1789_v59  ;;  %v1997_v59 = vld [vmem:[#allocation5 + $0x270] sm:$0xff] }
 0x3a9   :  { %v1383_v27 = vpop.permute.xlu1 %1382 }
 0x3aa   :  { %v1405_v39 = vsel %vm795_vm4, %v1316_v40, %v1383_v27  ;;  %v1454_v31 = vld [vmem:[#allocation2 + $0xa] sm:$0xff]  ;;  %5929 = vmatpush1.bf16.msra.mxu0 %v5928_v17  ;;  %v1424_v17 = vld [vmem:[#allocation2] sm:$0xff]  ;;  %v1800_v27 = vld [vmem:[#allocation5 + $0x1b8] sm:$0xff] }
 0x3ab   :  { %1415 = vst.msk [vmem:[#allocation2 + $0x20] sm:$0xff] %vm1410_vm0, %v1405_v39  ;;  %5604 = vmatmul.mubr.msk.f32.gmra.mrb[38].mxu0 %vm1410_vm0, %v1454_v31  ;;  %5931 = vmatprep.subr.bf16.mxu0 %v5930_v63  ;;  %v1794_v63 = vld [vmem:[#allocation5 + $0x188] sm:$0xff]  ;;  %v1795_v40 = vld [vmem:[#allocation5 + $0x190] sm:$0xff]  ;;  %v5954_v39 = vpack.c.bf16 %v1800_v27, %v1798_v26  ;;  %v1797_v31 = vld [vmem:[#allocation5 + $0x1a0] sm:$0xff] }
 0x3ac   :  { %1586 = vmatprep.mubr.f32.mxu0 %v7329_v19  ;;  %v5950_v5 = vpack.c.bf16 %v1796_v3, %v1794_v63  ;;  %v5952_v58 = vpack.c.bf16 %v1795_v40, %v1793_v11  ;;  %v1783_v11 = vld [vmem:[#allocation2 + $0x4c] sm:$0xff] }
 0x3ad   :  { %v1385_v6 = vpop.permute.xlu0 %1384  ;;  %v1969_v40 = vld [vmem:[#allocation2 + $0xe] sm:$0xff] }
 0x3ae   :  { %v1406_v45 = vsel %vm795_vm4, %v1317_v55, %v1385_v6  ;;  %v1455_v48 = vld [vmem:[#allocation2 + $0x12] sm:$0xff]  ;;  %5933 = vmatpush1.bf16.msra.mxu0 %v5932_v29  ;;  %v1801_v55 = vld [vmem:[#allocation5 + $0x1c0] sm:$0xff]  ;;  %v1980_v6 = vld [vmem:[#allocation5 + $0x1e8] sm:$0xff] }
 0x3af   :  { %1416 = vst.msk [vmem:[#allocation2 + $0x28] sm:$0xff] %vm1410_vm0, %v1406_v45  ;;  %5605 = vmatmul.mubr.msk.f32.gmra.mrb[40].mxu0 %vm1410_vm0, %v1455_v48  ;;  %5935 = vmatprep.subr.bf16.mxu0 %v5934_v32  ;;  %v1799_v29 = vld [vmem:[#allocation5 + $0x1b0] sm:$0xff]  ;;  %v1427_v21 = vld [vmem:[#allocation2 + $0x18] sm:$0xff]  ;;  %v5960_v45 = vpack.c.bf16 %v1803_v61, %v1801_v55  ;;  %v5962_v48 = vpack.c.bf16 %v1982_v57, %v1980_v6 }
 0x3b0   :  { %1592 = vmatprep.mubr.f32.mxu0 %v7329_v19  ;;  %v1426_v32 = vld [vmem:[#allocation2 + $0x10] sm:$0xff]  ;;  %v5956_v35 = vpack.c.bf16 %v1799_v29, %v1797_v31 }
 0x3b1   :  { %v1387_v53 = vpop.permute.xlu1 %1386 }
 0x3b2   :  { %v1407_v34 = vsel %vm795_vm4, %v1318_v42, %v1387_v53  ;;  %v1456_v44 = vld [vmem:[#allocation2 + $0x1a] sm:$0xff]  ;;  %5937 = vmatpush1.bf16.msra.mxu0 %v5936_v4  ;;  %v5964_v53 = vpack.c.bf16 %v1981_v41, %v1979_v51 }
 0x3b3   :  { %1417 = vst.msk [vmem:[#allocation2 + $0x30] sm:$0xff] %vm1410_vm0, %v1407_v34  ;;  %5606 = vmatmul.mubr.msk.f32.gmra.mrb[42].mxu0 %vm1410_vm0, %v1456_v44  ;;  %5939 = vmatprep.subr.bf16.mxu0 %v5938_v24  ;;  %v1428_v4 = vld [vmem:[#allocation2 + $0x20] sm:$0xff]  ;;  %v1985_v44 = vld [vmem:[#allocation5 + $0x210] sm:$0xff] }
 0x3b4   :  { %1598 = vmatprep.mubr.f32.mxu0 %v7329_v19  ;;  %v1983_v34 = vld [vmem:[#allocation5 + $0x200] sm:$0xff] }
 0x3b5   :  { %v1389_v46 = vpop.permute.xlu0 %1388  ;;  %v1777_v49 = vld [vmem:[#allocation2 + $0x1c] sm:$0xff] }
 0x3b6   :  { %v1408_v33 = vsel %vm795_vm4, %v1319_v43, %v1389_v46  ;;  %v1457_v9 = vld [vmem:[#allocation2 + $0x22] sm:$0xff]  ;;  %5941 = vmatpush1.bf16.msra.mxu0 %v5940_v36  ;;  %v1775_v36 = vld [vmem:[#allocation2 + $0xc] sm:$0xff]  ;;  %v5968_v43 = vpack.c.bf16 %v1985_v44, %v1983_v34 }
 0x3b7   :  { %1418 = vst.msk [vmem:[#allocation2 + $0x38] sm:$0xff] %vm1410_vm0, %v1408_v33  ;;  %5607 = vmatmul.mubr.msk.f32.gmra.mrb[44].mxu0 %vm1410_vm0, %v1457_v9  ;;  %5943 = vmatprep.subr.bf16.mxu0 %v5942_v62  ;;  %v1429_v24 = vld [vmem:[#allocation2 + $0x28] sm:$0xff]  ;;  %v1987_v33 = vld [vmem:[#allocation5 + $0x220] sm:$0xff]  ;;  %v1989_v9 = vld [vmem:[#allocation5 + $0x230] sm:$0xff] }
 0x3b8   :  { %1604 = vmatprep.mubr.f32.mxu0 %v7329_v19  ;;  %v1988_v62 = vld [vmem:[#allocation5 + $0x228] sm:$0xff]  ;;  %v1971_v26 = vld [vmem:[#allocation2 + $0x1e] sm:$0xff] }
 0x3b9   :  { %v1391_v12 = vpop.permute.xlu1 %1390  ;;  %v5970_v46 = vpack.c.bf16 %v1990_v28, %v1988_v62  ;;  %v1778_v10 = vld [vmem:[#allocation2 + $0x24] sm:$0xff] }
 0x3ba   :  { %v1409_v47 = vsel %vm795_vm4, %v1320_v7, %v1391_v12  ;;  %v1458_v13 = vld [vmem:[#allocation2 + $0x2a] sm:$0xff]  ;;  %v1776_v7 = vld [vmem:[#allocation2 + $0x14] sm:$0xff]  ;;  %vm3570_vm4 = vcmask 1043456  }
 0x3bb   :  { %1419 = vst.msk [vmem:[#allocation2 + $0x40] sm:$0xff] %vm1410_vm0, %v1409_v47  ;;  %5608 = vmatmul.mubr.msk.f32.gmra.mrb[46].mxu0 %vm1410_vm0, %v1458_v13  ;;  %v1430_v37 = vld [vmem:[#allocation2 + $0x30] sm:$0xff]  ;;  %v1992_v12 = vld [vmem:[#allocation5 + $0x248] sm:$0xff]  ;;  %v1994_v47 = vld [vmem:[#allocation5 + $0x258] sm:$0xff]  ;;  %v5972_v13 = vpack.c.bf16 %v1989_v9, %v1987_v33 }
 0x3bc   :  { %1610 = vmatprep.mubr.f32.mxu0 %v7329_v19  ;;  %v1779_v63 = vld [vmem:[#allocation2 + $0x2c] sm:$0xff] }
 0x3bd   :  { %v1972_v27 = vld [vmem:[#allocation2 + $0x26] sm:$0xff] }
 0x3be   :  { %v1459_v15 = vld [vmem:[#allocation2 + $0x32] sm:$0xff] }
 0x3bf   :  { %5609 = vmatmul.mubr.msk.f32.gmra.mrb[48].mxu0 %vm1410_vm0, %v1459_v15  ;;  %v1431_v54 = vld [vmem:[#allocation2 + $0x38] sm:$0xff]  ;;  %v5974_v15 = vpack.c.bf16 %v1994_v47, %v1992_v12 }
 0x3c0   :  { %1616 = vmatprep.mubr.f32.mxu0 %v7329_v19  ;;  %v1780_v3 = vld [vmem:[#allocation2 + $0x34] sm:$0xff] }
 0x3c2   :  { %v1460_v60 = vld [vmem:[#allocation2 + $0x3a] sm:$0xff]  ;;  %v1461_v23 = vld [vmem:[#allocation2 + $0x42] sm:$0xff] }
 0x3c3   :  { %5610 = vmatmul.mubr.msk.f32.gmra.mrb[50].mxu0 %vm1410_vm0, %v1460_v60  ;;  %v1432_v42 = vld [vmem:[#allocation2 + $0x40] sm:$0xff] }
 0x3c4   :  { %1622 = vmatprep.mubr.f32.mxu0 %v7329_v19  ;;  %v1991_v60 = vld [vmem:[#allocation5 + $0x240] sm:$0xff] }
 0x3c5   :  { %v5976_v8 = vpack.c.bf16 %v1993_v14, %v1991_v60  ;;  %v1975_v31 = vld [vmem:[#allocation2 + $0x3e] sm:$0xff]  ;;  %v1976_v29 = vld [vmem:[#allocation2 + $0x46] sm:$0xff] }
 0x3c7   :  { %5611 = vmatmul.mubr.msk.f32.gmra.mrb[52].mxu0 %vm1410_vm0, %v1461_v23  ;;  %v1996_v23 = vld [vmem:[#allocation5 + $0x268] sm:$0xff] }
 0x3c8   :  { %1720 = vmatprep.mubr.f32.mxu0 %v7329_v19 }
 0x3ca   :  { %v7465_v41 = vpop.permute.xlu1 %2227 }
 0x3cb   :  { %5612 = vmatmul.mubr.msk.f32.vlgmr.msra.gmra.mrb[36].mxu0 %vm1410_vm0, %v1424_v17 }
 0x3cc   :  { %5945 = vmatpush1.bf16.msra.mxu0 %v5944_v2  ;;  %1726 = vmatprep.mubr.f32.mxu0 %v7329_v19  ;;  %v5978_v2 = vpack.c.bf16 %v1998_v16, %v1996_v23 }
 0x3cd   :  { %5947 = vmatprep.subr.bf16.mxu0 %v5946_v56  ;;  %v1995_v56 = vld [vmem:[#allocation5 + $0x260] sm:$0xff] }
 0x3ce   :  { %v5980_v17 = vpack.c.bf16 %v1997_v59, %v1995_v56 }
 0x3cf   :  { %5613 = vmatmul.mubr.msk.f32.gmra.mrb[38].mxu0 %vm1410_vm0, %v1425_v22  ;;  %v1970_v22 = vld [vmem:[#allocation2 + $0x16] sm:$0xff] }
 0x3d0   :  { %1732 = vmatprep.mubr.f32.mxu0 %v7329_v19  ;;  %5949 = vmatpush1.bf16.msra.mxu0 %v5948_v1  ;;  %v1781_v1 = vld [vmem:[#allocation2 + $0x3c] sm:$0xff] }
 0x3d1   :  { %5951 = vmatprep.subr.bf16.mxu0 %v5950_v5  ;;  %v1782_v5 = vld [vmem:[#allocation2 + $0x44] sm:$0xff] }
 0x3d3   :  { %5614 = vmatmul.mubr.msk.f32.gmra.mrb[40].mxu0 %vm1410_vm0, %v1426_v32  ;;  %v1977_v32 = vld [vmem:[#allocation2 + $0x4e] sm:$0xff] }
 0x3d4   :  { %1738 = vmatprep.mubr.f32.mxu0 %v7329_v19  ;;  %5953 = vmatpush1.bf16.msra.mxu0 %v5952_v58  ;;  %v1973_v58 = vld [vmem:[#allocation2 + $0x2e] sm:$0xff] }
 0x3d5   :  { %5955 = vmatprep.subr.bf16.mxu0 %v5954_v39  ;;  %v1974_v39 = vld [vmem:[#allocation2 + $0x36] sm:$0xff] }
 0x3d7   :  { %5615 = vmatmul.mubr.msk.f32.gmra.mrb[42].mxu0 %vm1410_vm0, %v1427_v21 }
 0x3d8   :  { %1744 = vmatprep.mubr.f32.mxu0 %v7329_v19  ;;  %5957 = vmatpush1.bf16.msra.mxu0 %v5956_v35  ;;  %v7442_v35 = vrot.slane %v2163_v50, %v7123_v18 }
 0x3d9   :  { %5959 = vmatprep.subr.bf16.mxu0 %v5958_v25  ;;  %v7446_v25 = vrot.slane %v2163_v50, %v8997_v38 }
 0x3db   :  { %5616 = vmatmul.mubr.msk.f32.gmra.mrb[44].mxu0 %vm1410_vm0, %v1428_v4 }
 0x3dc   :  { %1750 = vmatprep.mubr.f32.mxu0 %v7329_v19  ;;  %5961 = vmatpush1.bf16.msra.mxu0 %v5960_v45 }
 0x3dd   :  { %5963 = vmatprep.subr.bf16.mxu0 %v5962_v48 }
 0x3df   :  { %5617 = vmatmul.mubr.msk.f32.gmra.mrb[46].mxu0 %vm1410_vm0, %v1429_v24  ;;  %v7456_v24 = vpop.permute.xlu0 %2222 }
 0x3e0   :  { %1756 = vmatprep.mubr.f32.mxu0 %v7329_v19 }
 0x3e3   :  { %5618 = vmatmul.mubr.msk.f32.gmra.mrb[48].mxu0 %vm1410_vm0, %v1430_v37 }
 0x3e4   :  { %1762 = vmatprep.mubr.f32.mxu0 %v7329_v19 }
 0x3e7   :  { %5619 = vmatmul.mubr.msk.f32.gmra.mrb[50].mxu0 %vm1410_vm0, %v1431_v54 }
 0x3e8   :  { %1768 = vmatprep.mubr.f32.mxu0 %v7329_v19 }
 0x3eb   :  { %5620 = vmatmul.mubr.msk.f32.gmra.mrb[52].mxu0 %vm1410_vm0, %v1432_v42 }
 0x3ec   :  { %1896 = vmatprep.mubr.f32.mxu0 %v7329_v19 }
 0x3ef   :  { %5621 = vmatmul.mubr.msk.f32.vlgmr.msra.gmra.mrb[36].mxu0 %vm1410_vm0, %v1775_v36 }
 0x3f0   :  { %5965 = vmatpush1.bf16.msra.mxu0 %v5964_v53  ;;  %1902 = vmatprep.mubr.f32.mxu0 %v7329_v19 }
 0x3f1   :  { %5967 = vmatprep.subr.bf16.mxu0 %v5966_v52 }
 0x3f3   :  { %5622 = vmatmul.mubr.msk.f32.gmra.mrb[38].mxu0 %vm1410_vm0, %v1776_v7 }
 0x3f4   :  { %1908 = vmatprep.mubr.f32.mxu0 %v7329_v19  ;;  %5969 = vmatpush1.bf16.msra.mxu0 %v5968_v43 }
 0x3f5   :  { %5971 = vmatprep.subr.bf16.mxu0 %v5970_v46  ;;  %v7484_v46 = vpop.permute.xlu0 %2232 }
 0x3f7   :  { %5623 = vmatmul.mubr.msk.f32.gmra.mrb[40].mxu0 %vm1410_vm0, %v1777_v49 }
 0x3f8   :  { %1914 = vmatprep.mubr.f32.mxu0 %v7329_v19  ;;  %5973 = vmatpush1.bf16.msra.mxu0 %v5972_v13 }
 0x3f9   :  { %5975 = vmatprep.subr.bf16.mxu0 %v5974_v15  ;;  %v7521_v50 = vpop.permute.xlu0 %2242 }
 0x3fb   :  { %5624 = vmatmul.mubr.msk.f32.gmra.mrb[42].mxu0 %vm1410_vm0, %v1778_v10  ;;  %v7504_v10 = vpop.permute.xlu1 %2237 }
 0x3fc   :  { %1920 = vmatprep.mubr.f32.mxu0 %v7329_v19  ;;  %5977 = vmatpush1.bf16.msra.mxu0 %v5976_v8 }
 0x3fd   :  { %5979 = vmatprep.subr.bf16.mxu0 %v5978_v2 }
 0x3ff   :  { %5625 = vmatmul.mubr.msk.f32.gmra.mrb[44].mxu0 %vm1410_vm0, %v1779_v63 }
 0x400   :  { %1926 = vmatprep.mubr.f32.mxu0 %v7329_v19  ;;  %5981 = vmatpush1.bf16.msra.mxu0 %v5980_v17 }
 0x403   :  { %5626 = vmatmul.mubr.msk.f32.gmra.mrb[46].mxu0 %vm1410_vm0, %v1780_v3 }
 0x404   :  { %1932 = vmatprep.mubr.f32.mxu0 %v7329_v19 }
 0x407   :  { %5627 = vmatmul.mubr.msk.f32.gmra.mrb[48].mxu0 %vm1410_vm0, %v1781_v1 }
 0x408   :  { %1938 = vmatprep.mubr.f32.mxu0 %v7329_v19 }
 0x40b   :  { %5628 = vmatmul.mubr.msk.f32.gmra.mrb[50].mxu0 %vm1410_vm0, %v1782_v5 }
 0x40c   :  { %1944 = vmatprep.mubr.f32.mxu0 %v7329_v19 }
 0x40f   :  { %5629 = vmatmul.mubr.msk.f32.gmra.mrb[52].mxu0 %vm1410_vm0, %v1783_v11 }
 0x410   :  { %2090 = vmatprep.mubr.f32.mxu0 %v7329_v19 }
 0x413   :  { %5630 = vmatmul.mubr.msk.f32.vlgmr.msra.gmra.mrb[36].mxu0 %vm1410_vm0, %v1969_v40 }
 0x414   :  { %2096 = vmatprep.mubr.f32.mxu0 %v7329_v19 }
 0x417   :  { %5631 = vmatmul.mubr.msk.f32.gmra.mrb[38].mxu0 %vm1410_vm0, %v1970_v22 }
 0x418   :  { %2102 = vmatprep.mubr.f32.mxu0 %v7329_v19 }
 0x41b   :  { %5632 = vmatmul.mubr.msk.f32.gmra.mrb[40].mxu0 %vm1410_vm0, %v1971_v26 }
 0x41c   :  { %2108 = vmatprep.mubr.f32.mxu0 %v7329_v19 }
 0x41f   :  { %5633 = vmatmul.mubr.msk.f32.gmra.mrb[42].mxu0 %vm1410_vm0, %v1972_v27 }
 0x420   :  { %2114 = vmatprep.mubr.f32.mxu0 %v7329_v19 }
 0x423   :  { %5634 = vmatmul.mubr.msk.f32.gmra.mrb[44].mxu0 %vm1410_vm0, %v1973_v58 }
 0x424   :  { %2120 = vmatprep.mubr.f32.mxu0 %v7329_v19 }
 0x427   :  { %5635 = vmatmul.mubr.msk.f32.gmra.mrb[46].mxu0 %vm1410_vm0, %v1974_v39 }
 0x428   :  { %2126 = vmatprep.mubr.f32.mxu0 %v7329_v19 }
 0x42b   :  { %5636 = vmatmul.mubr.msk.f32.gmra.mrb[48].mxu0 %vm1410_vm0, %v1975_v31 }
 0x42c   :  { %2132 = vmatprep.mubr.f32.mxu0 %v7329_v19 }
 0x42f   :  { %5637 = vmatmul.mubr.msk.f32.gmra.mrb[50].mxu0 %vm1410_vm0, %v1976_v29 }
 0x430   :  { %2138 = vmatprep.mubr.f32.mxu0 %v7329_v19 }
 0x433   :  { %5638 = vmatmul.mubr.msk.f32.gmra.mrb[52].mxu0 %vm1410_vm0, %v1977_v32 }
 0x4e6   :  { %v2092_v55 = vpop.f32.mrb[36].mxu0 }
 0x4e7   :  { %v2175_v61 = vadd.f32 %v7442_v35, %v2092_v55  ;;  %v2094_v21 = vpop.f32.mrb[37].mxu0 }
 0x4e8   :  { %v7450_v6 = vadd.f32 %v7446_v25, %v2094_v21 }
 0x4e9   :  { %v7452_v19 = vmax.f32 %v2175_v61, 0.0 }
 0x4ea   :  { %v2194_v57 = vmax.f32 %v7450_v6, 0.0  ;;  %v2098_v45 = vpop.f32.mrb[38].mxu0 }
 0x4eb   :  { %v2177_v48 = vadd.f32 %v7442_v35, %v2098_v45  ;;  %v2100_v4 = vpop.f32.mrb[39].mxu0  ;;  %v2265_v54 = vmul.f32 %v7456_v24, %v7452_v19 }
 0x4ec   :  { %v7459_v37 = vadd.f32 %v7446_v25, %v2100_v4  ;;  %v2299_v42 = vmul.f32 %v7456_v24, %v2194_v57 }
 0x4ed   :  { %v7463_v51 = vmax.f32 %v2177_v48, 0.0  ;;  %v2275_v62 = vsel %vm2274_vm11, %v2265_v54, 0.0  ;;  %v2309_v8 = vsel %vm2308_vm12, %v2265_v54, 0.0 }
 0x4ee   :  { %v2196_v20 = vmax.f32 %v7459_v37, 0.0  ;;  %v2104_v30 = vpop.f32.mrb[40].mxu0  ;;  %v2333_v33 = vsel %vm2332_vm10, %v2299_v42, 0.0 }
 0x4ef   :  { %v2266_v53 = vmul.f32 %v7465_v41, %v7463_v51  ;;  %v2179_v52 = vadd.f32 %v7442_v35, %v2104_v30  ;;  %v2106_v34 = vpop.f32.mrb[41].mxu0 }
 0x4f0   :  { %v2300_v44 = vmul.f32 %v7465_v41, %v2196_v20  ;;  %v7478_v36 = vadd.f32 %v7446_v25, %v2106_v34 }
 0x4f1   :  { %v2276_v28 = vsel %vm2274_vm11, %v2266_v53, 0.0  ;;  %v7482_v43 = vmax.f32 %v2179_v52, 0.0  ;;  %v2310_v13 = vsel %vm2308_vm12, %v2266_v53, 0.0 }
 0x4f2   :  { %v2277_v9 = vadd.f32 %v2276_v28, %v2275_v62  ;;  %v2334_v7 = vsel %vm2332_vm10, %v2300_v44, 0.0  ;;  %v2198_v12 = vmax.f32 %v7478_v36, 0.0  ;;  %v2110_v47 = vpop.f32.mrb[42].mxu0  ;;  %v2311_v17 = vadd.f32 %v2310_v13, %v2309_v8  ;;  %v7538_v28 = vpop.permute.xlu1 %2247 }
 0x4f3   :  { %v2335_v15 = vadd.f32 %v2334_v7, %v2333_v33  ;;  %v2267_v60 = vmul.f32 %v7484_v46, %v7482_v43  ;;  %v2181_v14 = vadd.f32 %v7442_v35, %v2110_v47  ;;  %v2112_v49 = vpop.f32.mrb[43].mxu0 }
 0x4f4   :  { %v2301_v23 = vmul.f32 %v7484_v46, %v2198_v12  ;;  %v7497_v16 = vadd.f32 %v7446_v25, %v2112_v49 }
 0x4f5   :  { %v2278_v2 = vsel %vm2274_vm11, %v2267_v60, 0.0  ;;  %v2312_v56 = vsel %vm2308_vm12, %v2267_v60, 0.0  ;;  %v7502_v59 = vmax.f32 %v2181_v14, 0.0 }
 0x4f6   :  { %v2279_v63 = vadd.f32 %v2278_v2, %v2277_v9  ;;  %v2336_v3 = vsel %vm2332_vm10, %v2301_v23, 0.0  ;;  %v2200_v1 = vmax.f32 %v7497_v16, 0.0  ;;  %v2116_v5 = vpop.f32.mrb[44].mxu0  ;;  %v2313_v27 = vadd.f32 %v2312_v56, %v2311_v17 }
 0x4f7   :  { %v2337_v11 = vadd.f32 %v2336_v3, %v2335_v15  ;;  %v2268_v40 = vmul.f32 %v7504_v10, %v7502_v59  ;;  %v2183_v22 = vadd.f32 %v7442_v35, %v2116_v5  ;;  %v2118_v26 = vpop.f32.mrb[45].mxu0 }
 0x4f8   :  { %v2302_v58 = vmul.f32 %v7504_v10, %v2200_v1  ;;  %v7515_v39 = vadd.f32 %v7446_v25, %v2118_v26 }
 0x4f9   :  { %v2280_v31 = vsel %vm2274_vm11, %v2268_v40, 0.0  ;;  %v2314_v29 = vsel %vm2308_vm12, %v2268_v40, 0.0  ;;  %v7519_v32 = vmax.f32 %v2183_v22, 0.0 }
 0x4fa   :  { %v2281_v55 = vadd.f32 %v2280_v31, %v2279_v63  ;;  %v2315_v61 = vadd.f32 %v2314_v29, %v2313_v27  ;;  %v2338_v21 = vsel %vm2332_vm10, %v2302_v58, 0.0  ;;  %v2202_v45 = vmax.f32 %v7515_v39, 0.0  ;;  %v2122_v48 = vpop.f32.mrb[46].mxu0  ;;  %v7555_v63 = vpop.permute.xlu0 %2252 }
 0x4fb   :  { %v2339_v4 = vadd.f32 %v2338_v21, %v2337_v11  ;;  %v2269_v54 = vmul.f32 %v7521_v50, %v7519_v32  ;;  %v2185_v42 = vadd.f32 %v7442_v35, %v2122_v48  ;;  %v2124_v30 = vpop.f32.mrb[47].mxu0 }
 0x4fc   :  { %v2303_v53 = vmul.f32 %v7521_v50, %v2202_v45  ;;  %v7532_v52 = vadd.f32 %v7446_v25, %v2124_v30 }
 0x4fd   :  { %v2282_v34 = vsel %vm2274_vm11, %v2269_v54, 0.0  ;;  %v2316_v44 = vsel %vm2308_vm12, %v2269_v54, 0.0  ;;  %v7536_v62 = vmax.f32 %v2185_v42, 0.0 }
 0x4fe   :  { %v2283_v33 = vadd.f32 %v2282_v34, %v2281_v55  ;;  %v2317_v9 = vadd.f32 %v2316_v44, %v2315_v61  ;;  %v2340_v7 = vsel %vm2332_vm10, %v2303_v53, 0.0  ;;  %v2204_v47 = vmax.f32 %v7532_v52, 0.0  ;;  %v2128_v13 = vpop.f32.mrb[48].mxu0 }
 0x4ff   :  { %v2341_v15 = vadd.f32 %v2340_v7, %v2339_v4  ;;  %v2270_v60 = vmul.f32 %v7538_v28, %v7536_v62  ;;  %v2187_v14 = vadd.f32 %v7442_v35, %v2128_v13  ;;  %v2130_v49 = vpop.f32.mrb[49].mxu0  ;;  %v7572_v4 = vpop.permute.xlu1 %2257 }
 0x500   :  { %v2304_v23 = vmul.f32 %v7538_v28, %v2204_v47  ;;  %v7549_v8 = vadd.f32 %v7446_v25, %v2130_v49 }
 0x501   :  { %v2284_v2 = vsel %vm2274_vm11, %v2270_v60, 0.0  ;;  %v2318_v56 = vsel %vm2308_vm12, %v2270_v60, 0.0  ;;  %v7553_v17 = vmax.f32 %v2187_v14, 0.0 }
 0x502   :  { %v2285_v3 = vadd.f32 %v2284_v2, %v2283_v33  ;;  %v2319_v5 = vadd.f32 %v2318_v56, %v2317_v9  ;;  %v2342_v11 = vsel %vm2332_vm10, %v2304_v23, 0.0  ;;  %v2206_v40 = vmax.f32 %v7549_v8, 0.0  ;;  %v2134_v22 = vpop.f32.mrb[50].mxu0  ;;  %v7585_v23 = vpop.permute.xlu0 %2262 }
 0x503   :  { %v2343_v26 = vadd.f32 %v2342_v11, %v2341_v15  ;;  %v2271_v27 = vmul.f32 %v7555_v63, %v7553_v17  ;;  %v2189_v58 = vadd.f32 %v7442_v35, %v2134_v22  ;;  %v2136_v31 = vpop.f32.mrb[51].mxu0 }
 0x504   :  { %v2305_v29 = vmul.f32 %v7555_v63, %v2206_v40  ;;  %v7566_v55 = vadd.f32 %v7446_v25, %v2136_v31 }
 0x505   :  { %v2286_v61 = vsel %vm2274_vm11, %v2271_v27, 0.0  ;;  %v2320_v21 = vsel %vm2308_vm12, %v2271_v27, 0.0  ;;  %v7570_v48 = vmax.f32 %v2189_v58, 0.0 }
 0x506   :  { %v2287_v54 = vadd.f32 %v2286_v61, %v2285_v3  ;;  %v2321_v42 = vadd.f32 %v2320_v21, %v2319_v5  ;;  %v2344_v30 = vsel %vm2332_vm10, %v2305_v29, 0.0  ;;  %v2208_v53 = vmax.f32 %v7566_v55, 0.0  ;;  %v2140_v34 = vpop.f32.mrb[52].mxu0 }
 0x507   :  { %v2345_v44 = vadd.f32 %v2344_v30, %v2343_v26  ;;  %v2272_v33 = vmul.f32 %v7572_v4, %v7570_v48  ;;  %v2191_v9 = vadd.f32 %v7442_v35, %v2140_v34  ;;  %v2142_v7 = vpop.f32.mrb[53].mxu0 }
 0x508   :  { %v2306_v13 = vmul.f32 %v7572_v4, %v2208_v53  ;;  %v2192_v15 = vadd.f32 %v7446_v25, %v2142_v7 }
 0x509   :  { %v2288_v60 = vsel %vm2274_vm11, %v2272_v33, 0.0  ;;  %v2322_v14 = vsel %vm2308_vm12, %v2272_v33, 0.0  ;;  %v2209_v49 = vmax.f32 %v2191_v9, 0.0 }
 0x50a   :  { %v2289_v2 = vadd.f32 %v2288_v60, %v2287_v54  ;;  %v2323_v56 = vadd.f32 %v2322_v14, %v2321_v42  ;;  %v2346_v3 = vsel %vm2332_vm10, %v2306_v13, 0.0  ;;  %v2210_v5 = vmax.f32 %v2192_v15, 0.0 }
 0x50b   :  { %v2347_v35 = vadd.f32 %v2346_v3, %v2345_v44  ;;  %v2273_v11 = vmul.f32 %v7585_v23, %v2209_v49 }
 0x50c   :  { %v2307_v22 = vmul.f32 %v7585_v23, %v2210_v5 }
 0x50d   :  { %v2290_v26 = vsel %vm2274_vm11, %v2273_v11, 0.0  ;;  %v2324_v25 = vsel %vm2308_vm12, %v2273_v11, 0.0 }
 0x50e   :  { %v2291_v27 = vadd.f32 %v2290_v26, %v2289_v2  ;;  %v2325_v58 = vadd.f32 %v2324_v25, %v2323_v56  ;;  %v2348_v31 = vsel %vm2332_vm10, %v2307_v22, 0.0 }
 0x50f   :  { %v2349_v29 = vadd.f32 %v2348_v31, %v2347_v35 }
 0x510   :  { %v2292_v61 = vrot.slane %v2291_v27, 4  ;;  %v2326_v21 = vrot.slane %v2325_v58, 4 }
 0x511   :  { %v2350_v54 = vrot.slane %v2349_v29, 4 }
 0x512   :  { %v2293_v42 = vadd.f32 %v2292_v61, %v2291_v27  ;;  %v2327_v30 = vadd.f32 %v2326_v21, %v2325_v58 }
 0x513   :  { %v2351_v34 = vadd.f32 %v2350_v54, %v2349_v29 }
 0x514   :  { %v2294_v44 = vrot.slane %v2293_v42, 2  ;;  %v2328_v33 = vrot.slane %v2327_v30, 2 }
 0x515   :  { %v2352_v9 = vrot.slane %v2351_v34, 2 }
 0x516   :  { %v2295_v7 = vadd.f32 %v2294_v44, %v2293_v42  ;;  %v2329_v13 = vadd.f32 %v2328_v33, %v2327_v30 }
 0x517   :  { %v2353_v15 = vadd.f32 %v2352_v9, %v2351_v34 }
 0x518   :  { %v2296_v60 = vrot.slane %v2295_v7, 1  ;;  %v2330_v14 = vrot.slane %v2329_v13, 1 }
 0x519   :  { %v2354_v3 = vrot.slane %v2353_v15, 1 }
 0x51a   :  { %v2297_v2 = vadd.f32 %v2296_v60, %v2295_v7  ;;  %v2331_v56 = vadd.f32 %v2330_v14, %v2329_v13 }
 0x51b   :  { %v2355_v11 = vadd.f32 %v2354_v3, %v2353_v15 }
 0x51c   :  { %v7593_v22 = vmul.f32 0.03125, %v2297_v2  ;;  %v7595_v35 = vmul.f32 0.03125, %v2331_v56 }
 0x51d   :  { %v7597_v26 = vmul.f32 0.03125, %v2355_v11 }
 0x51e   :  { %v7600_v25 = vsub.f32 %v2209_v49, %v7593_v22  ;;  %v7603_v27 = vsub.f32 %v2209_v49, %v7595_v35  ;;  %v7607_v58 = vsub.f32 %v7452_v19, %v7595_v35  ;;  %v7611_v31 = vsub.f32 %v7463_v51, %v7595_v35 }
 0x51f   :  { %v7614_v29 = vsub.f32 %v2210_v5, %v7597_v26  ;;  %v7619_v61 = vsub.f32 %v2194_v57, %v7597_v26  ;;  %v7624_v49 = vsub.f32 %v2196_v20, %v7597_v26  ;;  %v7628_v21 = vsub.f32 %v7482_v43, %v7595_v35 }
 0x520   :  { %v2394_v54 = vmul.f32 %v7607_v58, %v7456_v24  ;;  %v2396_v5 = vmul.f32 %v7611_v31, %v7465_v41  ;;  %v7637_v6 = vsub.f32 %v2198_v12, %v7597_v26  ;;  %v7641_v57 = vsub.f32 %v7502_v59, %v7595_v35 }
 0x521   :  { %v2395_v37 = vmul.f32 %v7619_v61, %v7456_v24  ;;  %v2397_v20 = vmul.f32 %v7624_v49, %v7465_v41  ;;  %v2398_v42 = vmul.f32 %v7628_v21, %v7484_v46  ;;  %v7652_v30 = vsub.f32 %v2200_v1, %v7597_v26 }
 0x522   :  { %2532 = vrot.lane.b32.xlu1 %v2394_v54, %s6501_s8  ;;  %v2446_v36 = vmul.f32 %v2394_v54, %v2394_v54  ;;  %v2448_v12 = vmul.f32 %v2396_v5, %v2396_v5  ;;  %v2399_v34 = vmul.f32 %v7637_v6, %v7484_v46  ;;  %v2400_v44 = vmul.f32 %v7641_v57, %v7504_v10 }
 0x523   :  { %2534 = vrot.lane.b32.xlu0 %v2395_v37, %s6501_s8  ;;  %v2447_v33 = vmul.f32 %v2395_v37, %v2395_v37  ;;  %v2449_v9 = vmul.f32 %v2397_v20, %v2397_v20  ;;  %v2450_v7 = vmul.f32 %v2398_v42, %v2398_v42  ;;  %v2401_v16 = vmul.f32 %v7652_v30, %v7504_v10 }
 0x524   :  { %v2464_v1 = vsel %vm2308_vm12, %v2446_v36, 0.0  ;;  %v2465_v13 = vsel %vm2308_vm12, %v2448_v12, 0.0  ;;  %v2451_v15 = vmul.f32 %v2399_v34, %v2399_v34  ;;  %v2452_v60 = vmul.f32 %v2400_v44, %v2400_v44 }
 0x525   :  { %v2487_v14 = vsel %vm2332_vm10, %v2447_v33, 0.0  ;;  %v2466_v3 = vadd.f32 %v2465_v13, %v2464_v1  ;;  %v2488_v2 = vsel %vm2332_vm10, %v2449_v9, 0.0  ;;  %v2467_v56 = vsel %vm2308_vm12, %v2450_v7, 0.0 }
 0x526   :  { %2536 = vrot.lane.b32.xlu1 %v2396_v5, %s6501_s8  ;;  %v2489_v11 = vadd.f32 %v2488_v2, %v2487_v14  ;;  %v2490_v54 = vsel %vm2332_vm10, %v2451_v15, 0.0  ;;  %v2469_v37 = vsel %vm2308_vm12, %v2452_v60, 0.0  ;;  %v2453_v38 = vmul.f32 %v2401_v16, %v2401_v16 }
 0x527   :  { %2538 = vrot.lane.b32.xlu0 %v2397_v20, %s6501_s8  ;;  %v2468_v36 = vadd.f32 %v2467_v56, %v2466_v3  ;;  %v7673_v12 = vsub.f32 %v7519_v32, %v7595_v35  ;;  %v7678_v33 = vsub.f32 %v2202_v45, %v7597_v26  ;;  %v7682_v5 = vsub.f32 %v7536_v62, %v7595_v35 }
 0x528   :  { %v2491_v9 = vadd.f32 %v2490_v54, %v2489_v11  ;;  %v2492_v7 = vsel %vm2332_vm10, %v2453_v38, 0.0  ;;  %v7688_v20 = vsub.f32 %v2204_v47, %v7597_v26  ;;  %v7692_v1 = vsub.f32 %v7553_v17, %v7595_v35 }
 0x529   :  { %v2470_v13 = vadd.f32 %v2469_v37, %v2468_v36  ;;  %v2402_v39 = vmul.f32 %v7673_v12, %v7521_v50  ;;  %v2403_v45 = vmul.f32 %v7678_v33, %v7521_v50  ;;  %v2404_v15 = vmul.f32 %v7682_v5, %v7538_v28 }
 0x52a   :  { %2540 = vrot.lane.b32.xlu1 %v2398_v42, %s6501_s8  ;;  %v2493_v38 = vadd.f32 %v2492_v7, %v2491_v9  ;;  %v2405_v52 = vmul.f32 %v7688_v20, %v7538_v28  ;;  %v2406_v47 = vmul.f32 %v7692_v1, %v7555_v63  ;;  %v7708_v60 = vsub.f32 %v2206_v40, %v7597_v26 }
 0x52b   :  { %2542 = vrot.lane.b32.xlu0 %v2399_v34, %s6501_s8  ;;  %v2454_v14 = vmul.f32 %v2402_v39, %v2402_v39  ;;  %v2455_v3 = vmul.f32 %v2403_v45, %v2403_v45  ;;  %v2456_v2 = vmul.f32 %v2404_v15, %v2404_v15  ;;  %v7713_v42 = vsub.f32 %v7570_v48, %v7595_v35 }
 0x52c   :  { %v2457_v56 = vmul.f32 %v2405_v52, %v2405_v52  ;;  %v2407_v11 = vmul.f32 %v7708_v60, %v7555_v63  ;;  %v7720_v54 = vsub.f32 %v2208_v53, %v7597_v26  ;;  %v2458_v34 = vmul.f32 %v2406_v47, %v2406_v47 }
 0x52d   :  { %v2471_v8 = vsel %vm2308_vm12, %v2454_v14, 0.0  ;;  %v2494_v40 = vsel %vm2332_vm10, %v2455_v3, 0.0  ;;  %v2408_v37 = vmul.f32 %v7713_v42, %v7572_v4  ;;  %v2473_v9 = vsel %vm2308_vm12, %v2456_v2, 0.0 }
 0x52e   :  { %2544 = vrot.lane.b32.xlu1 %v2400_v44, %s6501_s8  ;;  %v2472_v35 = vadd.f32 %v2471_v8, %v2470_v13  ;;  %v2495_v36 = vadd.f32 %v2494_v40, %v2493_v38  ;;  %v2496_v7 = vsel %vm2332_vm10, %v2457_v56, 0.0  ;;  %v2459_v55 = vmul.f32 %v2407_v11, %v2407_v11 }
 0x52f   :  { %2546 = vrot.lane.b32.xlu0 %v2401_v16, %s6501_s8  ;;  %v2460_v53 = vmul.f32 %v2408_v37, %v2408_v37  ;;  %v2409_v26 = vmul.f32 %v7720_v54, %v7572_v4  ;;  %v2410_v14 = vmul.f32 %v7603_v27, %v7585_v23  ;;  %v2411_v44 = vmul.f32 %v7614_v29, %v7585_v23 }
 0x530   :  { %v2474_v3 = vadd.f32 %v2473_v9, %v2472_v35  ;;  %v2497_v0 = vadd.f32 %v2496_v7, %v2495_v36  ;;  %v2475_v13 = vsel %vm2308_vm12, %v2458_v34, 0.0  ;;  %v2498_v38 = vsel %vm2332_vm10, %v2459_v55, 0.0 }
 0x531   :  { %v2461_v2 = vmul.f32 %v2409_v26, %v2409_v26  ;;  %v2462_v56 = vmul.f32 %v2410_v14, %v2410_v14  ;;  %v2463_v40 = vmul.f32 %v2411_v44, %v2411_v44  ;;  %v2477_v18 = vsel %vm2308_vm12, %v2460_v53, 0.0 }
 0x532   :  { %2548 = vrot.lane.b32.xlu1 %v2402_v39, %s6501_s8  ;;  %v2476_v16 = vadd.f32 %v2475_v13, %v2474_v3  ;;  %v2499_v8 = vadd.f32 %v2498_v38, %v2497_v0  ;;  %v7744_v36 = vsub.f32 %v7482_v43, %v7593_v22  ;;  %v7750_v0 = vsub.f32 %v7502_v59, %v7593_v22 }
 0x533   :  { %2550 = vrot.lane.b32.xlu0 %v2403_v45, %s6501_s8  ;;  %v2500_v35 = vsel %vm2332_vm10, %v2461_v2, 0.0  ;;  %v2479_v7 = vsel %vm2308_vm12, %v2462_v56, 0.0  ;;  %v2502_v55 = vsel %vm2332_vm10, %v2463_v40, 0.0  ;;  %v7754_v39 = vsub.f32 %v7519_v32, %v7593_v22 }
 0x534   :  { %v2478_v34 = vadd.f32 %v2477_v18, %v2476_v16  ;;  %v2501_v9 = vadd.f32 %v2500_v35, %v2499_v8  ;;  %v7759_v18 = vsub.f32 %v7536_v62, %v7593_v22  ;;  %v7764_v59 = vsub.f32 %v7553_v17, %v7593_v22 }
 0x536   :  { %2552 = vrot.lane.b32.xlu1 %v2404_v15, %s6501_s8  ;;  %v2480_v45 = vadd.f32 %v2479_v7, %v2478_v34  ;;  %v2503_v53 = vadd.f32 %v2502_v55, %v2501_v9  ;;  %v7770_v15 = vsub.f32 %v7570_v48, %v7593_v22 }
 0x537   :  { %2554 = vrot.lane.b32.xlu0 %v2405_v52, %s6501_s8 }
 0x538   :  { %v2481_v43 = vrot.slane %v2480_v45, 4  ;;  %v2504_v3 = vrot.slane %v2503_v53, 4  ;;  %v2392_v35 = vmul.f32 %v7770_v15, %v7572_v4 }
 0x53a   :  { %2556 = vrot.lane.b32.xlu1 %v2406_v47, %s6501_s8  ;;  %v2482_v32 = vadd.f32 %v2481_v43, %v2480_v45  ;;  %v2505_v13 = vadd.f32 %v2504_v3, %v2503_v53  ;;  %v2419_v55 = vmul.f32 %v2392_v35, %v2392_v35  ;;  %v2393_v45 = vmul.f32 %v7600_v25, %v7585_v23 }
 0x53b   :  { %2558 = vrot.lane.b32.xlu0 %v2407_v11, %s6501_s8 }
 0x53c   :  { %v2483_v62 = vrot.slane %v2482_v32, 2  ;;  %v2506_v38 = vrot.slane %v2505_v13, 2 }
 0x53e   :  { %2560 = vrot.lane.b32.xlu1 %v2408_v37, %s6501_s8  ;;  %v2484_v52 = vadd.f32 %v2483_v62, %v2482_v32  ;;  %v2507_v2 = vadd.f32 %v2506_v38, %v2505_v13  ;;  %v2434_v32 = vsel %vm2274_vm11, %v2419_v55, 0.0  ;;  %v2420_v13 = vmul.f32 %v2393_v45, %v2393_v45 }
 0x53f   :  { %2562 = vrot.lane.b32.xlu0 %v2409_v26, %s6501_s8 }
 0x540   :  { %v2485_v17 = vrot.slane %v2484_v52, 1  ;;  %v2508_v56 = vrot.slane %v2507_v2, 1 }
 0x542   :  { %2564 = vrot.lane.b32.xlu1 %v2410_v14, %s6501_s8  ;;  %v2486_v47 = vadd.f32 %v2485_v17, %v2484_v52  ;;  %v2509_v16 = vadd.f32 %v2508_v56, %v2507_v2 }
 0x543   :  { %2566 = vrot.lane.b32.xlu0 %v2411_v44, %s6501_s8 }
 0x544   :  { %v2510_v11 = vmul.f32 0.03125, %v2486_v47  ;;  %v2511_v8 = vmul.f32 0.03125, %v2509_v16  ;;  %v2436_v16 = vsel %vm2274_vm11, %v2420_v13, 0.0 }
 0x546   :  { %v7776_v48 = vadd.f32 1e-05, %v2510_v11  ;;  %v7778_v40 = vadd.f32 1e-05, %v2511_v8 }
 0x548   :  { %2622 = vrot.lane.b32.xlu1 %v7776_v48, %s6501_s8  ;;  %2624 = vrot.lane.b32.xlu0 %v7778_v40, %s6501_s8 }
 0x54c   :  { %2750 = vrot.lane.b32.xlu1 %v7607_v58, %s6501_s8  ;;  %2752 = vrot.lane.b32.xlu0 %v7619_v61, %s6501_s8  ;;  %v7822_v58 = vsub.f32 %v7452_v19, %v7593_v22 }
 0x54e   :  { %v2385_v61 = vmul.f32 %v7822_v58, %v7456_v24 }
 0x550   :  { %2754 = vrot.lane.b32.xlu1 %v7611_v31, %s6501_s8  ;;  %2756 = vrot.lane.b32.xlu0 %v7624_v49, %s6501_s8  ;;  %v7826_v31 = vsub.f32 %v7463_v51, %v7593_v22  ;;  %v2388_v51 = vmul.f32 %v7750_v0, %v7504_v10 }
 0x552   :  { %v2386_v49 = vmul.f32 %v7826_v31, %v7465_v41  ;;  %v2415_v24 = vmul.f32 %v2388_v51, %v2388_v51  ;;  %v2389_v41 = vmul.f32 %v7754_v39, %v7521_v50 }
 0x554   :  { %2758 = vrot.lane.b32.xlu1 %v7628_v21, %s6501_s8  ;;  %2760 = vrot.lane.b32.xlu0 %v7637_v6, %s6501_s8  ;;  %v2412_v21 = vmul.f32 %v2385_v61, %v2385_v61  ;;  %v2413_v6 = vmul.f32 %v2386_v49, %v2386_v49 }
 0x556   :  { %v2422_v19 = vsel %vm2274_vm11, %v2413_v6, 0.0 }
 0x558   :  { %2762 = vrot.lane.b32.xlu1 %v7641_v57, %s6501_s8  ;;  %2764 = vrot.lane.b32.xlu0 %v7652_v30, %s6501_s8 }
 0x55c   :  { %2766 = vrot.lane.b32.xlu1 %v7673_v12, %s6501_s8  ;;  %2768 = vrot.lane.b32.xlu0 %v7678_v33, %s6501_s8  ;;  %v2426_v33 = vsel %vm2274_vm11, %v2415_v24, 0.0 }
 0x560   :  { %2770 = vrot.lane.b32.xlu1 %v7682_v5, %s6501_s8  ;;  %2772 = vrot.lane.b32.xlu0 %v7688_v20, %s6501_s8  ;;  %v2416_v5 = vmul.f32 %v2389_v41, %v2389_v41 }
 0x564   :  { %2774 = vrot.lane.b32.xlu1 %v7692_v1, %s6501_s8  ;;  %2776 = vrot.lane.b32.xlu0 %v7708_v60, %s6501_s8 }
 0x568   :  { %2778 = vrot.lane.b32.xlu1 %v7713_v42, %s6501_s8  ;;  %2780 = vrot.lane.b32.xlu0 %v7720_v54, %s6501_s8  ;;  %v2428_v42 = vsel %vm2274_vm11, %v2416_v5, 0.0  ;;  %v2391_v54 = vmul.f32 %v7764_v59, %v7555_v63 }
 0x56a   :  { %v2418_v44 = vmul.f32 %v2391_v54, %v2391_v54 }
 0x56c   :  { %2782 = vrot.lane.b32.xlu1 %v7603_v27, %s6501_s8  ;;  %2784 = vrot.lane.b32.xlu0 %v7614_v29, %s6501_s8  ;;  %v2387_v27 = vmul.f32 %v7744_v36, %v7484_v46  ;;  %v2421_v29 = vsel %vm2274_vm11, %v2412_v21, 0.0  ;;  %v2390_v46 = vmul.f32 %v7759_v18, %v7538_v28  ;;  %v2432_v7 = vsel %vm2274_vm11, %v2418_v44, 0.0 }
 0x56d   :  { %v2423_v22 = vadd.f32 %v2422_v19, %v2421_v29 }
 0x56e   :  { %v2414_v57 = vmul.f32 %v2387_v27, %v2387_v27  ;;  %v2417_v10 = vmul.f32 %v2390_v46, %v2390_v46 }
 0x570   :  { %v2424_v30 = vsel %vm2274_vm11, %v2414_v57, 0.0  ;;  %v2430_v50 = vsel %vm2274_vm11, %v2417_v10, 0.0 }
 0x571   :  { %v2425_v12 = vadd.f32 %v2424_v30, %v2423_v22 }
 0x573   :  { %v2427_v1 = vadd.f32 %v2426_v33, %v2425_v12 }
 0x575   :  { %v2429_v26 = vadd.f32 %v2428_v42, %v2427_v1 }
 0x577   :  { %v2431_v28 = vadd.f32 %v2430_v50, %v2429_v26 }
 0x579   :  { %v2433_v63 = vadd.f32 %v2432_v7, %v2431_v28 }
 0x57b   :  { %v2435_v52 = vadd.f32 %v2434_v32, %v2433_v63 }
 0x57d   :  { %v2437_v21 = vadd.f32 %v2436_v16, %v2435_v52 }
 0x594   :  { %v2533_v20 = vpop.permute.xlu1 %2532 }
 0x595   :  { %v2535_v60 = vpop.permute.xlu0 %2534 }
 0x596   :  { %v2569_v4 = vsel %vm2568_vm13, %v2533_v20, %v2535_v60 }
 0x597   :  { %v2587_v23 = vmul.f32 %v2569_v4, %v2385_v61 }
 0x598   :  { %v2537_v37 = vpop.permute.xlu1 %2536 }
 0x599   :  { %v2539_v14 = vpop.permute.xlu0 %2538  ;;  %v2596_v22 = vsel %vm2274_vm11, %v2587_v23, 0.0 }
 0x59a   :  { %v2570_v3 = vsel %vm2568_vm13, %v2537_v37, %v2539_v14 }
 0x59b   :  { %v2588_v2 = vmul.f32 %v2570_v3, %v2386_v49 }
 0x59c   :  { %v2541_v34 = vpop.permute.xlu1 %2540 }
 0x59d   :  { %v2543_v9 = vpop.permute.xlu0 %2542  ;;  %v2597_v6 = vsel %vm2274_vm11, %v2588_v2, 0.0 }
 0x59e   :  { %v2571_v62 = vsel %vm2568_vm13, %v2541_v34, %v2543_v9  ;;  %v2598_v24 = vadd.f32 %v2597_v6, %v2596_v22 }
 0x59f   :  { %v2589_v47 = vmul.f32 %v2571_v62, %v2387_v27  ;;  %v2438_v27 = vrot.slane %v2437_v21, 4 }
 0x5a0   :  { %v2545_v53 = vpop.permute.xlu1 %2544 }
 0x5a1   :  { %v2547_v43 = vpop.permute.xlu0 %2546  ;;  %v2599_v49 = vsel %vm2274_vm11, %v2589_v47, 0.0  ;;  %v2439_v37 = vadd.f32 %v2438_v27, %v2437_v21 }
 0x5a2   :  { %v2572_v56 = vsel %vm2568_vm13, %v2545_v53, %v2547_v43  ;;  %v2600_v20 = vadd.f32 %v2599_v49, %v2598_v24 }
 0x5a3   :  { %v2590_v29 = vmul.f32 %v2572_v56, %v2388_v51  ;;  %v2440_v9 = vrot.slane %v2439_v37, 2 }
 0x5a4   :  { %v2549_v38 = vpop.permute.xlu1 %2548 }
 0x5a5   :  { %v2551_v17 = vpop.permute.xlu0 %2550  ;;  %v2601_v12 = vsel %vm2274_vm11, %v2590_v29, 0.0  ;;  %v2441_v3 = vadd.f32 %v2440_v9, %v2439_v37 }
 0x5a6   :  { %v2573_v11 = vsel %vm2568_vm13, %v2549_v38, %v2551_v17  ;;  %v2602_v42 = vadd.f32 %v2601_v12, %v2600_v20 }
 0x5a7   :  { %v2591_v30 = vmul.f32 %v2573_v11, %v2389_v41  ;;  %v2442_v62 = vrot.slane %v2441_v3, 1 }
 0x5a8   :  { %v2553_v8 = vpop.permute.xlu1 %2552 }
 0x5a9   :  { %v2555_v19 = vpop.permute.xlu0 %2554  ;;  %v2603_v51 = vsel %vm2274_vm11, %v2591_v30, 0.0 }
 0x5aa   :  { %v2574_v57 = vsel %vm2568_vm13, %v2553_v8, %v2555_v19  ;;  %v2604_v41 = vadd.f32 %v2603_v51, %v2602_v42 }
 0x5ab   :  { %v2592_v33 = vmul.f32 %v2574_v57, %v2390_v46 }
 0x5ac   :  { %v2557_v61 = vpop.permute.xlu1 %2556 }
 0x5ad   :  { %v2559_v5 = vpop.permute.xlu0 %2558  ;;  %v2605_v26 = vsel %vm2274_vm11, %v2592_v33, 0.0 }
 0x5ae   :  { %v2575_v1 = vsel %vm2568_vm13, %v2557_v61, %v2559_v5  ;;  %v2606_v46 = vadd.f32 %v2605_v26, %v2604_v41 }
 0x5af   :  { %v2593_v60 = vmul.f32 %v2575_v1, %v2391_v54 }
 0x5b0   :  { %v2561_v10 = vpop.permute.xlu1 %2560 }
 0x5b1   :  { %v2563_v14 = vpop.permute.xlu0 %2562  ;;  %v2607_v44 = vsel %vm2274_vm11, %v2593_v60, 0.0 }
 0x5b2   :  { %v2576_v50 = vsel %vm2568_vm13, %v2561_v10, %v2563_v14  ;;  %v2608_v53 = vadd.f32 %v2607_v44, %v2606_v46 }
 0x5b3   :  { %v2594_v34 = vmul.f32 %v2576_v50, %v2392_v35  ;;  %v2443_v35 = vadd.f32 %v2442_v62, %v2441_v3  ;;  %v9022_v3 = vld [vmem:[#allocation12_spill] sm:$0xff] }
 0x5b4   :  { %v2565_v28 = vpop.permute.xlu1 %2564 }
 0x5b5   :  { %v2609_v7 = vsel %vm2274_vm11, %v2594_v34, 0.0  ;;  %v2567_v55 = vpop.permute.xlu0 %2566  ;;  %v2444_v23 = vmul.f32 0.03125, %v2443_v35 }
 0x5b6   :  { %v2577_v54 = vsel %vm2568_vm13, %v2565_v28, %v2567_v55  ;;  %v2610_v43 = vadd.f32 %v2609_v7, %v2608_v53 }
 0x5b7   :  { %v2595_v63 = vmul.f32 %v2577_v54, %v2393_v45  ;;  %v2445_v45 = vadd.f32 1e-05, %v2444_v23 }
 0x5b9   :  { %v2611_v32 = vsel %vm2274_vm11, %v2595_v63, 0.0 }
 0x5ba   :  { %v2612_v13 = vadd.f32 %v2611_v32, %v2610_v43  ;;  %v2623_v56 = vpop.permute.xlu1 %2622  ;;  %v2625_v47 = vpop.permute.xlu0 %2624 }
 0x5bb   :  { %v2626_v11 = vsel %vm2568_vm13, %v2623_v56, %v2625_v47 }
 0x5bc   :  { %v2613_v4 = vrot.slane %v2612_v13, 4  ;;  %v2628_v6 = vmul.f32 %v2626_v11, %v2445_v45  ;;  %v2638_v33 = vadd.f32 %v2626_v11, %v2445_v45 }
 0x5be   :  { %v2614_v38 = vadd.f32 %v2613_v4, %v2612_v13  ;;  %v2751_v19 = vpop.permute.xlu1 %2750  ;;  %v2753_v57 = vpop.permute.xlu0 %2752 }
 0x5c0   :  { %v2615_v52 = vrot.slane %v2614_v38, 2 }
 0x5c2   :  { %v2616_v2 = vadd.f32 %v2615_v52, %v2614_v38  ;;  %v2755_v61 = vpop.permute.xlu1 %2754  ;;  %v2757_v27 = vpop.permute.xlu0 %2756  ;;  %v2786_v38 = vsel %vm2568_vm13, %v2751_v19, %v2753_v57 }
 0x5c3   :  { %v2787_v52 = vsel %vm2568_vm13, %v2755_v61, %v2757_v27 }
 0x5c4   :  { %v2617_v17 = vrot.slane %v2616_v2, 1 }
 0x5c6   :  { %v2618_v16 = vadd.f32 %v2617_v17, %v2616_v2  ;;  %v2759_v51 = vpop.permute.xlu1 %2758  ;;  %v2761_v60 = vpop.permute.xlu0 %2760 }
 0x5c7   :  { %v2788_v35 = vsel %vm2568_vm13, %v2759_v51, %v2761_v60 }
 0x5c8   :  { %v2619_v8 = vmul.f32 0.03125, %v2618_v16 }
 0x5ca   :  { %v2629_v21 = vmul.f32 %v2619_v8, %v2619_v8  ;;  %v2763_v42 = vpop.permute.xlu1 %2762  ;;  %v2765_v10 = vpop.permute.xlu0 %2764  ;;  %v2664_v53 = vsub.f32 0.0, %v2619_v8 }
 0x5cb   :  { %v2789_v11 = vsel %vm2568_vm13, %v2763_v42, %v2765_v10 }
 0x5cc   :  { %v2630_v29 = vsub.f32 %v2628_v6, %v2629_v21 }
 0x5ce   :  { %6424 = vrsqrt.f32 %v2630_v29  ;;  %vm2633_vm14 = vcmp.eq.f32.partialorder %v2630_v29, inf  ;;  %v2636_v30 = vand.u32 2147483648, %v2630_v29  ;;  %vm2635_vm15 = vcmp.eq.f32.partialorder %v2630_v29, 0.0  ;;  %v2767_v41 = vpop.permute.xlu1 %2766  ;;  %v2769_v50 = vpop.permute.xlu0 %2768 }
 0x5cf   :  { %v2790_v8 = vsel %vm2568_vm13, %v2767_v41, %v2769_v50 }
 0x5d2   :  { %v2771_v28 = vpop.permute.xlu1 %2770  ;;  %v2773_v9 = vpop.permute.xlu0 %2772 }
 0x5d3   :  { %v2791_v57 = vsel %vm2568_vm13, %v2771_v28, %v2773_v9 }
 0x5d6   :  { %v2775_v7 = vpop.permute.xlu1 %2774  ;;  %v2777_v55 = vpop.permute.xlu0 %2776 }
 0x5d8   :  { %v6425_v22 = vpop.eup %6424 }
 0x5d9   :  { %v2632_v49 = vmul.f32 %v6425_v22, %v2630_v29 }
 0x5da   :  { %v2779_v4 = vpop.permute.xlu1 %2778  ;;  %v2781_v62 = vpop.permute.xlu0 %2780 }
 0x5db   :  { %v2634_v24 = vsel %vm2633_vm14, %v2630_v29, %v2632_v49 }
 0x5dc   :  { %v2637_v12 = vsel %vm2635_vm15, %v2636_v30, %v2634_v24  ;;  %v2792_v24 = vsel %vm2568_vm13, %v2775_v7, %v2777_v55 }
 0x5dd   :  { %v2639_v5 = vmul.f32 2.0, %v2637_v12  ;;  %v2662_v20 = vadd.f32 %v2637_v12, %v2445_v45  ;;  %2651 = vrot.lane.b32.xlu1 %v2637_v12, %s6502_s0 }
 0x5de   :  { %v2783_v61 = vpop.permute.xlu1 %2782  ;;  %v2785_v27 = vpop.permute.xlu0 %2784 }
 0x5df   :  { %v2640_v1 = vadd.f32 %v2639_v5, %v2638_v33 }
 0x5e1   :  { %6426 = vrsqrt.f32 %v2640_v1  ;;  %2683 = vrot.lane.b32.xlu1 %v7822_v58, %s6502_s0  ;;  %vm2643_vm0 = vcmp.eq.f32.partialorder %v2640_v1, inf  ;;  %v2646_v14 = vand.u32 2147483648, %v2640_v1  ;;  %vm2645_vm1 = vcmp.eq.f32.partialorder %v2640_v1, 0.0 }
 0x5eb   :  { %v6427_v37 = vpop.eup %6426 }
 0x5ec   :  { %v2642_v26 = vmul.f32 %v6427_v37, %v2640_v1 }
 0x5ee   :  { %v2644_v44 = vsel %vm2643_vm0, %v2640_v1, %v2642_v26 }
 0x5ef   :  { %v2647_v34 = vsel %vm2645_vm1, %v2646_v14, %v2644_v44  ;;  %v2794_v14 = vsel %vm2568_vm13, %v2783_v61, %v2785_v27 }
 0x5f0   :  { %v2648_v46 = vmul.f32 %v2647_v34, %v2637_v12 }
 0x5f2   :  { %6428 = vrcp.f32 %v2648_v46 }
 0x5fc   :  { %v6429_v54 = vpop.eup %6428 }
 0x5fd   :  { %v2663_v63 = vmul.f32 %v6429_v54, %v2662_v20  ;;  %v2665_v43 = vmul.f32 %v6429_v54, %v2664_v53  ;;  %2657 = vrot.lane.b32.xlu0 %v6429_v54, %s6502_s0  ;;  %v2793_v20 = vsel %vm2568_vm13, %v2779_v4, %v2781_v62 }
 0x5ff   :  { %v7879_v32 = vrot.slane %v2665_v43, %v9022_v3  ;;  %v2870_v13 = vrot.slane %v2663_v63, %v9022_v3 }
 0x601   :  { %v2880_v2 = vmul.f32 %v7879_v32, %v7822_v58  ;;  %v2804_v17 = vmul.f32 %v2786_v38, %v7879_v32  ;;  %v2871_v56 = vmul.f32 %v2870_v13, %v2786_v38  ;;  %v2881_v23 = vmul.f32 %v7879_v32, %v7826_v31  ;;  %2685 = vrot.lane.b32.xlu0 %v7826_v31, %s6502_s0 }
 0x602   :  { %v2872_v47 = vmul.f32 %v2870_v13, %v2787_v52  ;;  %v2882_v16 = vmul.f32 %v7879_v32, %v7744_v36  ;;  %v2805_v58 = vmul.f32 %v2787_v52, %v7879_v32  ;;  %v2873_v21 = vmul.f32 %v2870_v13, %v2788_v35 }
 0x603   :  { %v7896_v45 = vadd.f32 %v2880_v2, %v2871_v56  ;;  %v2883_v6 = vmul.f32 %v7879_v32, %v7750_v0  ;;  %2822 = vrot.lane.b32.xlu1 %v2804_v17, %s6502_s0  ;;  %v2874_v31 = vmul.f32 %v2870_v13, %v2789_v11  ;;  %v2884_v19 = vmul.f32 %v7879_v32, %v7754_v39 }
 0x604   :  { %v7902_v29 = vadd.f32 %v2881_v23, %v2872_v47  ;;  %v7907_v22 = vadd.f32 %v2882_v16, %v2873_v21  ;;  %v2875_v49 = vmul.f32 %v2870_v13, %v2790_v8  ;;  %v2885_v30 = vmul.f32 %v7879_v32, %v7759_v18 }
 0x605   :  { %2824 = vrot.lane.b32.xlu0 %v2805_v58, %s6502_s0  ;;  %v7913_v12 = vadd.f32 %v2883_v6, %v2874_v31  ;;  %v2876_v33 = vmul.f32 %v2870_v13, %v2791_v57  ;;  %v2886_v5 = vmul.f32 %v7879_v32, %v7764_v59  ;;  %v2806_v1 = vmul.f32 %v2788_v35, %v7879_v32 }
 0x606   :  { %v7919_v51 = vadd.f32 %v2884_v19, %v2875_v49  ;;  %v2877_v60 = vmul.f32 %v2870_v13, %v2792_v24  ;;  %v2887_v42 = vmul.f32 %v7879_v32, %v7770_v15  ;;  %v2878_v37 = vmul.f32 %v2870_v13, %v2793_v20 }
 0x607   :  { %2687 = vrot.lane.b32.xlu1 %v7744_v36, %s6502_s0  ;;  %v7925_v10 = vadd.f32 %v2885_v30, %v2876_v33  ;;  %v2888_v26 = vmul.f32 %v7879_v32, %v7600_v25  ;;  %v2879_v50 = vmul.f32 %v2870_v13, %v2794_v14  ;;  %v2807_v34 = vmul.f32 %v2789_v11, %v7879_v32 }
 0x608   :  { %v7930_v41 = vadd.f32 %v2886_v5, %v2877_v60  ;;  %v7933_v44 = vadd.f32 %v2887_v42, %v2878_v37  ;;  %v2808_v36 = vmul.f32 %v2790_v8, %v7879_v32  ;;  %v2809_v28 = vmul.f32 %v2791_v57, %v7879_v32 }
 0x609   :  { %2826 = vrot.lane.b32.xlu0 %v2806_v1, %s6502_s0  ;;  %v7936_v46 = vadd.f32 %v2888_v26, %v2879_v50  ;;  %v2810_v9 = vmul.f32 %v2792_v24, %v7879_v32 }
 0x60b   :  { %2689 = vrot.lane.b32.xlu1 %v7750_v0, %s6502_s0  ;;  %v2811_v0 = vmul.f32 %v2793_v20, %v7879_v32 }
 0x60d   :  { %2828 = vrot.lane.b32.xlu0 %v2807_v34, %s6502_s0 }
 0x60f   :  { %2691 = vrot.lane.b32.xlu1 %v7754_v39, %s6502_s0  ;;  %v2812_v39 = vmul.f32 %v2794_v14, %v7879_v32 }
 0x611   :  { %2830 = vrot.lane.b32.xlu0 %v2808_v36, %s6502_s0 }
 0x613   :  { %2693 = vrot.lane.b32.xlu1 %v7759_v18, %s6502_s0 }
 0x615   :  { %2832 = vrot.lane.b32.xlu0 %v2809_v28, %s6502_s0 }
 0x617   :  { %2695 = vrot.lane.b32.xlu1 %v7764_v59, %s6502_s0 }
 0x619   :  { %2834 = vrot.lane.b32.xlu0 %v2810_v9, %s6502_s0 }
 0x61b   :  { %2697 = vrot.lane.b32.xlu1 %v7770_v15, %s6502_s0 }
 0x61d   :  { %2836 = vrot.lane.b32.xlu0 %v2811_v0, %s6502_s0 }
 0x61f   :  { %2699 = vrot.lane.b32.xlu1 %v7600_v25, %s6502_s0 }
 0x621   :  { %2838 = vrot.lane.b32.xlu0 %v2812_v39, %s6502_s0 }
 0x64f   :  { %v2652_v18 = vpop.permute.xlu1 %2651 }
 0x650   :  { %v2654_v7 = vadd.f32 %v2652_v18, %v7776_v48  ;;  %v2655_v59 = vadd.f32 %v2652_v18, %v7778_v40 }
 0x653   :  { %v2684_v63 = vpop.permute.xlu1 %2683 }
 0x66f   :  { %v2658_v55 = vpop.permute.xlu0 %2657 }
 0x670   :  { %v2660_v53 = vmul.f32 %v2658_v55, %v2654_v7  ;;  %v2661_v54 = vmul.f32 %v2658_v55, %v2655_v59 }
 0x672   :  { %v7964_v15 = vrot.slane %v2660_v53, %v9022_v3  ;;  %v7967_v43 = vrot.slane %v2661_v54, %v9022_v3  ;;  %v3186_v54 = vld [vmem:[#allocation7 + $0xc8] sm:$0xff] }
 0x673   :  { %v2686_v32 = vpop.permute.xlu0 %2685 }
 0x674   :  { %v2710_v25 = vmul.f32 %v2684_v63, %v7964_v15  ;;  %v2711_v13 = vmul.f32 %v2684_v63, %v7967_v43  ;;  %v2712_v40 = vmul.f32 %v2686_v32, %v7964_v15  ;;  %v2713_v52 = vmul.f32 %v2686_v32, %v7967_v43  ;;  %v3187_v63 = vld [vmem:[#allocation7 + $0xd0] sm:$0xff]  ;;  %v3188_v32 = vld [vmem:[#allocation7 + $0xd8] sm:$0xff] }
 0x675   :  { %v2823_v4 = vpop.permute.xlu1 %2822 }
 0x676   :  { %v2849_v62 = vadd.f32 %v2823_v4, %v2710_v25  ;;  %v2850_v48 = vadd.f32 %v2823_v4, %v2711_v13  ;;  %v9003_v13 = vmov 0.0|0.0   ;;  %v5983_v4 = vpack.c.bf16 %v3187_v63, %v3186_v54  ;;  %v3204_v63 = vld [vmem:[#allocation7 + $0x158] sm:$0xff] }
 0x677   :  { %v2825_v38 = vpop.permute.xlu0 %2824  ;;  %5982 = vmatprep.subr.bf16.mxu1 %v9003_v13  ;;  %6090 = vmatprep.subr.bf16.mxu0 %v9003_v13 }
 0x678   :  { %2927 = vrot.lane.b32.xlu0 %v2850_v48, %s6501_s8  ;;  %2925 = vrot.lane.b32.xlu1 %v2849_v62, %s6501_s8  ;;  %v2851_v2 = vadd.f32 %v2825_v38, %v2712_v40  ;;  %v2852_v17 = vadd.f32 %v2825_v38, %v2713_v52  ;;  %v3189_v62 = vld [vmem:[#allocation7 + $0xe0] sm:$0xff]  ;;  %v3776_v48 = vld [vmem:[#allocation7 + $0x258] sm:$0xff]  ;;  %v3779_v52 = vld [vmem:[#allocation7 + $0x270] sm:$0xff] }
 0x679   :  { %v2688_v35 = vpop.permute.xlu1 %2687  ;;  %v3777_v38 = vld [vmem:[#allocation7 + $0x260] sm:$0xff]  ;;  %5984 = vmatpush1.bf16.msra.mxu1 %v5983_v4 }
 0x67a   :  { %v2714_v56 = vmul.f32 %v2688_v35, %v7964_v15  ;;  %v2715_v23 = vmul.f32 %v2688_v35, %v7967_v43  ;;  %v6091_v40 = vpack.c.bf16 %v3777_v38, %v3776_v48  ;;  %5985 = vmatprep.subr.bf16.mxu1 %v9003_v13  ;;  %v8027_v48 = vld [vmem:[%s8986_s9 + $0x2] ss:$0 sm:$0xff] }
 0x67b   :  { %v2827_v47 = vpop.permute.xlu0 %2826 }
 0x67c   :  { %2931 = vrot.lane.b32.xlu0 %v2852_v17, %s6501_s8  ;;  %2929 = vrot.lane.b32.xlu1 %v2851_v2, %s6501_s8  ;;  %v2853_v11 = vadd.f32 %v2827_v47, %v2714_v56  ;;  %v2854_v8 = vadd.f32 %v2827_v47, %v2715_v23  ;;  %v3190_v17 = vld [vmem:[#allocation7 + $0xe8] sm:$0xff]  ;;  %v3191_v56 = vld [vmem:[#allocation7 + $0xf0] sm:$0xff]  ;;  %v3780_v47 = vld [vmem:[#allocation7 + $0x278] sm:$0xff] }
 0x67d   :  { %v2690_v16 = vpop.permute.xlu1 %2689  ;;  %6092 = vmatpush1.bf16.msra.mxu0 %v6091_v40 }
 0x67e   :  { %v2716_v58 = vmul.f32 %v2690_v16, %v7964_v15  ;;  %v2717_v21 = vmul.f32 %v2690_v16, %v7967_v43  ;;  %v3781_v16 = vld [vmem:[#allocation7 + $0x280] sm:$0xff]  ;;  %6093 = vmatprep.subr.bf16.mxu0 %v9003_v13 }
 0x67f   :  { %v2829_v6 = vpop.permute.xlu0 %2828 }
 0x680   :  { %2935 = vrot.lane.b32.xlu0 %v2854_v8, %s6501_s8  ;;  %2933 = vrot.lane.b32.xlu1 %v2853_v11, %s6501_s8  ;;  %v2855_v19 = vadd.f32 %v2829_v6, %v2716_v58  ;;  %v2856_v57 = vadd.f32 %v2829_v6, %v2717_v21  ;;  %v5989_v11 = vpack.c.bf16 %v3191_v56, %v3190_v17  ;;  %v3192_v8 = vld [vmem:[#allocation7 + $0xf8] sm:$0xff]  ;;  %v3193_v58 = vld [vmem:[#allocation7 + $0x100] sm:$0xff]  ;;  %v3782_v6 = vld [vmem:[#allocation7 + $0x288] sm:$0xff] }
 0x681   :  { %v2692_v31 = vpop.permute.xlu1 %2691  ;;  %v6097_v21 = vpack.c.bf16 %v3781_v16, %v3780_v47  ;;  %v3794_v17 = vld [vmem:[#allocation7 + $0x2e8] sm:$0xff]  ;;  %v2992_v56 = vmul.f32 %v8027_v48, %v7896_v45  ;;  %v3795_v16 = vld [vmem:[#allocation7 + $0x2f0] sm:$0xff] }
 0x682   :  { %v2718_v49 = vmul.f32 %v2692_v31, %v7964_v15  ;;  %v2719_v30 = vmul.f32 %v2692_v31, %v7967_v43  ;;  %v3783_v31 = vld [vmem:[#allocation7 + $0x290] sm:$0xff] }
 0x683   :  { %v2831_v24 = vpop.permute.xlu0 %2830 }
 0x684   :  { %2939 = vrot.lane.b32.xlu0 %v2856_v57, %s6501_s8  ;;  %2937 = vrot.lane.b32.xlu1 %v2855_v19, %s6501_s8  ;;  %v2857_v27 = vadd.f32 %v2831_v24, %v2718_v49  ;;  %v2858_v33 = vadd.f32 %v2831_v24, %v2719_v30  ;;  %v5992_v19 = vpack.c.bf16 %v3193_v58, %v3192_v8  ;;  %v3194_v57 = vld [vmem:[#allocation7 + $0x108] sm:$0xff]  ;;  %v3195_v49 = vld [vmem:[#allocation7 + $0x110] sm:$0xff]  ;;  %v3784_v24 = vld [vmem:[#allocation7 + $0x298] sm:$0xff] }
 0x685   :  { %v2694_v61 = vpop.permute.xlu1 %2693  ;;  %v6100_v30 = vpack.c.bf16 %v3783_v31, %v3782_v6  ;;  %v8051_v6 = vld [vmem:[%s8987_s10 + $0x1] ss:$0 sm:$0xff] }
 0x686   :  { %v2720_v5 = vmul.f32 %v2694_v61, %v7964_v15  ;;  %v2721_v20 = vmul.f32 %v2694_v61, %v7967_v43  ;;  %v3785_v61 = vld [vmem:[#allocation7 + $0x2a0] sm:$0xff] }
 0x687   :  { %v2833_v1 = vpop.permute.xlu0 %2832 }
 0x688   :  { %2943 = vrot.lane.b32.xlu0 %v2858_v33, %s6501_s8  ;;  %2941 = vrot.lane.b32.xlu1 %v2857_v27, %s6501_s8  ;;  %v2859_v42 = vadd.f32 %v2833_v1, %v2720_v5  ;;  %v2860_v37 = vadd.f32 %v2833_v1, %v2721_v20  ;;  %v5995_v27 = vpack.c.bf16 %v3195_v49, %v3194_v57  ;;  %v3196_v33 = vld [vmem:[#allocation7 + $0x118] sm:$0xff]  ;;  %v3197_v5 = vld [vmem:[#allocation7 + $0x120] sm:$0xff]  ;;  %v3786_v1 = vld [vmem:[#allocation7 + $0x2a8] sm:$0xff] }
 0x689   :  { %v2696_v60 = vpop.permute.xlu1 %2695  ;;  %v6103_v20 = vpack.c.bf16 %v3785_v61, %v3784_v24  ;;  %v3796_v24 = vld [vmem:[#allocation7 + $0x2f8] sm:$0xff]  ;;  %v2993_v61 = vmul.f32 %v8027_v48, %v7902_v29 }
 0x68a   :  { %v2722_v26 = vmul.f32 %v2696_v60, %v7964_v15  ;;  %v2723_v14 = vmul.f32 %v2696_v60, %v7967_v43  ;;  %v3787_v60 = vld [vmem:[#allocation7 + $0x2b0] sm:$0xff] }
 0x68b   :  { %v2835_v50 = vpop.permute.xlu0 %2834 }
 0x68c   :  { %2947 = vrot.lane.b32.xlu0 %v2860_v37, %s6501_s8  ;;  %2945 = vrot.lane.b32.xlu1 %v2859_v42, %s6501_s8  ;;  %v2861_v36 = vadd.f32 %v2835_v50, %v2722_v26  ;;  %v2862_v28 = vadd.f32 %v2835_v50, %v2723_v14  ;;  %v5998_v42 = vpack.c.bf16 %v3197_v5, %v3196_v33  ;;  %v3198_v37 = vld [vmem:[#allocation7 + $0x128] sm:$0xff]  ;;  %v3199_v26 = vld [vmem:[#allocation7 + $0x130] sm:$0xff]  ;;  %v3788_v50 = vld [vmem:[#allocation7 + $0x2b8] sm:$0xff] }
 0x68d   :  { %v2698_v34 = vpop.permute.xlu1 %2697  ;;  %v6106_v14 = vpack.c.bf16 %v3787_v60, %v3786_v1  ;;  %v3797_v5 = vld [vmem:[#allocation7 + $0x300] sm:$0xff] }
 0x68e   :  { %v2724_v9 = vmul.f32 %v2698_v34, %v7964_v15  ;;  %v2725_v0 = vmul.f32 %v2698_v34, %v7967_v43  ;;  %v3789_v34 = vld [vmem:[#allocation7 + $0x2c0] sm:$0xff] }
 0x68f   :  { %v2837_v39 = vpop.permute.xlu0 %2836 }
 0x690   :  { %2951 = vrot.lane.b32.xlu0 %v2862_v28, %s6501_s8  ;;  %2949 = vrot.lane.b32.xlu1 %v2861_v36, %s6501_s8  ;;  %v2863_v18 = vadd.f32 %v2837_v39, %v2724_v9  ;;  %v2864_v59 = vadd.f32 %v2837_v39, %v2725_v0  ;;  %v6001_v36 = vpack.c.bf16 %v3199_v26, %v3198_v37  ;;  %v3200_v28 = vld [vmem:[#allocation7 + $0x138] sm:$0xff]  ;;  %v3201_v9 = vld [vmem:[#allocation7 + $0x140] sm:$0xff]  ;;  %v3790_v39 = vld [vmem:[#allocation7 + $0x2c8] sm:$0xff] }
 0x691   :  { %v2700_v7 = vpop.permute.xlu1 %2699  ;;  %v6109_v0 = vpack.c.bf16 %v3789_v34, %v3788_v50  ;;  %v6121_v37 = vpack.c.bf16 %v3797_v5, %v3796_v24 }
 0x692   :  { %v2726_v55 = vmul.f32 %v2700_v7, %v7964_v15  ;;  %v2727_v53 = vmul.f32 %v2700_v7, %v7967_v43  ;;  %v3778_v15 = vld [vmem:[#allocation7 + $0x268] sm:$0xff]  ;;  %v5986_v43 = vpack.c.bf16 %v3189_v62, %v3188_v32  ;;  %v6004_v7 = vpack.c.bf16 %v3201_v9, %v3200_v28  ;;  %v3205_v32 = vld [vmem:[#allocation7 + $0x160] sm:$0xff] }
 0x693   :  { %v2839_v25 = vpop.permute.xlu0 %2838  ;;  %v6094_v23 = vpack.c.bf16 %v3779_v52, %v3778_v15  ;;  %v6010_v4 = vpack.c.bf16 %v3205_v32, %v3204_v63  ;;  %v3793_v62 = vld [vmem:[#allocation7 + $0x2e0] sm:$0xff]  ;;  %v3210_v28 = vld [vmem:[#allocation7 + $0x188] sm:$0xff] }
 0x694   :  { %2955 = vrot.lane.b32.xlu0 %v2864_v59, %s6501_s8  ;;  %2953 = vrot.lane.b32.xlu1 %v2863_v18, %s6501_s8  ;;  %v2865_v35 = vadd.f32 %v2839_v25, %v2726_v55  ;;  %v2866_v2 = vadd.f32 %v2839_v25, %v2727_v53  ;;  %v3791_v18 = vld [vmem:[#allocation7 + $0x2d0] sm:$0xff]  ;;  %v3202_v59 = vld [vmem:[#allocation7 + $0x148] sm:$0xff]  ;;  %v3792_v25 = vld [vmem:[#allocation7 + $0x2d8] sm:$0xff] }
 0x695   :  { %5987 = vmatpush1.bf16.msra.mxu1 %v5986_v43  ;;  %6095 = vmatpush1.bf16.msra.mxu0 %v6094_v23  ;;  %v3203_v55 = vld [vmem:[#allocation7 + $0x150] sm:$0xff]  ;;  %v6112_v53 = vpack.c.bf16 %v3791_v18, %v3790_v39  ;;  %v6115_v38 = vpack.c.bf16 %v3793_v62, %v3792_v25  ;;  %v8032_v15 = vld [vmem:[%s8986_s9] ss:$0 sm:$0xff]  ;;  %v8037_v43 = vld [vmem:[%s8986_s9 + $0x1] ss:$0 sm:$0xff] }
 0x696   :  { %5988 = vmatprep.subr.bf16.mxu1 %v9003_v13  ;;  %6096 = vmatprep.subr.bf16.mxu0 %v9003_v13  ;;  %v6007_v54 = vpack.c.bf16 %v3203_v55, %v3202_v59  ;;  %v3037_v1 = vmul.f32 %v8037_v43, %v7902_v29  ;;  %v3798_v9 = vld [vmem:[#allocation7 + $0x308] sm:$0xff]  ;;  %v3799_v29 = vld [vmem:[#allocation7 + $0x310] sm:$0xff]  ;;  %v3038_v59 = vmul.f32 %v8037_v43, %v7907_v22 }
 0x697   :  { %v6124_v18 = vpack.c.bf16 %v3799_v29, %v3798_v9  ;;  %v3041_v24 = vmul.f32 %v8037_v43, %v7925_v10 }
 0x698   :  { %2959 = vrot.lane.b32.xlu0 %v2866_v2, %s6501_s8  ;;  %2957 = vrot.lane.b32.xlu1 %v2865_v35, %s6501_s8  ;;  %v3206_v35 = vld [vmem:[#allocation7 + $0x168] sm:$0xff]  ;;  %v3207_v2 = vld [vmem:[#allocation7 + $0x170] sm:$0xff] }
 0x699   :  { %5990 = vmatpush1.bf16.msra.mxu1 %v5989_v11  ;;  %6098 = vmatpush1.bf16.msra.mxu0 %v6097_v21  ;;  %v6013_v47 = vpack.c.bf16 %v3207_v2, %v3206_v35  ;;  %v3036_v11 = vmul.f32 %v8037_v43, %v7896_v45  ;;  %v6118_v21 = vpack.c.bf16 %v3795_v16, %v3794_v17  ;;  %v3208_v45 = vld [vmem:[#allocation7 + $0x178] sm:$0xff] }
 0x69a   :  { %5991 = vmatprep.subr.bf16.mxu1 %v9003_v13  ;;  %6099 = vmatprep.subr.bf16.mxu0 %v9003_v13  ;;  %v3800_v35 = vld [vmem:[#allocation7 + $0x318] sm:$0xff] }
 0x69d   :  { %5993 = vmatpush1.bf16.msra.mxu1 %v5992_v19  ;;  %6101 = vmatpush1.bf16.msra.mxu0 %v6100_v30  ;;  %v3209_v30 = vld [vmem:[#allocation7 + $0x180] sm:$0xff] }
 0x69e   :  { %5994 = vmatprep.subr.bf16.mxu1 %v9003_v13  ;;  %6102 = vmatprep.subr.bf16.mxu0 %v9003_v13  ;;  %v6016_v33 = vpack.c.bf16 %v3209_v30, %v3208_v45  ;;  %v2997_v45 = vmul.f32 %v8027_v48, %v7925_v10  ;;  %v3042_v10 = vmul.f32 %v8037_v43, %v7930_v41 }
 0x6a1   :  { %5996 = vmatpush1.bf16.msra.mxu1 %v5995_v27  ;;  %6104 = vmatpush1.bf16.msra.mxu0 %v6103_v20 }
 0x6a2   :  { %5997 = vmatprep.subr.bf16.mxu1 %v9003_v13  ;;  %6105 = vmatprep.subr.bf16.mxu0 %v9003_v13 }
 0x6a5   :  { %5999 = vmatpush1.bf16.msra.mxu1 %v5998_v42  ;;  %6107 = vmatpush1.bf16.msra.mxu0 %v6106_v14 }
 0x6a6   :  { %6000 = vmatprep.subr.bf16.mxu1 %v9003_v13  ;;  %6108 = vmatprep.subr.bf16.mxu0 %v9003_v13 }
 0x6a9   :  { %6002 = vmatpush1.bf16.msra.mxu1 %v6001_v36  ;;  %6110 = vmatpush1.bf16.msra.mxu0 %v6109_v0  ;;  %v8068_v36 = vld [vmem:[#allocation3 + $0x90] sm:$0xff]  ;;  %v2994_v0 = vmul.f32 %v8027_v48, %v7907_v22 }
 0x6aa   :  { %6003 = vmatprep.subr.bf16.mxu1 %v9003_v13  ;;  %6111 = vmatprep.subr.bf16.mxu0 %v9003_v13 }
 0x6ad   :  { %6005 = vmatpush1.bf16.msra.mxu1 %v6004_v7  ;;  %6113 = vmatpush1.bf16.msra.mxu0 %v6112_v53 }
 0x6ae   :  { %6006 = vmatprep.subr.bf16.mxu1 %v9003_v13  ;;  %6114 = vmatprep.subr.bf16.mxu0 %v9003_v13 }
 0x6b1   :  { %6008 = vmatpush1.bf16.msra.mxu1 %v6007_v54  ;;  %6116 = vmatpush1.bf16.msra.mxu0 %v6115_v38  ;;  %v3039_v38 = vmul.f32 %v8037_v43, %v7913_v12 }
 0x6b2   :  { %6009 = vmatprep.subr.bf16.mxu1 %v9003_v13  ;;  %6117 = vmatprep.subr.bf16.mxu0 %v9003_v13 }
 0x6b5   :  { %6011 = vmatpush1.bf16.msra.mxu1 %v6010_v4  ;;  %6119 = vmatpush1.bf16.msra.mxu0 %v6118_v21  ;;  %v2995_v4 = vmul.f32 %v8027_v48, %v7913_v12 }
 0x6b6   :  { %6012 = vmatprep.subr.bf16.mxu1 %v9003_v13  ;;  %6120 = vmatprep.subr.bf16.mxu0 %v9003_v13 }
 0x6b9   :  { %6014 = vmatpush1.bf16.msra.mxu1 %v6013_v47  ;;  %6122 = vmatpush1.bf16.msra.mxu0 %v6121_v37  ;;  %v2996_v47 = vmul.f32 %v8027_v48, %v7919_v51 }
 0x6ba   :  { %6015 = vmatprep.subr.bf16.mxu1 %v9003_v13  ;;  %6123 = vmatprep.subr.bf16.mxu0 %v9003_v13 }
 0x6bd   :  { %6017 = vmatpush1.bf16.msra.mxu1 %v6016_v33  ;;  %6125 = vmatpush1.bf16.msra.mxu0 %v6124_v18 }
 0x6be   :  { %3345 = vmatprep.subr.mxu1 %v8068_v36  ;;  %3934 = vmatprep.subr.mxu0 %v8068_v36 }
 0x6c1   :  { %3346 = vmatpush1.msra.mxu1 %v3210_v28  ;;  %3935 = vmatpush1.msra.mxu0 %v3800_v35 }
 0x6c2   :  { %6018 = vmatprep.subr.bf16.mxu1 %v9003_v13  ;;  %6162 = vmatprep.subr.bf16.mxu0 %v9003_v13 }
 0x6ea   :  { %v2926_v40 = vpop.permute.xlu1 %2925  ;;  %v2928_v52 = vpop.permute.xlu0 %2927 }
 0x6eb   :  { %v2961_v23 = vsel %vm2568_vm13, %v2926_v40, %v2928_v52 }
 0x6ec   :  { %v2979_v8 = vmul.f32 %v8032_v15, %v2961_v23  ;;  %v3023_v58 = vmul.f32 %v8027_v48, %v2961_v23 }
 0x6ee   :  { %v8053_v31 = vadd.f32 %v2992_v56, %v2979_v8  ;;  %v3045_v19 = vadd.f32 %v3036_v11, %v3023_v58  ;;  %v2930_v57 = vpop.permute.xlu1 %2929  ;;  %v2932_v49 = vpop.permute.xlu0 %2931  ;;  %v3040_v11 = vmul.f32 %v8037_v43, %v7919_v51 }
 0x6ef   :  { %v2962_v27 = vsel %vm2568_vm13, %v2930_v57, %v2932_v49 }
 0x6f0   :  { %v3058_v20 = vadd.f32 %v8051_v6, %v3045_v19  ;;  %v2980_v60 = vmul.f32 %v8032_v15, %v2962_v27  ;;  %v3024_v42 = vmul.f32 %v8027_v48, %v2962_v27 }
 0x6f2   :  { %v8065_v26 = vadd.f32 %v2993_v61, %v2980_v60  ;;  %v3046_v14 = vadd.f32 %v3037_v1, %v3024_v42  ;;  %v2934_v50 = vpop.permute.xlu1 %2933  ;;  %3076 = vrot.lane.b32.xlu1 %v3058_v20, %s6502_s0  ;;  %v2936_v34 = vpop.permute.xlu0 %2935  ;;  %v2998_v60 = vmul.f32 %v8027_v48, %v7930_v41  ;;  %v3043_v41 = vmul.f32 %v8037_v43, %v7933_v44 }
 0x6f3   :  { %v2963_v39 = vsel %vm2568_vm13, %v2934_v50, %v2936_v34 }
 0x6f4   :  { %v3059_v7 = vadd.f32 %v8051_v6, %v3046_v14  ;;  %v2981_v55 = vmul.f32 %v8032_v15, %v2963_v39  ;;  %v3025_v53 = vmul.f32 %v8027_v48, %v2963_v39 }
 0x6f6   :  { %v8080_v54 = vadd.f32 %v2994_v0, %v2981_v55  ;;  %v3047_v63 = vadd.f32 %v3038_v59, %v3025_v53  ;;  %v2938_v32 = vpop.permute.xlu1 %2937  ;;  %3078 = vrot.lane.b32.xlu0 %v3059_v7, %s6502_s0  ;;  %v2940_v25 = vpop.permute.xlu0 %2939  ;;  %v2999_v0 = vmul.f32 %v8027_v48, %v7933_v44  ;;  %v3044_v44 = vmul.f32 %v8037_v43, %v7936_v46 }
 0x6f7   :  { %v2964_v22 = vsel %vm2568_vm13, %v2938_v32, %v2940_v25  ;;  %v3000_v25 = vmul.f32 %v8027_v48, %v7936_v46 }
 0x6f8   :  { %v3060_v62 = vadd.f32 %v8051_v6, %v3047_v63  ;;  %v2982_v40 = vmul.f32 %v8032_v15, %v2964_v22  ;;  %v3026_v52 = vmul.f32 %v8027_v48, %v2964_v22 }
 0x6fa   :  { %v8093_v2 = vadd.f32 %v2995_v4, %v2982_v40  ;;  %v3048_v17 = vadd.f32 %v3039_v38, %v3026_v52  ;;  %v2942_v56 = vpop.permute.xlu1 %2941  ;;  %3080 = vrot.lane.b32.xlu1 %v3060_v62, %s6502_s0  ;;  %v2944_v23 = vpop.permute.xlu0 %2943 }
 0x6fb   :  { %v2965_v16 = vsel %vm2568_vm13, %v2942_v56, %v2944_v23 }
 0x6fc   :  { %v3061_v12 = vadd.f32 %v8051_v6, %v3048_v17  ;;  %v2983_v8 = vmul.f32 %v8032_v15, %v2965_v16  ;;  %v3027_v58 = vmul.f32 %v8027_v48, %v2965_v16  ;;  %v8157_v17 = vld [vmem:[%s8987_s10] ss:$0 sm:$0xff] }
 0x6fd   :  { %v3014_v46 = vadd.f32 %v8157_v17, %v8053_v31  ;;  %v3015_v43 = vadd.f32 %v8157_v17, %v8065_v26  ;;  %v3016_v31 = vadd.f32 %v8157_v17, %v8080_v54 }
 0x6fe   :  { %v8105_v21 = vadd.f32 %v2996_v47, %v2983_v8  ;;  %v3049_v19 = vadd.f32 %v3040_v11, %v3027_v58  ;;  %v2946_v57 = vpop.permute.xlu1 %2945  ;;  %3082 = vrot.lane.b32.xlu0 %v3061_v12, %s6502_s0  ;;  %v2948_v49 = vpop.permute.xlu0 %2947  ;;  %v3017_v12 = vadd.f32 %v8157_v17, %v8093_v2  ;;  %v3156_v11 = vld [vmem:[#allocation7] sm:$0xff]  ;;  %v3157_v8 = vld [vmem:[#allocation7 + $0x8] sm:$0xff] }
 0x6ff   :  { %v2966_v30 = vsel %vm2568_vm13, %v2946_v57, %v2948_v49 }
 0x700   :  { %v3062_v51 = vadd.f32 %v8051_v6, %v3049_v19  ;;  %v2984_v61 = vmul.f32 %v8032_v15, %v2966_v30  ;;  %v3028_v27 = vmul.f32 %v8027_v48, %v2966_v30 }
 0x702   :  { %v8116_v33 = vadd.f32 %v2997_v45, %v2984_v61  ;;  %v3050_v5 = vadd.f32 %v3041_v24, %v3028_v27  ;;  %v2950_v20 = vpop.permute.xlu1 %2949  ;;  %3084 = vrot.lane.b32.xlu1 %v3062_v51, %s6502_s0  ;;  %v2952_v1 = vpop.permute.xlu0 %2951  ;;  %v6019_v24 = vpack.c.bf16 %v3157_v8, %v3156_v11  ;;  %v3158_v61 = vld [vmem:[#allocation7 + $0x10] sm:$0xff]  ;;  %v3018_v27 = vadd.f32 %v8157_v17, %v8105_v21  ;;  %v3163_v8 = vld [vmem:[#allocation7 + $0x38] sm:$0xff] }
 0x703   :  { %v2967_v42 = vsel %vm2568_vm13, %v2950_v20, %v2952_v1  ;;  %v3159_v20 = vld [vmem:[#allocation7 + $0x18] sm:$0xff]  ;;  %v4226_v1 = vld [vmem:[#allocation7 + $0x3e8] sm:$0xff] }
 0x704   :  { %v3063_v37 = vadd.f32 %v8051_v6, %v3050_v5  ;;  %v2985_v14 = vmul.f32 %v8032_v15, %v2967_v42  ;;  %v3029_v50 = vmul.f32 %v8027_v48, %v2967_v42 }
 0x706   :  { %v8127_v34 = vadd.f32 %v2998_v60, %v2985_v14  ;;  %v3051_v28 = vadd.f32 %v3042_v10, %v3029_v50  ;;  %v2954_v9 = vpop.permute.xlu1 %2953  ;;  %3086 = vrot.lane.b32.xlu0 %v3063_v37, %s6502_s0  ;;  %v2956_v29 = vpop.permute.xlu0 %2955  ;;  %v4227_v60 = vld [vmem:[#allocation7 + $0x3f0] sm:$0xff] }
 0x707   :  { %v2968_v39 = vsel %vm2568_vm13, %v2954_v9, %v2956_v29 }
 0x708   :  { %v3064_v18 = vadd.f32 %v8051_v6, %v3051_v28  ;;  %v2986_v7 = vmul.f32 %v8032_v15, %v2968_v39  ;;  %v3030_v59 = vmul.f32 %v8027_v48, %v2968_v39  ;;  %v6022_v39 = vpack.c.bf16 %v3159_v20, %v3158_v61 }
 0x70a   :  { %v8138_v55 = vadd.f32 %v2999_v0, %v2986_v7  ;;  %v3052_v53 = vadd.f32 %v3043_v41, %v3030_v59  ;;  %v2958_v63 = vpop.permute.xlu1 %2957  ;;  %3088 = vrot.lane.b32.xlu1 %v3064_v18, %s6502_s0  ;;  %v2960_v32 = vpop.permute.xlu0 %2959  ;;  %v6163_v41 = vpack.c.bf16 %v4227_v60, %v4226_v1  ;;  %v3160_v7 = vld [vmem:[#allocation7 + $0x20] sm:$0xff] }
 0x70b   :  { %v2969_v4 = vsel %vm2568_vm13, %v2958_v63, %v2960_v32  ;;  %v3019_v63 = vadd.f32 %v8157_v17, %v8116_v33  ;;  %v3161_v32 = vld [vmem:[#allocation7 + $0x28] sm:$0xff] }
 0x70c   :  { %v3065_v22 = vadd.f32 %v8051_v6, %v3052_v53  ;;  %v2987_v62 = vmul.f32 %v8032_v15, %v2969_v4  ;;  %v3031_v38 = vmul.f32 %v8027_v48, %v2969_v4  ;;  %v4229_v4 = vld [vmem:[#allocation7 + $0x400] sm:$0xff]  ;;  %v3021_v1 = vadd.f32 %v8157_v17, %v8138_v55 }
 0x70e   :  { %v8149_v40 = vadd.f32 %v3000_v25, %v2987_v62  ;;  %v3053_v52 = vadd.f32 %v3044_v44, %v3031_v38  ;;  %3090 = vrot.lane.b32.xlu0 %v3065_v22, %s6502_s0  ;;  %v4228_v25 = vld [vmem:[#allocation7 + $0x3f8] sm:$0xff] }
 0x710   :  { %v3066_v35 = vadd.f32 %v8051_v6, %v3053_v52 }
 0x712   :  { %3092 = vrot.lane.b32.xlu1 %v3066_v35, %s6502_s0 }
 0x764   :  { %v3077_v15 = vpop.permute.xlu1 %3076 }
 0x765   :  { %v8162_v48 = vsel %vm2274_vm11, %v3014_v46, %v3077_v15  ;;  %3113 = vst.msk [vmem:[#allocation3 + $0x8] sm:$0xff] %vm2332_vm10, %v3077_v15 }
 0x766   :  { %3112 = vst [vmem:[#allocation3] sm:$0xff] %v8162_v48 }
 0x768   :  { %v3079_v6 = vpop.permute.xlu0 %3078 }
 0x769   :  { %v8169_v56 = vsel %vm2274_vm11, %v3015_v43, %v3079_v6  ;;  %3115 = vst.msk [vmem:[#allocation3 + $0x18] sm:$0xff] %vm2332_vm10, %v3079_v6  ;;  %v6025_v6 = vpack.c.bf16 %v3161_v32, %v3160_v7 }
 0x76a   :  { %3114 = vst [vmem:[#allocation3 + $0x10] sm:$0xff] %v8169_v56  ;;  %v3233_v2 = vrot.slane %v8169_v56, 2 }
 0x76c   :  { %v3081_v23 = vpop.permute.xlu1 %3080  ;;  %v3182_v26 = vld [vmem:[#allocation3 + $0x8] sm:$0xfc] }
 0x76d   :  { %v8176_v47 = vsel %vm2274_vm11, %v3016_v31, %v3081_v23  ;;  %3117 = vst.msk [vmem:[#allocation3 + $0x28] sm:$0xff] %vm2332_vm10, %v3081_v23  ;;  %v3181_v16 = vld [vmem:[#allocation3] sm:$0xfc]  ;;  %v3235_v49 = vrot.slane %v3182_v26, 2  ;;  %v6166_v31 = vpack.c.bf16 %v4229_v4, %v4228_v25  ;;  %v3162_v23 = vld [vmem:[#allocation7 + $0x30] sm:$0xff]  ;;  %v3020_v26 = vadd.f32 %v8157_v17, %v8127_v34 }
 0x76e   :  { %3116 = vst [vmem:[#allocation3 + $0x20] sm:$0xff] %v8176_v47  ;;  %v3232_v54 = vrot.slane %v3181_v16, 2  ;;  %v3238_v50 = vrot.slane %v8176_v47, 2  ;;  %v8208_v18 = vrot.slane %v8176_v47, 4  ;;  %v6028_v60 = vpack.c.bf16 %v3163_v8, %v3162_v23  ;;  %v4235_v23 = vld [vmem:[#allocation7 + $0x430] sm:$0xff] }
 0x770   :  { %v3083_v58 = vpop.permute.xlu0 %3082  ;;  %v8182_v19 = vld [vmem:[#allocation3 + $0x18] sm:$0xff]  ;;  %v3234_v37 = vsel %vm3231_vm3, %v3232_v54, %v3233_v2  ;;  %v3239_v62 = vsel %vm3231_vm3, %v3233_v2, %v3238_v50  ;;  %v4231_v54 = vld [vmem:[#allocation7 + $0x410] sm:$0xff] }
 0x771   :  { %v8185_v57 = vsel %vm2274_vm11, %v3017_v12, %v3083_v58  ;;  %3119 = vst.msk [vmem:[#allocation3 + $0x38] sm:$0xff] %vm2332_vm10, %v3083_v58  ;;  %v3236_v45 = vrot.slane %v8182_v19, 2  ;;  %v3756_v30 = vld [vmem:[#allocation3 + $0x18] sm:$0xf0]  ;;  %v3755_v51 = vld [vmem:[#allocation3 + $0x10] sm:$0xf0] }
 0x772   :  { %3118 = vst [vmem:[#allocation3 + $0x30] sm:$0xff] %v8185_v57  ;;  %v3824_v14 = vrot.slane %v3756_v30, 4  ;;  %v3821_v28 = vrot.slane %v3755_v51, 4  ;;  %v9002_v0 = vrot.slane %v8182_v19, 4  ;;  %v3242_v33 = vrot.slane %v8185_v57, 2  ;;  %v4230_v58 = vld [vmem:[#allocation7 + $0x408] sm:$0xff] }
 0x773   :  { %v3237_v5 = vsel %vm3231_vm3, %v3235_v49, %v3236_v45  ;;  %v3827_v35 = vrot.slane %v8185_v57, 4 }
 0x774   :  { %v3085_v42 = vpop.permute.xlu1 %3084  ;;  %5644 = vmatprep.mubr.msk.f32.mxu1 %vm2332_vm10, %v3237_v5  ;;  %v8196_v10 = vld [vmem:[#allocation3 + $0x28] sm:$0xff]  ;;  %v3823_v38 = vsel %vm3570_vm4, %v3821_v28, %v8208_v18  ;;  %v3243_v34 = vsel %vm3231_vm3, %v3238_v50, %v3242_v33 }
 0x775   :  { %v8200_v9 = vsel %vm2274_vm11, %v3018_v27, %v3085_v42  ;;  %3121 = vst.msk [vmem:[#allocation3 + $0x48] sm:$0xff] %vm2332_vm10, %v3085_v42  ;;  %3362 = vmatmul.mubr.f32.vlgmr.msra.gmra.mrb[36].mxu1 %v3234_v37  ;;  %v3240_v21 = vrot.slane %v8196_v10, 2  ;;  %v3825_v29 = vrot.slane %v8196_v10, 4  ;;  %v9001_v49 = vrot.slane %v8196_v10, 6  ;;  %v3164_v37 = vld [vmem:[#allocation7 + $0x40] sm:$0xff] }
 0x776   :  { %3120 = vst [vmem:[#allocation3 + $0x40] sm:$0xff] %v8200_v9  ;;  %6020 = vmatpush1.bf16.msra.mxu1 %v6019_v24  ;;  %v8252_v30 = vsel %vm3570_vm4, %v8208_v18, %v3827_v35  ;;  %v8257_v2 = vrot.slane %v8200_v9, 2  ;;  %v3831_v24 = vrot.slane %v8200_v9, 4  ;;  %v6169_v42 = vpack.c.bf16 %v4231_v54, %v4230_v58 }
 0x777   :  { %v3241_v59 = vsel %vm3231_vm3, %v3236_v45, %v3240_v21  ;;  %6021 = vmatprep.subr.bf16.mxu1 %v9003_v13  ;;  %v3826_v53 = vsel %vm3570_vm4, %v3824_v14, %v3825_v29  ;;  %v8218_v22 = vsel %vm3570_vm4, %v9002_v0, %v3825_v29 }
 0x778   :  { %5645 = vmatprep.mubr.msk.f32.mxu1 %vm2332_vm10, %v3241_v59  ;;  %5671 = vmatprep.mubr.msk.f32.mxu0 %vm2332_vm10, %v3826_v53  ;;  %v3087_v44 = vpop.permute.xlu0 %3086  ;;  %v8225_v52 = vld [vmem:[#allocation3 + $0x38] sm:$0xff]  ;;  %v3247_v7 = vsel %vm3231_vm3, %v3242_v33, %v8257_v2  ;;  %v8295_v59 = vsel %vm3570_vm4, %v3827_v35, %v3831_v24  ;;  %v3166_v35 = vld [vmem:[#allocation7 + $0x50] sm:$0xff] }
 0x779   :  { %v8230_v46 = vsel %vm2274_vm11, %v3019_v63, %v3087_v44  ;;  %3123 = vst.msk [vmem:[#allocation3 + $0x58] sm:$0xff] %vm2332_vm10, %v3087_v44  ;;  %3367 = vmatmul.mubr.f32.gmra.mrb[38].mxu1 %v3239_v62  ;;  %3951 = vmatmul.mubr.f32.vlgmr.msra.gmra.mrb[54].mxu0 %v3823_v38  ;;  %v3244_v15 = vrot.slane %v8225_v52, 2  ;;  %v3829_v43 = vrot.slane %v8225_v52, 4  ;;  %v4047_v16 = vrot.slane %v8225_v52, 6 }
 0x77a   :  { %3122 = vst [vmem:[#allocation3 + $0x50] sm:$0xff] %v8230_v46  ;;  %6023 = vmatpush1.bf16.msra.mxu1 %v6022_v39  ;;  %6164 = vmatpush1.bf16.msra.mxu0 %v6163_v41  ;;  %v3250_v28 = vrot.slane %v8230_v46, 2  ;;  %v4233_v39 = vld [vmem:[#allocation7 + $0x420] sm:$0xff]  ;;  %v3835_v63 = vrot.slane %v8230_v46, 4  ;;  %v3022_v62 = vadd.f32 %v8157_v17, %v8149_v40  ;;  %v3167_v17 = vld [vmem:[#allocation7 + $0x58] sm:$0xff] }
 0x77b   :  { %v3245_v12 = vsel %vm3231_vm3, %v3240_v21, %v3244_v15  ;;  %6024 = vmatprep.subr.bf16.mxu1 %v9003_v13  ;;  %v8242_v11 = vsel %vm3570_vm4, %v3825_v29, %v3829_v43  ;;  %6165 = vmatprep.subr.bf16.mxu0 %v9003_v13  ;;  %v8274_v20 = vsel %vm133_vm2, %v9001_v49, %v4047_v16  ;;  %v3165_v21 = vld [vmem:[#allocation7 + $0x48] sm:$0xff]  ;;  %v4232_v29 = vld [vmem:[#allocation7 + $0x418] sm:$0xff] }
 0x77c   :  { %v3089_v45 = vpop.permute.xlu1 %3088  ;;  %5646 = vmatprep.mubr.msk.f32.mxu1 %vm2332_vm10, %v3245_v12  ;;  %5672 = vmatprep.mubr.msk.f32.mxu0 %vm2332_vm10, %v8242_v11  ;;  %v8254_v51 = vld [vmem:[#allocation3 + $0x48] sm:$0xff]  ;;  %9024 = vst [vmem:[#allocation14_spill] sm:$0xff] %v8274_v20  ;;  %v6031_v38 = vpack.c.bf16 %v3165_v21, %v3164_v37  ;;  %v6172_v33 = vpack.c.bf16 %v4233_v39, %v4232_v29  ;;  %v4236_v29 = vld [vmem:[#allocation7 + $0x438] sm:$0xff]  ;;  %v4237_v39 = vld [vmem:[#allocation7 + $0x440] sm:$0xff] }
 0x77d   :  { %v8261_v61 = vsel %vm2274_vm11, %v3020_v26, %v3089_v45  ;;  %3125 = vst.msk [vmem:[#allocation3 + $0x68] sm:$0xff] %vm2332_vm10, %v3089_v45  ;;  %3372 = vmatmul.mubr.f32.gmra.mrb[40].mxu1 %v3243_v34  ;;  %3956 = vmatmul.mubr.f32.gmra.mrb[56].mxu0 %v8252_v30  ;;  %v8266_v27 = vrot.slane %v8254_v51, 2  ;;  %v8269_v5 = vrot.slane %v8254_v51, 4  ;;  %v4051_v55 = vrot.slane %v8254_v51, 6 }
 0x77e   :  { %3124 = vst [vmem:[#allocation3 + $0x60] sm:$0xff] %v8261_v61  ;;  %6026 = vmatpush1.bf16.msra.mxu1 %v6025_v6  ;;  %6167 = vmatpush1.bf16.msra.mxu0 %v6166_v31  ;;  %v8328_v40 = vsel %vm3231_vm3, %v8257_v2, %v3250_v28  ;;  %v4234_v31 = vld [vmem:[#allocation7 + $0x428] sm:$0xff]  ;;  %v8337_v26 = vsel %vm3570_vm4, %v3831_v24, %v3835_v63  ;;  %v3254_v8 = vrot.slane %v8261_v61, 2  ;;  %v3839_v58 = vrot.slane %v8261_v61, 4 }
 0x77f   :  { %9023 = vst [vmem:[#allocation13_spill] sm:$0xff] %v8269_v5  ;;  %v3249_v14 = vsel %vm3231_vm3, %v3244_v15, %v8266_v27  ;;  %6027 = vmatprep.subr.bf16.mxu1 %v9003_v13  ;;  %v8284_v50 = vsel %vm3570_vm4, %v3829_v43, %v8269_v5  ;;  %6168 = vmatprep.subr.bf16.mxu0 %v9003_v13 }
 0x780   :  { %5647 = vmatprep.mubr.msk.f32.mxu1 %vm2332_vm10, %v3249_v14  ;;  %5673 = vmatprep.mubr.msk.f32.mxu0 %vm2332_vm10, %v8284_v50  ;;  %v3091_v41 = vpop.permute.xlu0 %3090  ;;  %v8297_v53 = vld [vmem:[#allocation3 + $0x58] sm:$0xff]  ;;  %v8308_v44 = vsel %vm133_vm2, %v4047_v16, %v4051_v55  ;;  %v6034_v37 = vpack.c.bf16 %v3167_v17, %v3166_v35  ;;  %v6175_v14 = vpack.c.bf16 %v4235_v23, %v4234_v31  ;;  %v8372_v35 = vld [vmem:[#allocation7 + $0x450] sm:$0xff] }
 0x781   :  { %v8301_v32 = vsel %vm2274_vm11, %v3021_v1, %v3091_v41  ;;  %3127 = vst.msk [vmem:[#allocation3 + $0x78] sm:$0xff] %vm2332_vm10, %v3091_v41  ;;  %3377 = vmatmul.mubr.f32.gmra.mrb[42].mxu1 %v3247_v7  ;;  %3961 = vmatmul.mubr.f32.gmra.mrb[58].mxu0 %v8295_v59  ;;  %v3252_v25 = vrot.slane %v8297_v53, 2  ;;  %v3837_v4 = vrot.slane %v8297_v53, 4  ;;  %9025 = vst [vmem:[#allocation15_spill] sm:$0xff] %v8308_v44  ;;  %v4055_v15 = vrot.slane %v8297_v53, 6  ;;  %v3168_v1 = vld [vmem:[#allocation7 + $0x60] sm:$0xff] }
 0x782   :  { %3126 = vst [vmem:[#allocation3 + $0x70] sm:$0xff] %v8301_v32  ;;  %6029 = vmatpush1.bf16.msra.mxu1 %v6028_v60  ;;  %6170 = vmatpush1.bf16.msra.mxu0 %v6169_v42  ;;  %v3169_v60 = vld [vmem:[#allocation7 + $0x68] sm:$0xff]  ;;  %v9007_v21 = vrot.slane %v8301_v32, 2  ;;  %v6178_v49 = vpack.c.bf16 %v4237_v39, %v4236_v29  ;;  %v3172_v39 = vld [vmem:[#allocation7 + $0x80] sm:$0xff]  ;;  %v3774_v44 = vld [vmem:[#allocation3 + $0xa8] sm:$0xf] }
 0x783   :  { %v8316_v43 = vsel %vm3231_vm3, %v8266_v27, %v3252_v25  ;;  %6030 = vmatprep.subr.bf16.mxu1 %v9003_v13  ;;  %v8321_v6 = vsel %vm3570_vm4, %v8269_v5, %v3837_v4  ;;  %6171 = vmatprep.subr.bf16.mxu0 %v9003_v13  ;;  %v8344_v54 = vsel %vm133_vm2, %v4051_v55, %v4055_v15  ;;  %v8357_v55 = vld [vmem:[#allocation7 + $0x70] sm:$0xff] }
 0x784   :  { %v3093_v16 = vpop.permute.xlu1 %3092  ;;  %5648 = vmatprep.mubr.msk.f32.mxu1 %vm2332_vm10, %v8316_v43  ;;  %5674 = vmatprep.mubr.msk.f32.mxu0 %vm2332_vm10, %v8321_v6  ;;  %v8339_v12 = vld [vmem:[#allocation3 + $0x68] sm:$0xff]  ;;  %9026 = vst [vmem:[#allocation16_spill] sm:$0xff] %v8344_v54  ;;  %v3773_v54 = vld [vmem:[#allocation3 + $0xa0] sm:$0xf] }
 0x785   :  { %v8347_v45 = vsel %vm2274_vm11, %v3022_v62, %v3093_v16  ;;  %3129 = vst.msk [vmem:[#allocation3 + $0x88] sm:$0xff] %vm2332_vm10, %v3093_v16  ;;  %3382 = vmatmul.mubr.f32.gmra.mrb[44].mxu1 %v8328_v40  ;;  %3966 = vmatmul.mubr.f32.gmra.mrb[60].mxu0 %v8337_v26  ;;  %v3256_v34 = vrot.slane %v8339_v12, 2  ;;  %v3841_v24 = vrot.slane %v8339_v12, 4  ;;  %v4059_v42 = vrot.slane %v8339_v12, 6 }
 0x786   :  { %3128 = vst [vmem:[#allocation3 + $0x80] sm:$0xff] %v8347_v45  ;;  %6032 = vmatpush1.bf16.msra.mxu1 %v6031_v38  ;;  %6173 = vmatpush1.bf16.msra.mxu0 %v6172_v33  ;;  %v3843_v62 = vrot.slane %v8301_v32, 4  ;;  %v8368_v38 = vld [vmem:[#allocation7 + $0x78] sm:$0xff]  ;;  %v8370_v33 = vld [vmem:[#allocation7 + $0x448] sm:$0xff]  ;;  %v6037_v16 = vpack.c.bf16 %v3169_v60, %v3168_v1  ;;  %v9028_v1 = vmov 0.0|0.0   ;;  %v8427_v29 = vrot.slane %v8347_v45, 2 }
 0x787   :  { %v8360_v41 = vsel %vm3231_vm3, %v3252_v25, %v3256_v34  ;;  %6033 = vmatprep.subr.bf16.mxu1 %v9003_v13  ;;  %v8364_v7 = vsel %vm3570_vm4, %v3837_v4, %v3841_v24  ;;  %6174 = vmatprep.subr.bf16.mxu0 %v9003_v13  ;;  %v8375_v17 = vsel %vm133_vm2, %v4055_v15, %v4059_v42  ;;  %v3184_v13 = vld [vmem:[#allocation3 + $0x98] sm:$0x3] }
 0x788   :  { %9027 = vst [vmem:[#allocation17_spill] sm:$0xff] %v8375_v17  ;;  %5649 = vmatprep.mubr.msk.f32.mxu1 %vm2332_vm10, %v8360_v41  ;;  %5675 = vmatprep.mubr.msk.f32.mxu0 %vm2332_vm10, %v8364_v7  ;;  %v8384_v25 = vsel %vm3231_vm3, %v3250_v28, %v3254_v8  ;;  %v8389_v4 = vsel %vm3570_vm4, %v3835_v63, %v3839_v58  ;;  %v8391_v31 = vld [vmem:[#allocation3 + $0x78] sm:$0xff] }
 0x789   :  { %3387 = vmatmul.mubr.f32.gmra.mrb[46].mxu1 %v8384_v25  ;;  %3971 = vmatmul.mubr.f32.gmra.mrb[62].mxu0 %v8389_v4  ;;  %v3260_v15 = vrot.slane %v8391_v31, 2  ;;  %v3845_v23 = vrot.slane %v8391_v31, 4  ;;  %v8400_v28 = vsel %vm3231_vm3, %v3254_v8, %v9007_v21  ;;  %v6040_v63 = vpack.c.bf16 %v8368_v38, %v8357_v55  ;;  %v4240_v21 = vld [vmem:[#allocation7 + $0x458] sm:$0xff]  ;;  %v4241_v17 = vld [vmem:[#allocation7 + $0x460] sm:$0xff] }
 0x78a   :  { %6035 = vmatpush1.bf16.msra.mxu1 %v6034_v37  ;;  %6176 = vmatpush1.bf16.msra.mxu0 %v6175_v14  ;;  %v6181_v0 = vpack.c.bf16 %v8372_v35, %v8370_v33  ;;  %v4063_v3 = vrot.slane %v8391_v31, 6  ;;  %v8416_v8 = vsel %vm3570_vm4, %v3839_v58, %v3843_v62  ;;  %v8418_v37 = vld [vmem:[#allocation3 + $0x98] sm:$0xff]  ;;  %v3183_v14 = vld [vmem:[#allocation3 + $0x90] sm:$0x3]  ;;  %v3173_v58 = vld [vmem:[#allocation7 + $0x88] sm:$0xff]  ;;  %v3268_v35 = vrot.slane %v3184_v13, 2 }
 0x78b   :  { %v8408_v5 = vsel %vm3231_vm3, %v3256_v34, %v3260_v15  ;;  %6036 = vmatprep.subr.bf16.mxu1 %v9028_v1  ;;  %v8412_v60 = vsel %vm3570_vm4, %v3841_v24, %v3845_v23  ;;  %6177 = vmatprep.subr.bf16.mxu0 %v9028_v1  ;;  %9030 = vst [vmem:[#allocation19_spill] sm:$0xff] %v8416_v8  ;;  %v8430_v24 = vrot.slane %v8347_v45, 4 }
 0x78c   :  { %9029 = vst [vmem:[#allocation18_spill] sm:$0xff] %v8412_v60  ;;  %5650 = vmatprep.mubr.msk.f32.mxu1 %vm2332_vm10, %v8408_v5  ;;  %5676 = vmatprep.mubr.msk.f32.mxu0 %vm2332_vm10, %v8412_v60  ;;  %v8424_v34 = vld [vmem:[#allocation3 + $0x88] sm:$0xff]  ;;  %v8433_v55 = vsel %vm133_vm2, %v4059_v42, %v4063_v3  ;;  %v3853_v42 = vrot.slane %v8418_v37, 4  ;;  %v6043_v13 = vpack.c.bf16 %v3173_v58, %v3172_v39  ;;  %v3857_v58 = vrot.slane %v3774_v44, 4 }
 0x78d   :  { %9031 = vst [vmem:[#allocation20_spill] sm:$0xff] %v8433_v55  ;;  %3392 = vmatmul.mubr.f32.gmra.mrb[48].mxu1 %v8400_v28  ;;  %3976 = vmatmul.mubr.f32.gmra.mrb[64].mxu0 %v8416_v8  ;;  %v8438_v38 = vrot.slane %v8424_v34, 2  ;;  %v8441_v33 = vrot.slane %v8424_v34, 4  ;;  %v3266_v55 = vrot.slane %v3183_v14, 2  ;;  %v6184_v14 = vpack.c.bf16 %v4241_v17, %v4240_v21  ;;  %v3174_v60 = vld [vmem:[#allocation7 + $0x90] sm:$0xff]  ;;  %v3175_v17 = vld [vmem:[#allocation7 + $0x98] sm:$0xff] }
 0x78e   :  { %6038 = vmatpush1.bf16.msra.mxu1 %v6037_v16  ;;  %6179 = vmatpush1.bf16.msra.mxu0 %v6178_v49  ;;  %v9034_v49 = vrot.slane %v8301_v32, 2  ;;  %v3851_v16 = vrot.slane %v8068_v36, 4  ;;  %v3855_v21 = vrot.slane %v3773_v54, 4  ;;  %v3858_v44 = vsel %vm3570_vm4, %v3853_v42, %v3857_v58  ;;  %v3139_v54 = vld [vmem:[#allocation3 + $0x8] sm:$0xff] }
 0x78f   :  { %9032 = vst [vmem:[#allocation21_spill] sm:$0xff] %v8441_v33  ;;  %v8447_v20 = vsel %vm3231_vm3, %v3260_v15, %v8438_v38  ;;  %6039 = vmatprep.subr.bf16.mxu1 %v9028_v1  ;;  %v8452_v8 = vsel %vm3570_vm4, %v3845_v23, %v8441_v33  ;;  %6180 = vmatprep.subr.bf16.mxu0 %v9028_v1 }
 0x790   :  { %9033 = vst [vmem:[#allocation22_spill] sm:$0xff] %v8452_v8  ;;  %5651 = vmatprep.mubr.msk.f32.mxu1 %vm2332_vm10, %v8447_v20  ;;  %5677 = vmatprep.mubr.msk.f32.mxu0 %vm2332_vm10, %v8452_v8  ;;  %v8463_v15 = vsel %vm3231_vm3, %v9034_v49, %v8427_v29  ;;  %v8467_v23 = vsel %vm3570_vm4, %v3843_v62, %v8430_v24  ;;  %v9036_v8 = vrot.slane %v8424_v34, 6 }
 0x791   :  { %9035 = vst [vmem:[#allocation23_spill] sm:$0xff] %v8467_v23  ;;  %3397 = vmatmul.mubr.f32.gmra.mrb[50].mxu1 %v8463_v15  ;;  %3981 = vmatmul.mubr.f32.gmra.mrb[66].mxu0 %v8467_v23  ;;  %v3269_v39 = vsel %vm3231_vm3, %v8438_v38, %v3268_v35  ;;  %v3854_v62 = vsel %vm3570_vm4, %v8441_v33, %v3853_v42  ;;  %v4242_v23 = vld [vmem:[#allocation7 + $0x468] sm:$0xff]  ;;  %v4243_v35 = vld [vmem:[#allocation7 + $0x470] sm:$0xff]  ;;  %v4245_v33 = vld [vmem:[#allocation7 + $0x480] sm:$0xff] }
 0x792   :  { %v8477_v49 = vsel %vm133_vm2, %v4063_v3, %v9036_v8  ;;  %6041 = vmatpush1.bf16.msra.mxu1 %v6040_v63  ;;  %6182 = vmatpush1.bf16.msra.mxu0 %v6181_v0  ;;  %v3267_v3 = vsel %vm3231_vm3, %v8427_v29, %v3266_v55  ;;  %v3852_v0 = vsel %vm3570_vm4, %v8430_v24, %v3851_v16  ;;  %v3177_v55 = vld [vmem:[#allocation7 + $0xa8] sm:$0xff] }
 0x793   :  { %9037 = vst [vmem:[#allocation24_spill] sm:$0xff] %v8477_v49  ;;  %5652 = vmatprep.mubr.msk.f32.mxu1 %vm2332_vm10, %v3269_v39  ;;  %5678 = vmatprep.mubr.msk.f32.mxu0 %vm2332_vm10, %v3854_v62  ;;  %v6046_v63 = vpack.c.bf16 %v3175_v17, %v3174_v60  ;;  %v3856_v8 = vsel %vm3570_vm4, %v3851_v16, %v3855_v21  ;;  %v3176_v62 = vld [vmem:[#allocation7 + $0xa0] sm:$0xff]  ;;  %v4244_v49 = vld [vmem:[#allocation7 + $0x478] sm:$0xff]  ;;  %v4246_v16 = vld [vmem:[#allocation7 + $0x488] sm:$0xff] }
 0x794   :  { %6042 = vmatprep.subr.bf16.mxu1 %v9028_v1  ;;  %6183 = vmatprep.subr.bf16.mxu0 %v9028_v1  ;;  %v6187_v39 = vpack.c.bf16 %v4243_v35, %v4242_v23  ;;  %v6049_v42 = vpack.c.bf16 %v3177_v55, %v3176_v62  ;;  %v6190_v60 = vpack.c.bf16 %v4245_v33, %v4244_v49  ;;  %v3179_v23 = vld [vmem:[#allocation7 + $0xb8] sm:$0xff]  ;;  %v4249_v49 = vld [vmem:[#allocation7 + $0x4a0] sm:$0xff]  ;;  %v3541_v17 = vld [vmem:[#allocation7 + $0x190] sm:$0xff] }
 0x795   :  { %3402 = vmatmul.mubr.f32.gmra.mrb[52].mxu1 %v3267_v3  ;;  %3986 = vmatmul.mubr.f32.gmra.mrb[68].mxu0 %v3852_v0  ;;  %v4248_v33 = vld [vmem:[#allocation7 + $0x498] sm:$0xff]  ;;  %v3180_v0 = vld [vmem:[#allocation7 + $0xc0] sm:$0xff] }
 0x796   :  { %6044 = vmatpush1.bf16.msra.mxu1 %v6043_v13  ;;  %6185 = vmatpush1.bf16.msra.mxu0 %v6184_v14  ;;  %v3178_v13 = vld [vmem:[#allocation7 + $0xb0] sm:$0xff]  ;;  %v3542_v35 = vld [vmem:[#allocation7 + $0x198] sm:$0xff]  ;;  %v6196_v3 = vpack.c.bf16 %v4249_v49, %v4248_v33  ;;  %v4601_v62 = vld [vmem:[#allocation7 + $0x580] sm:$0xff] }
 0x797   :  { %5653 = vmatprep.mubr.msk.f32.mxu1 %vm2332_vm10, %v3139_v54  ;;  %6045 = vmatprep.subr.bf16.mxu1 %v9028_v1  ;;  %v4247_v14 = vld [vmem:[#allocation7 + $0x490] sm:$0xff]  ;;  %v6052_v58 = vpack.c.bf16 %v3179_v23, %v3178_v13  ;;  %v3543_v54 = vld [vmem:[#allocation7 + $0x1a0] sm:$0xff]  ;;  %v3546_v13 = vld [vmem:[#allocation7 + $0x1b8] sm:$0xff] }
 0x798   :  { %5679 = vmatprep.mubr.msk.f32.mxu0 %vm2332_vm10, %v3858_v44  ;;  %6186 = vmatprep.subr.bf16.mxu0 %v9028_v1  ;;  %v6193_v21 = vpack.c.bf16 %v4247_v14, %v4246_v16  ;;  %v6055_v44 = vpack.c.bf16 %v3542_v35, %v3541_v17  ;;  %v4603_v23 = vld [vmem:[#allocation7 + $0x590] sm:$0xff]  ;;  %v3547_v14 = vld [vmem:[#allocation7 + $0x1c0] sm:$0xff] }
 0x799   :  { %3991 = vmatmul.mubr.f32.gmra.mrb[70].mxu0 %v3856_v8  ;;  %v4250_v8 = vld [vmem:[#allocation7 + $0x4a8] sm:$0xff]  ;;  %v4605_v33 = vld [vmem:[#allocation7 + $0x5a0] sm:$0xff]  ;;  %v3549_v35 = vld [vmem:[#allocation7 + $0x1d0] sm:$0xff] }
 0x79a   :  { %6047 = vmatpush1.bf16.msra.mxu1 %v6046_v63  ;;  %6188 = vmatpush1.bf16.msra.mxu0 %v6187_v39  ;;  %v3544_v63 = vld [vmem:[#allocation7 + $0x1a8] sm:$0xff]  ;;  %v4600_v39 = vld [vmem:[#allocation7 + $0x578] sm:$0xff] }
 0x79b   :  { %5689 = vmatprep.mubr.msk.f32.mxu0 %vm2332_vm10, %v8196_v10  ;;  %6048 = vmatprep.subr.bf16.mxu1 %v9028_v1  ;;  %v6058_v55 = vpack.c.bf16 %v3544_v63, %v3543_v54  ;;  %v3551_v54 = vld [vmem:[#allocation7 + $0x1e0] sm:$0xff]  ;;  %v4608_v63 = vld [vmem:[#allocation7 + $0x5b8] sm:$0xff] }
 0x79c   :  { %6189 = vmatprep.subr.bf16.mxu0 %v9028_v1 }
 0x79e   :  { %6050 = vmatpush1.bf16.msra.mxu1 %v6049_v42  ;;  %6191 = vmatpush1.bf16.msra.mxu0 %v6190_v60  ;;  %v6235_v42 = vpack.c.bf16 %v4601_v62, %v4600_v39  ;;  %v3545_v60 = vld [vmem:[#allocation7 + $0x1b0] sm:$0xff] }
 0x79f   :  { %6051 = vmatprep.subr.bf16.mxu1 %v9028_v1  ;;  %6192 = vmatprep.subr.bf16.mxu0 %v9028_v1  ;;  %v3553_v62 = vld [vmem:[#allocation7 + $0x1f0] sm:$0xff] }
 0x7a2   :  { %6053 = vmatpush1.bf16.msra.mxu1 %v6052_v58  ;;  %6194 = vmatpush1.bf16.msra.mxu0 %v6193_v21  ;;  %v3548_v58 = vld [vmem:[#allocation7 + $0x1c8] sm:$0xff]  ;;  %v4604_v21 = vld [vmem:[#allocation7 + $0x598] sm:$0xff] }
 0x7a3   :  { %3474 = vmatprep.subr.mxu1 %v8068_v36  ;;  %6195 = vmatprep.subr.bf16.mxu0 %v9028_v1  ;;  %v6064_v49 = vpack.c.bf16 %v3548_v58, %v3547_v14  ;;  %v6241_v17 = vpack.c.bf16 %v4605_v33, %v4604_v21  ;;  %v3537_v14 = vld [vmem:[#allocation3 + $0x8] sm:$0xf0]  ;;  %v4614_v58 = vld [vmem:[#allocation7 + $0x5e8] sm:$0xff] }
 0x7a4   :  { %v4615_v21 = vld [vmem:[#allocation7 + $0x5f0] sm:$0xff]  ;;  %v3574_v33 = vrot.slane %v3537_v14, 4  ;;  %v4011_v14 = vld [vmem:[#allocation7 + $0x328] sm:$0xff] }
 0x7a6   :  { %3475 = vmatpush1.msra.mxu1 %v3180_v0  ;;  %6197 = vmatpush1.bf16.msra.mxu0 %v6196_v3  ;;  %v4606_v3 = vld [vmem:[#allocation7 + $0x5a8] sm:$0xff]  ;;  %v4607_v0 = vld [vmem:[#allocation7 + $0x5b0] sm:$0xff] }
 0x7a7   :  { %3491 = vmatmul.mubr.f32.vlgmr.msra.gmra.mrb[54].mxu1 %v8162_v48  ;;  %6054 = vmatprep.subr.bf16.mxu1 %v9028_v1  ;;  %v4602_v48 = vld [vmem:[#allocation7 + $0x588] sm:$0xff] }
 0x7a8   :  { %5654 = vmatprep.mubr.msk.f32.mxu1 %vm2332_vm10, %v8182_v19  ;;  %6056 = vmatpush1.bf16.msra.mxu1 %v6055_v44  ;;  %v6238_v16 = vpack.c.bf16 %v4603_v23, %v4602_v48  ;;  %v6244_v44 = vpack.c.bf16 %v4607_v0, %v4606_v3  ;;  %v4612_v48 = vld [vmem:[#allocation7 + $0x5d8] sm:$0xff]  ;;  %v4613_v23 = vld [vmem:[#allocation7 + $0x5e0] sm:$0xff]  ;;  %v9038_v0 = vrot.slane %v8182_v19, 4 }
 0x7a9   :  { %4318 = vmatprep.subr.mxu0 %v8068_v36  ;;  %6057 = vmatprep.subr.bf16.mxu1 %v9028_v1  ;;  %v6061_v36 = vpack.c.bf16 %v3546_v13, %v3545_v60  ;;  %v3555_v13 = vld [vmem:[#allocation7 + $0x200] sm:$0xff]  ;;  %v8568_v3 = vld [vmem:[#allocation3 + $0x90] sm:$0xff] }
 0x7aa   :  { %4319 = vmatpush1.msra.mxu0 %v4250_v8  ;;  %v4609_v8 = vld [vmem:[#allocation7 + $0x5c0] sm:$0xff]  ;;  %v3562_v19 = vld [vmem:[#allocation7 + $0x238] sm:$0xff] }
 0x7ab   :  { %3496 = vmatmul.mubr.f32.gmra.mrb[56].mxu1 %v8169_v56  ;;  %4335 = vmatmul.mubr.f32.vlgmr.msra.gmra.mrb[72].mxu0 %v8176_v47  ;;  %v6247_v39 = vpack.c.bf16 %v4609_v8, %v4608_v63 }
 0x7ac   :  { %6234 = vmatprep.subr.bf16.mxu0 %v9028_v1  ;;  %5655 = vmatprep.mubr.msk.f32.mxu1 %vm2332_vm10, %v8196_v10 }
 0x7ad   :  { %6059 = vmatpush1.bf16.msra.mxu1 %v6058_v55  ;;  %5690 = vmatprep.mubr.msk.f32.mxu0 %vm2332_vm10, %v8225_v52  ;;  %v4610_v55 = vld [vmem:[#allocation7 + $0x5c8] sm:$0xff] }
 0x7ae   :  { %6236 = vmatpush1.bf16.msra.mxu0 %v6235_v42  ;;  %6060 = vmatprep.subr.bf16.mxu1 %v9028_v1  ;;  %v4611_v42 = vld [vmem:[#allocation7 + $0x5d0] sm:$0xff] }
 0x7af   :  { %3501 = vmatmul.mubr.f32.gmra.mrb[58].mxu1 %v8176_v47  ;;  %4340 = vmatmul.mubr.f32.gmra.mrb[74].mxu0 %v8185_v57  ;;  %v3550_v47 = vld [vmem:[#allocation7 + $0x1d8] sm:$0xff]  ;;  %v6250_v60 = vpack.c.bf16 %v4611_v42, %v4610_v55 }
 0x7b0   :  { %6237 = vmatprep.subr.bf16.mxu0 %v9028_v1  ;;  %5656 = vmatprep.mubr.msk.f32.mxu1 %vm2332_vm10, %v8225_v52  ;;  %v6067_v52 = vpack.c.bf16 %v3550_v47, %v3549_v35  ;;  %v3560_v35 = vld [vmem:[#allocation7 + $0x228] sm:$0xff]  ;;  %v4580_v47 = vld [vmem:[#allocation3 + $0x38] sm:$0xfc] }
 0x7b1   :  { %6062 = vmatpush1.bf16.msra.mxu1 %v6061_v36  ;;  %5691 = vmatprep.mubr.msk.f32.mxu0 %vm2332_vm10, %v8254_v51  ;;  %v6253_v36 = vpack.c.bf16 %v4613_v23, %v4612_v48  ;;  %v4648_v63 = vrot.slane %v4580_v47, 2  ;;  %v3536_v23 = vld [vmem:[#allocation3] sm:$0xf0]  ;;  %v4013_v47 = vld [vmem:[#allocation7 + $0x338] sm:$0xff] }
 0x7b2   :  { %6239 = vmatpush1.bf16.msra.mxu0 %v6238_v16  ;;  %6063 = vmatprep.subr.bf16.mxu1 %v9028_v1  ;;  %v3557_v16 = vld [vmem:[#allocation7 + $0x210] sm:$0xff] }
 0x7b3   :  { %3506 = vmatmul.mubr.f32.gmra.mrb[60].mxu1 %v8185_v57  ;;  %4345 = vmatmul.mubr.f32.gmra.mrb[76].mxu0 %v8200_v9  ;;  %v3552_v57 = vld [vmem:[#allocation7 + $0x1e8] sm:$0xff] }
 0x7b4   :  { %6240 = vmatprep.subr.bf16.mxu0 %v9028_v1  ;;  %5657 = vmatprep.mubr.msk.f32.mxu1 %vm2332_vm10, %v8254_v51  ;;  %v6070_v51 = vpack.c.bf16 %v3552_v57, %v3551_v54  ;;  %v4617_v54 = vld [vmem:[#allocation7 + $0x600] sm:$0xff] }
 0x7b5   :  { %6065 = vmatpush1.bf16.msra.mxu1 %v6064_v49  ;;  %5692 = vmatprep.mubr.msk.f32.mxu0 %vm2332_vm10, %v8297_v53  ;;  %v8564_v49 = vld [vmem:[#allocation3 + $0xa8] sm:$0xff] }
 0x7b6   :  { %6242 = vmatpush1.bf16.msra.mxu0 %v6241_v17  ;;  %6066 = vmatprep.subr.bf16.mxu1 %v9028_v1  ;;  %v3559_v17 = vld [vmem:[#allocation7 + $0x220] sm:$0xff] }
 0x7b7   :  { %3511 = vmatmul.mubr.f32.gmra.mrb[62].mxu1 %v8200_v9  ;;  %4350 = vmatmul.mubr.f32.gmra.mrb[78].mxu0 %v8230_v46  ;;  %v3554_v9 = vld [vmem:[#allocation7 + $0x1f8] sm:$0xff]  ;;  %v6082_v57 = vpack.c.bf16 %v3560_v35, %v3559_v17  ;;  %v4012_v35 = vld [vmem:[#allocation7 + $0x330] sm:$0xff] }
 0x7b8   :  { %6243 = vmatprep.subr.bf16.mxu0 %v9028_v1  ;;  %5658 = vmatprep.mubr.msk.f32.mxu1 %vm2332_vm10, %v8297_v53  ;;  %v6073_v53 = vpack.c.bf16 %v3554_v9, %v3553_v62  ;;  %v4618_v62 = vld [vmem:[#allocation7 + $0x608] sm:$0xff]  ;;  %v4619_v9 = vld [vmem:[#allocation7 + $0x610] sm:$0xff] }
 0x7b9   :  { %6068 = vmatpush1.bf16.msra.mxu1 %v6067_v52  ;;  %5693 = vmatprep.mubr.msk.f32.mxu0 %vm2332_vm10, %v8339_v12  ;;  %v3576_v52 = vsel %vm3570_vm4, %v3574_v33, %v9038_v0  ;;  %v6262_v42 = vpack.c.bf16 %v4619_v9, %v4618_v62  ;;  %v4579_v33 = vld [vmem:[#allocation3 + $0x30] sm:$0xfc] }
 0x7ba   :  { %6245 = vmatpush1.bf16.msra.mxu0 %v6244_v44  ;;  %6069 = vmatprep.subr.bf16.mxu1 %v9028_v1  ;;  %v4616_v44 = vld [vmem:[#allocation7 + $0x5f8] sm:$0xff]  ;;  %v4645_v0 = vrot.slane %v4579_v33, 2 }
 0x7bb   :  { %3516 = vmatmul.mubr.f32.gmra.mrb[64].mxu1 %v8230_v46  ;;  %4355 = vmatmul.mubr.f32.gmra.mrb[80].mxu0 %v8261_v61  ;;  %v3556_v46 = vld [vmem:[#allocation7 + $0x208] sm:$0xff]  ;;  %v6259_v8 = vpack.c.bf16 %v4617_v54, %v4616_v44  ;;  %v4014_v54 = vld [vmem:[#allocation7 + $0x340] sm:$0xff]  ;;  %v4025_v9 = vld [vmem:[#allocation7 + $0x398] sm:$0xff] }
 0x7bc   :  { %6246 = vmatprep.subr.bf16.mxu0 %v9028_v1  ;;  %5659 = vmatprep.mubr.msk.f32.mxu1 %vm2332_vm10, %v8339_v12  ;;  %v6076_v12 = vpack.c.bf16 %v3556_v46, %v3555_v13  ;;  %v4620_v13 = vld [vmem:[#allocation7 + $0x618] sm:$0xff]  ;;  %v4621_v46 = vld [vmem:[#allocation7 + $0x620] sm:$0xff] }
 0x7bd   :  { %6071 = vmatpush1.bf16.msra.mxu1 %v6070_v51  ;;  %5694 = vmatprep.mubr.msk.f32.mxu0 %vm2332_vm10, %v8391_v31  ;;  %v3561_v51 = vld [vmem:[#allocation7 + $0x230] sm:$0xff] }
 0x7be   :  { %6248 = vmatpush1.bf16.msra.mxu0 %v6247_v39  ;;  %6072 = vmatprep.subr.bf16.mxu1 %v9028_v1  ;;  %v4650_v39 = vsel %vm3231_vm3, %v4648_v63, %v8266_v27  ;;  %v6085_v55 = vpack.c.bf16 %v3562_v19, %v3561_v51  ;;  %v6265_v27 = vpack.c.bf16 %v4621_v46, %v4620_v13  ;;  %v4673_v51 = vrot.slane %v8564_v49, 2  ;;  %v9039_v19 = vld [vmem:[#allocation18_spill] sm:$0xff]  ;;  %v4598_v13 = vld [vmem:[#allocation3 + $0xc8] sm:$0x3] }
 0x7bf   :  { %3521 = vmatmul.mubr.f32.gmra.mrb[66].mxu1 %v8261_v61  ;;  %4360 = vmatmul.mubr.f32.gmra.mrb[82].mxu0 %v8301_v32  ;;  %v3558_v61 = vld [vmem:[#allocation7 + $0x218] sm:$0xff]  ;;  %v4647_v63 = vsel %vm3231_vm3, %v4645_v0, %v8257_v2  ;;  %v4018_v2 = vld [vmem:[#allocation7 + $0x360] sm:$0xff] }
 0x7c0   :  { %6249 = vmatprep.subr.bf16.mxu0 %v9028_v1  ;;  %5660 = vmatprep.mubr.msk.f32.mxu1 %vm2332_vm10, %v8391_v31  ;;  %v6079_v31 = vpack.c.bf16 %v3558_v61, %v3557_v16  ;;  %v3571_v16 = vrot.slane %v3536_v23, 4  ;;  %v4010_v61 = vld [vmem:[#allocation7 + $0x320] sm:$0xff] }
 0x7c1   :  { %6074 = vmatpush1.bf16.msra.mxu1 %v6073_v53  ;;  %5695 = vmatprep.mubr.msk.f32.mxu0 %vm2332_vm10, %v8424_v34  ;;  %v3563_v53 = vld [vmem:[#allocation7 + $0x240] sm:$0xff] }
 0x7c2   :  { %6251 = vmatpush1.bf16.msra.mxu0 %v6250_v60  ;;  %6075 = vmatprep.subr.bf16.mxu1 %v9028_v1  ;;  %v3564_v60 = vld [vmem:[#allocation7 + $0x248] sm:$0xff]  ;;  %v9041_v46 = vld [vmem:[#allocation22_spill] sm:$0xff] }
 0x7c3   :  { %3526 = vmatmul.mubr.f32.gmra.mrb[68].mxu1 %v8301_v32  ;;  %4365 = vmatmul.mubr.f32.gmra.mrb[84].mxu0 %v8347_v45  ;;  %v6256_v32 = vpack.c.bf16 %v4615_v21, %v4614_v58  ;;  %v6088_v48 = vpack.c.bf16 %v3564_v60, %v3563_v53  ;;  %v3565_v58 = vld [vmem:[#allocation7 + $0x250] sm:$0xff] }
 0x7c4   :  { %6252 = vmatprep.subr.bf16.mxu0 %v9028_v1  ;;  %5661 = vmatprep.mubr.msk.f32.mxu1 %vm2332_vm10, %v8424_v34 }
 0x7c5   :  { %6077 = vmatpush1.bf16.msra.mxu1 %v6076_v12  ;;  %5696 = vmatprep.mubr.msk.f32.mxu0 %vm2332_vm10, %v8418_v37  ;;  %v4622_v12 = vld [vmem:[#allocation7 + $0x628] sm:$0xff] }
 0x7c6   :  { %6254 = vmatpush1.bf16.msra.mxu0 %v6253_v36  ;;  %6078 = vmatprep.subr.bf16.mxu1 %v9028_v1  ;;  %v4623_v36 = vld [vmem:[#allocation7 + $0x630] sm:$0xff] }
 0x7c7   :  { %3531 = vmatmul.mubr.f32.gmra.mrb[70].mxu1 %v8347_v45  ;;  %4370 = vmatmul.mubr.f32.gmra.mrb[86].mxu0 %v8568_v3  ;;  %v6268_v21 = vpack.c.bf16 %v4623_v36, %v4622_v12  ;;  %v4026_v12 = vld [vmem:[#allocation7 + $0x3a0] sm:$0xff]  ;;  %v4027_v36 = vld [vmem:[#allocation7 + $0x3a8] sm:$0xff] }
 0x7c8   :  { %6255 = vmatprep.subr.bf16.mxu0 %v9028_v1  ;;  %5662 = vmatprep.mubr.msk.f32.mxu1 %vm2332_vm10, %v3576_v52  ;;  %v4624_v52 = vld [vmem:[#allocation7 + $0x638] sm:$0xff] }
 0x7c9   :  { %6080 = vmatpush1.bf16.msra.mxu1 %v6079_v31  ;;  %5697 = vmatprep.mubr.msk.f32.mxu0 %vm2332_vm10, %v8564_v49  ;;  %v3572_v31 = vrot.slane %v8169_v56, 4  ;;  %v6130_v56 = vpack.c.bf16 %v4013_v47, %v4012_v35  ;;  %v4028_v35 = vld [vmem:[#allocation7 + $0x3b0] sm:$0xff]  ;;  %v4029_v47 = vld [vmem:[#allocation7 + $0x3b8] sm:$0xff] }
 0x7ca   :  { %6257 = vmatpush1.bf16.msra.mxu0 %v6256_v32  ;;  %6081 = vmatprep.subr.bf16.mxu1 %v9028_v1  ;;  %v6127_v32 = vpack.c.bf16 %v4011_v14, %v4010_v61  ;;  %v4597_v61 = vld [vmem:[#allocation3 + $0xc0] sm:$0x3] }
 0x7cb   :  { %4375 = vmatmul.mubr.f32.gmra.mrb[88].mxu0 %v8568_v3  ;;  %6258 = vmatprep.subr.bf16.mxu0 %v9028_v1  ;;  %v3573_v17 = vsel %vm3570_vm4, %v3571_v16, %v3572_v31  ;;  %v3578_v44 = vsel %vm3570_vm4, %v3572_v31, %v8208_v18  ;;  %v4016_v18 = vld [vmem:[#allocation7 + $0x350] sm:$0xff]  ;;  %v9042_v14 = vld [vmem:[#allocation23_spill] sm:$0xff]  ;;  %v6151_v31 = vpack.c.bf16 %v4027_v36, %v4026_v12 }
 0x7cc   :  { %5707 = vmatprep.mubr.msk.f32.mxu0 %vm2332_vm10, %v4650_v39  ;;  %v3539_v39 = vld [vmem:[#allocation3 + $0x98] sm:$0xf]  ;;  %v4416_v36 = vld [vmem:[#allocation7 + $0x4f0] sm:$0xff] }
 0x7cd   :  { %6083 = vmatpush1.bf16.msra.mxu1 %v6082_v57  ;;  %v4015_v57 = vld [vmem:[#allocation7 + $0x348] sm:$0xff]  ;;  %v3607_v60 = vrot.slane %v3539_v39, 4 }
 0x7ce   :  { %6260 = vmatpush1.bf16.msra.mxu0 %v6259_v8  ;;  %6084 = vmatprep.subr.bf16.mxu1 %v9028_v1  ;;  %v4017_v8 = vld [vmem:[#allocation7 + $0x358] sm:$0xff] }
 0x7cf   :  { %6261 = vmatprep.subr.bf16.mxu0 %v9028_v1 }
 0x7d1   :  { %6086 = vmatpush1.bf16.msra.mxu1 %v6085_v55 }
 0x7d2   :  { %6263 = vmatpush1.bf16.msra.mxu0 %v6262_v42  ;;  %6087 = vmatprep.subr.bf16.mxu1 %v9028_v1 }
 0x7d3   :  { %6264 = vmatprep.subr.bf16.mxu0 %v9028_v1 }
 0x7d5   :  { %6089 = vmatpush1.bf16.msra.mxu1 %v6088_v48 }
 0x7d6   :  { %6266 = vmatpush1.bf16.msra.mxu0 %v6265_v27  ;;  %3684 = vmatprep.subr.mxu1 %v8568_v3  ;;  %v4006_v27 = vld [vmem:[#allocation3 + $0x18] sm:$0xc0] }
 0x7d7   :  { %6267 = vmatprep.subr.bf16.mxu0 %v9028_v1  ;;  %v4042_v33 = vrot.slane %v4006_v27, 6 }
 0x7d9   :  { %3685 = vmatpush1.msra.mxu1 %v3565_v58  ;;  %v9043_v58 = vld [vmem:[#allocation21_spill] sm:$0xff] }
 0x7da   :  { %6269 = vmatpush1.bf16.msra.mxu0 %v6268_v21  ;;  %3701 = vmatmul.mubr.f32.vlgmr.msra.gmra.mrb[72].mxu1 %v3573_v17  ;;  %v3608_v21 = vsel %vm3570_vm4, %v9043_v58, %v3607_v60  ;;  %v4414_v60 = vld [vmem:[#allocation7 + $0x4e0] sm:$0xff] }
 0x7db   :  { %6126 = vmatprep.subr.bf16.mxu1 %v9028_v1  ;;  %5663 = vmatprep.mubr.msk.f32.mxu1 %vm2332_vm10, %v8218_v22  ;;  %v6133_v22 = vpack.c.bf16 %v4015_v57, %v4014_v54  ;;  %v4030_v54 = vld [vmem:[#allocation7 + $0x3c0] sm:$0xff]  ;;  %v4031_v57 = vld [vmem:[#allocation7 + $0x3c8] sm:$0xff] }
 0x7dc   :  { %6128 = vmatpush1.bf16.msra.mxu1 %v6127_v32  ;;  %4758 = vmatprep.subr.mxu0 %v8568_v3  ;;  %v4679_v32 = vrot.slane %v4597_v61, 2  ;;  %v8690_v61 = vld [vmem:[#allocation3 + $0x60] sm:$0xff] }
 0x7dd   :  { %6129 = vmatprep.subr.bf16.mxu1 %v9028_v1 }
 0x7de   :  { %4759 = vmatpush1.msra.mxu0 %v4624_v52  ;;  %3706 = vmatmul.mubr.f32.gmra.mrb[74].mxu1 %v3578_v44  ;;  %v9044_v52 = vrot.slane %v8196_v10, 6  ;;  %v6154_v44 = vpack.c.bf16 %v4029_v47, %v4028_v35  ;;  %v4032_v10 = vld [vmem:[#allocation7 + $0x3d0] sm:$0xff]  ;;  %v8697_v35 = vld [vmem:[#allocation3 + $0x70] sm:$0xff] }
 0x7df   :  { %4775 = vmatmul.mubr.f32.vlgmr.msra.gmra.mrb[90].mxu0 %v4647_v63  ;;  %5664 = vmatprep.mubr.msk.f32.mxu1 %vm2332_vm10, %v8242_v11  ;;  %v6136_v11 = vpack.c.bf16 %v4017_v8, %v4016_v18  ;;  %v6157_v63 = vpack.c.bf16 %v4031_v57, %v4030_v54  ;;  %v4005_v8 = vld [vmem:[#allocation3 + $0x10] sm:$0xc0]  ;;  %v4061_v47 = vrot.slane %v8697_v35, 6  ;;  %v4065_v54 = vrot.slane %v8347_v45, 6  ;;  %v4008_v57 = vld [vmem:[#allocation3 + $0xa8] sm:$0x3f] }
 0x7e0   :  { %6131 = vmatpush1.bf16.msra.mxu1 %v6130_v56  ;;  %5708 = vmatprep.mubr.msk.f32.mxu0 %vm2332_vm10, %v8316_v43  ;;  %v4019_v43 = vld [vmem:[#allocation7 + $0x368] sm:$0xff]  ;;  %v4044_v56 = vsel %vm133_vm2, %v4042_v33, %v9044_v52  ;;  %v4418_v33 = vld [vmem:[#allocation7 + $0x500] sm:$0xff]  ;;  %v9051_v45 = vrot.slane %v8424_v34, 6 }
 0x7e1   :  { %6132 = vmatprep.subr.bf16.mxu1 %v9028_v1 }
 0x7e2   :  { %3711 = vmatmul.mubr.f32.gmra.mrb[76].mxu1 %v8252_v30  ;;  %v6139_v30 = vpack.c.bf16 %v4019_v43, %v4018_v2  ;;  %v4409_v2 = vld [vmem:[#allocation7 + $0x4b8] sm:$0xff]  ;;  %v4039_v43 = vrot.slane %v4005_v8, 6  ;;  %v4423_v8 = vld [vmem:[#allocation7 + $0x528] sm:$0xff] }
 0x7e3   :  { %4780 = vmatmul.mubr.f32.gmra.mrb[92].mxu0 %v8328_v40  ;;  %5665 = vmatprep.mubr.msk.f32.mxu1 %vm2332_vm10, %v8284_v50  ;;  %v4020_v50 = vld [vmem:[#allocation7 + $0x370] sm:$0xff]  ;;  %v4021_v40 = vld [vmem:[#allocation7 + $0x378] sm:$0xff] }
 0x7e4   :  { %6134 = vmatpush1.bf16.msra.mxu1 %v6133_v22  ;;  %5709 = vmatprep.mubr.msk.f32.mxu0 %vm2332_vm10, %v8360_v41  ;;  %v6142_v41 = vpack.c.bf16 %v4021_v40, %v4020_v50  ;;  %v4033_v22 = vld [vmem:[#allocation7 + $0x3d8] sm:$0xff]  ;;  %v6433_v50 = vld [vmem:[#allocation3 + $0x20] sm:$0xff] }
 0x7e5   :  { %6135 = vmatprep.subr.bf16.mxu1 %v9028_v1  ;;  %v6160_v18 = vpack.c.bf16 %v4033_v22, %v4032_v10  ;;  %v4040_v40 = vrot.slane %v6433_v50, 6  ;;  %v9050_v10 = vld [vmem:[#allocation24_spill] sm:$0xff] }
 0x7e6   :  { %3716 = vmatmul.mubr.f32.gmra.mrb[78].mxu1 %v8295_v59  ;;  %v4669_v59 = vrot.slane %v8418_v37, 2 }
 0x7e7   :  { %4785 = vmatmul.mubr.f32.gmra.mrb[94].mxu0 %v8384_v25  ;;  %5666 = vmatprep.mubr.msk.f32.mxu1 %vm2332_vm10, %v8321_v6  ;;  %v4023_v25 = vld [vmem:[#allocation7 + $0x388] sm:$0xff] }
 0x7e8   :  { %6137 = vmatpush1.bf16.msra.mxu1 %v6136_v11  ;;  %5710 = vmatprep.mubr.msk.f32.mxu0 %vm2332_vm10, %v8408_v5  ;;  %v4022_v5 = vld [vmem:[#allocation7 + $0x380] sm:$0xff]  ;;  %v4674_v55 = vsel %vm3231_vm3, %v4669_v59, %v4673_v51  ;;  %v4408_v11 = vld [vmem:[#allocation7 + $0x4b0] sm:$0xff] }
 0x7e9   :  { %6138 = vmatprep.subr.bf16.mxu1 %v9028_v1  ;;  %v6145_v62 = vpack.c.bf16 %v4023_v25, %v4022_v5  ;;  %v4411_v5 = vld [vmem:[#allocation7 + $0x4c8] sm:$0xff]  ;;  %v4041_v25 = vsel %vm133_vm2, %v4039_v43, %v4040_v40  ;;  %v4066_v43 = vsel %vm133_vm2, %v4061_v47, %v4065_v54 }
 0x7ea   :  { %3721 = vmatmul.mubr.f32.gmra.mrb[80].mxu1 %v8337_v26  ;;  %v4667_v26 = vrot.slane %v8568_v3, 2 }
 0x7eb   :  { %4790 = vmatmul.mubr.f32.gmra.mrb[96].mxu0 %v8400_v28  ;;  %5667 = vmatprep.mubr.msk.f32.mxu1 %vm2332_vm10, %v8364_v7  ;;  %v8631_v28 = vld [vmem:[#allocation3 + $0xb8] sm:$0xff] }
 0x7ec   :  { %6140 = vmatpush1.bf16.msra.mxu1 %v6139_v30  ;;  %5711 = vmatprep.mubr.msk.f32.mxu0 %vm2332_vm10, %v8447_v20  ;;  %v4670_v20 = vsel %vm3231_vm3, %v8438_v38, %v4669_v59  ;;  %v4677_v42 = vrot.slane %v8631_v28, 2  ;;  %v4668_v53 = vsel %vm3231_vm3, %v8427_v29, %v4667_v26  ;;  %v3538_v38 = vld [vmem:[#allocation3 + $0x90] sm:$0xf]  ;;  %v4681_v29 = vrot.slane %v4598_v13, 2  ;;  %v4034_v30 = vld [vmem:[#allocation7 + $0x3e0] sm:$0xff] }
 0x7ed   :  { %6141 = vmatprep.subr.bf16.mxu1 %v9028_v1  ;;  %v3605_v23 = vrot.slane %v3538_v38, 4  ;;  %v6199_v59 = vpack.c.bf16 %v4409_v2, %v4408_v11  ;;  %v4415_v38 = vld [vmem:[#allocation7 + $0x4e8] sm:$0xff]  ;;  %v4075_v11 = vrot.slane %v4008_v57, 6  ;;  %v4842_v57 = vld [vmem:[#allocation7 + $0x680] sm:$0xff] }
 0x7ee   :  { %3726 = vmatmul.mubr.f32.gmra.mrb[82].mxu1 %v8389_v4  ;;  %v4024_v4 = vld [vmem:[#allocation7 + $0x390] sm:$0xff]  ;;  %v4678_v16 = vsel %vm3231_vm3, %v4673_v51, %v4677_v42  ;;  %v4682_v0 = vsel %vm3231_vm3, %v4677_v42, %v4681_v29  ;;  %v6434_v51 = vld [vmem:[#allocation3 + $0x30] sm:$0xff]  ;;  %v6208_v12 = vpack.c.bf16 %v4415_v38, %v4414_v60  ;;  %v4007_v2 = vld [vmem:[#allocation3 + $0xa0] sm:$0x3f] }
 0x7ef   :  { %4795 = vmatmul.mubr.f32.gmra.mrb[98].mxu0 %v8463_v15  ;;  %5668 = vmatprep.mubr.msk.f32.mxu1 %vm2332_vm10, %v9039_v19  ;;  %v9040_v15 = vld [vmem:[#allocation19_spill] sm:$0xff]  ;;  %v6148_v48 = vpack.c.bf16 %v4025_v9, %v4024_v4  ;;  %v3606_v17 = vsel %vm3570_vm4, %v8430_v24, %v3605_v23  ;;  %v4680_v24 = vsel %vm3231_vm3, %v4667_v26, %v4679_v32  ;;  %v4413_v4 = vld [vmem:[#allocation7 + $0x4d8] sm:$0xff]  ;;  %v9047_v23 = vld [vmem:[#allocation16_spill] sm:$0xff] }
 0x7f0   :  { %6143 = vmatpush1.bf16.msra.mxu1 %v6142_v41  ;;  %5712 = vmatprep.mubr.msk.f32.mxu0 %vm2332_vm10, %v4670_v20  ;;  %v4410_v41 = vld [vmem:[#allocation7 + $0x4c0] sm:$0xff]  ;;  %v4419_v32 = vld [vmem:[#allocation7 + $0x508] sm:$0xff] }
 0x7f1   :  { %6144 = vmatprep.subr.bf16.mxu1 %v9028_v1  ;;  %v9045_v20 = vld [vmem:[#allocation14_spill] sm:$0xff]  ;;  %v6202_v39 = vpack.c.bf16 %v4411_v5, %v4410_v41  ;;  %v6214_v52 = vpack.c.bf16 %v4419_v32, %v4418_v33  ;;  %v4424_v41 = vld [vmem:[#allocation7 + $0x530] sm:$0xff]  ;;  %v4425_v5 = vld [vmem:[#allocation7 + $0x538] sm:$0xff] }
 0x7f2   :  { %3731 = vmatmul.mubr.f32.gmra.mrb[84].mxu1 %v9040_v15  ;;  %v9046_v15 = vld [vmem:[#allocation15_spill] sm:$0xff]  ;;  %v4834_v38 = vld [vmem:[#allocation7 + $0x640] sm:$0xff] }
 0x7f3   :  { %4800 = vmatmul.mubr.f32.gmra.mrb[100].mxu0 %v4668_v53  ;;  %5669 = vmatprep.mubr.msk.f32.mxu1 %vm2332_vm10, %v9041_v46  ;;  %v4391_v33 = vld [vmem:[#allocation3 + $0x40] sm:$0xff]  ;;  %v4394_v32 = vld [vmem:[#allocation3 + $0x58] sm:$0xff] }
 0x7f4   :  { %6146 = vmatpush1.bf16.msra.mxu1 %v6145_v62  ;;  %5713 = vmatprep.mubr.msk.f32.mxu0 %vm2332_vm10, %v4674_v55  ;;  %v4412_v62 = vld [vmem:[#allocation7 + $0x4d0] sm:$0xff]  ;;  %v8676_v55 = vld [vmem:[#allocation3 + $0x40] sm:$0xff] }
 0x7f5   :  { %6147 = vmatprep.subr.bf16.mxu1 %v9028_v1  ;;  %v4049_v42 = vrot.slane %v8676_v55, 6  ;;  %v6205_v53 = vpack.c.bf16 %v4413_v4, %v4412_v62  ;;  %v4428_v4 = vld [vmem:[#allocation7 + $0x550] sm:$0xff] }
 0x7f6   :  { %3736 = vmatmul.mubr.f32.gmra.mrb[86].mxu1 %v9042_v14  ;;  %v4057_v14 = vrot.slane %v8690_v61, 6 }
 0x7f7   :  { %5670 = vmatprep.mubr.msk.f32.mxu1 %vm2332_vm10, %v3608_v21  ;;  %4805 = vmatmul.mubr.f32.gmra.mrb[102].mxu0 %v4667_v26  ;;  %v9048_v21 = vld [vmem:[#allocation17_spill] sm:$0xff] }
 0x7f8   :  { %6149 = vmatpush1.bf16.msra.mxu1 %v6148_v48  ;;  %5714 = vmatprep.mubr.msk.f32.mxu0 %vm2332_vm10, %v4678_v16  ;;  %v8683_v48 = vld [vmem:[#allocation3 + $0x50] sm:$0xff] }
 0x7f9   :  { %6150 = vmatprep.subr.bf16.mxu1 %v9028_v1  ;;  %v4053_v27 = vrot.slane %v8683_v48, 6  ;;  %v4417_v16 = vld [vmem:[#allocation7 + $0x4f8] sm:$0xff] }
 0x7fa   :  { %3741 = vmatmul.mubr.f32.gmra.mrb[88].mxu1 %v3606_v17 }
 0x7fb   :  { %5680 = vmatprep.mubr.msk.f32.mxu1 %vm2332_vm10, %v4044_v56  ;;  %4810 = vmatmul.mubr.f32.gmra.mrb[104].mxu0 %v4667_v26  ;;  %v4045_v26 = vrot.slane %v6434_v51, 6  ;;  %v4054_v29 = vsel %vm133_vm2, %v4049_v42, %v4053_v27  ;;  %v4058_v17 = vsel %vm133_vm2, %v4053_v27, %v4057_v14  ;;  %v4420_v56 = vld [vmem:[#allocation7 + $0x510] sm:$0xff]  ;;  %v6223_v51 = vpack.c.bf16 %v4425_v5, %v4424_v41 }
 0x7fc   :  { %6152 = vmatpush1.bf16.msra.mxu1 %v6151_v31  ;;  %5715 = vmatprep.mubr.msk.f32.mxu0 %vm2332_vm10, %v4682_v0  ;;  %v6211_v31 = vpack.c.bf16 %v4417_v16, %v4416_v36  ;;  %v9049_v0 = vld [vmem:[#allocation20_spill] sm:$0xff]  ;;  %v4837_v36 = vld [vmem:[#allocation7 + $0x658] sm:$0xff] }
 0x7fd   :  { %6153 = vmatprep.subr.bf16.mxu1 %v9028_v1  ;;  %v4046_v9 = vsel %vm133_vm2, %v4040_v40, %v4045_v26  ;;  %v4050_v13 = vsel %vm133_vm2, %v4045_v26, %v4049_v42  ;;  %v4073_v40 = vrot.slane %v4007_v2, 6  ;;  %v4426_v26 = vld [vmem:[#allocation7 + $0x540] sm:$0xff]  ;;  %v4432_v27 = vld [vmem:[#allocation7 + $0x570] sm:$0xff]  ;;  %v4389_v16 = vld [vmem:[#allocation3 + $0x30] sm:$0xff] }
 0x7ff   :  { %4815 = vmatmul.mubr.f32.gmra.mrb[106].mxu0 %v4680_v24  ;;  %v4062_v24 = vsel %vm133_vm2, %v4057_v14, %v4061_v47  ;;  %v4840_v47 = vld [vmem:[#allocation7 + $0x670] sm:$0xff] }
 0x800   :  { %6155 = vmatpush1.bf16.msra.mxu1 %v6154_v44  ;;  %5166 = vmatprep.mubr.f32.mxu0 %v8568_v3  ;;  %v4421_v44 = vld [vmem:[#allocation7 + $0x518] sm:$0xff] }
 0x801   :  { %6156 = vmatprep.subr.bf16.mxu1 %v9028_v1  ;;  %v6217_v22 = vpack.c.bf16 %v4421_v44, %v4420_v56  ;;  %v4396_v56 = vld [vmem:[#allocation3 + $0x68] sm:$0xff] }
 0x804   :  { %6158 = vmatpush1.bf16.msra.mxu1 %v6157_v63  ;;  %v4071_v63 = vrot.slane %v8418_v37, 6 }
 0x805   :  { %6159 = vmatprep.subr.bf16.mxu1 %v9028_v1 }
 0x806   :  { %v4072_v37 = vsel %vm133_vm2, %v9051_v45, %v4071_v63  ;;  %v4845_v45 = vld [vmem:[#allocation7 + $0x698] sm:$0xff] }
 0x808   :  { %6161 = vmatpush1.bf16.msra.mxu1 %v6160_v18  ;;  %v4422_v18 = vld [vmem:[#allocation7 + $0x520] sm:$0xff] }
 0x809   :  { %4152 = vmatprep.subr.mxu1 %v8568_v3  ;;  %v6220_v50 = vpack.c.bf16 %v4423_v8, %v4422_v18 }
 0x80c   :  { %4153 = vmatpush1.msra.mxu1 %v4034_v30  ;;  %v4069_v30 = vrot.slane %v8568_v3, 6 }
 0x80d   :  { %4169 = vmatmul.mubr.f32.vlgmr.msra.gmra.mrb[90].mxu1 %v4041_v25  ;;  %6198 = vmatprep.subr.bf16.mxu1 %v9028_v1 }
 0x80e   :  { %5681 = vmatprep.mubr.msk.f32.mxu1 %vm2332_vm10, %v9045_v20  ;;  %6200 = vmatpush1.bf16.msra.mxu1 %v6199_v59  ;;  %v4076_v59 = vsel %vm133_vm2, %v4071_v63, %v4075_v11  ;;  %v4070_v25 = vsel %vm133_vm2, %v4065_v54, %v4069_v30  ;;  %v4074_v34 = vsel %vm133_vm2, %v4069_v30, %v4073_v40  ;;  %v4427_v20 = vld [vmem:[#allocation7 + $0x548] sm:$0xff]  ;;  %v4844_v30 = vld [vmem:[#allocation7 + $0x690] sm:$0xff]  ;;  %vm5072_vm2 = vcmask 48128  }
 0x80f   :  { %6201 = vmatprep.subr.bf16.mxu1 %v9028_v1  ;;  %v6226_v62 = vpack.c.bf16 %v4427_v20, %v4426_v26  ;;  %v4843_v63 = vld [vmem:[#allocation7 + $0x688] sm:$0xff]  ;;  %v6286_v41 = vpack.c.bf16 %v4845_v45, %v4844_v30 }
 0x810   :  { %v6283_v11 = vpack.c.bf16 %v4843_v63, %v4842_v57  ;;  %v4847_v26 = vld [vmem:[#allocation7 + $0x6a8] sm:$0xff] }
 0x811   :  { %4174 = vmatmul.mubr.f32.gmra.mrb[92].mxu1 %v4046_v9  ;;  %v4429_v9 = vld [vmem:[#allocation7 + $0x558] sm:$0xff]  ;;  %v4399_v20 = vld [vmem:[#allocation3 + $0x80] sm:$0xff] }
 0x812   :  { %5682 = vmatprep.mubr.msk.f32.mxu1 %vm2332_vm10, %v9046_v15  ;;  %6203 = vmatpush1.bf16.msra.mxu1 %v6202_v39  ;;  %v4390_v39 = vld [vmem:[#allocation3 + $0x38] sm:$0xff]  ;;  %v6229_v42 = vpack.c.bf16 %v4429_v9, %v4428_v4 }
 0x813   :  { %6204 = vmatprep.subr.bf16.mxu1 %v9028_v1  ;;  %v4430_v15 = vld [vmem:[#allocation7 + $0x560] sm:$0xff] }
 0x815   :  { %4179 = vmatmul.mubr.f32.gmra.mrb[94].mxu1 %v4050_v13  ;;  %v4835_v13 = vld [vmem:[#allocation7 + $0x648] sm:$0xff] }
 0x816   :  { %5683 = vmatprep.mubr.msk.f32.mxu1 %vm2332_vm10, %v9047_v23  ;;  %6206 = vmatpush1.bf16.msra.mxu1 %v6205_v53  ;;  %v4431_v53 = vld [vmem:[#allocation7 + $0x568] sm:$0xff]  ;;  %v6271_v23 = vpack.c.bf16 %v4835_v13, %v4834_v38 }
 0x817   :  { %6207 = vmatprep.subr.bf16.mxu1 %v9028_v1  ;;  %v6232_v60 = vpack.c.bf16 %v4431_v53, %v4430_v15  ;;  %v4848_v15 = vld [vmem:[#allocation7 + $0x6b0] sm:$0xff]  ;;  %v4849_v53 = vld [vmem:[#allocation7 + $0x6b8] sm:$0xff] }
 0x818   :  { %v6292_v13 = vpack.c.bf16 %v4849_v53, %v4848_v15  ;;  %v4869_v53 = vrot.slane %v8683_v48, 4 }
 0x819   :  { %4184 = vmatmul.mubr.f32.gmra.mrb[96].mxu1 %v4054_v29  ;;  %v4392_v29 = vld [vmem:[#allocation3 + $0x48] sm:$0xff] }
 0x81a   :  { %5684 = vmatprep.mubr.msk.f32.mxu1 %vm2332_vm10, %v9048_v21  ;;  %6209 = vmatpush1.bf16.msra.mxu1 %v6208_v12  ;;  %v4836_v12 = vld [vmem:[#allocation7 + $0x650] sm:$0xff]  ;;  %v4838_v21 = vld [vmem:[#allocation7 + $0x660] sm:$0xff] }
 0x81b   :  { %6210 = vmatprep.subr.bf16.mxu1 %v9028_v1  ;;  %v6274_v14 = vpack.c.bf16 %v4837_v36, %v4836_v12  ;;  %v4850_v12 = vld [vmem:[#allocation7 + $0x6c0] sm:$0xff]  ;;  %v4851_v36 = vld [vmem:[#allocation7 + $0x6c8] sm:$0xff] }
 0x81d   :  { %4189 = vmatmul.mubr.f32.gmra.mrb[98].mxu1 %v4058_v17 }
 0x81e   :  { %5685 = vmatprep.mubr.msk.f32.mxu1 %vm2332_vm10, %v9049_v0  ;;  %6212 = vmatpush1.bf16.msra.mxu1 %v6211_v31  ;;  %v4839_v31 = vld [vmem:[#allocation7 + $0x668] sm:$0xff]  ;;  %v4841_v0 = vld [vmem:[#allocation7 + $0x678] sm:$0xff] }
 0x81f   :  { %6213 = vmatprep.subr.bf16.mxu1 %v9028_v1  ;;  %v6277_v17 = vpack.c.bf16 %v4839_v31, %v4838_v21  ;;  %v6295_v21 = vpack.c.bf16 %v4851_v36, %v4850_v12  ;;  %v6440_v36 = vld [vmem:[#allocation3 + $0x98] sm:$0xff] }
 0x821   :  { %4194 = vmatmul.mubr.f32.gmra.mrb[100].mxu1 %v4062_v24  ;;  %v6280_v24 = vpack.c.bf16 %v4841_v0, %v4840_v47  ;;  %v4853_v47 = vld [vmem:[#allocation7 + $0x6d8] sm:$0xff] }
 0x822   :  { %5686 = vmatprep.mubr.msk.f32.mxu1 %vm2332_vm10, %v9050_v10  ;;  %6215 = vmatpush1.bf16.msra.mxu1 %v6214_v52  ;;  %v4393_v52 = vld [vmem:[#allocation3 + $0x50] sm:$0xff]  ;;  %v4395_v10 = vld [vmem:[#allocation3 + $0x60] sm:$0xff] }
 0x823   :  { %6216 = vmatprep.subr.bf16.mxu1 %v9028_v1  ;;  %v9052_v0 = vld [vmem:[#allocation13_spill] sm:$0xff] }
 0x825   :  { %4199 = vmatmul.mubr.f32.gmra.mrb[102].mxu1 %v4066_v43 }
 0x826   :  { %5687 = vmatprep.mubr.msk.f32.mxu1 %vm2332_vm10, %v4072_v37  ;;  %6218 = vmatpush1.bf16.msra.mxu1 %v6217_v22  ;;  %v4398_v22 = vld [vmem:[#allocation3 + $0x78] sm:$0xff]  ;;  %v4397_v37 = vld [vmem:[#allocation3 + $0x70] sm:$0xff] }
 0x827   :  { %6219 = vmatprep.subr.bf16.mxu1 %v9028_v1 }
 0x829   :  { %4204 = vmatmul.mubr.f32.gmra.mrb[104].mxu1 %v4070_v25 }
 0x82a   :  { %6221 = vmatpush1.bf16.msra.mxu1 %v6220_v50  ;;  %5688 = vmatprep.mubr.msk.f32.mxu1 %vm2332_vm10, %v4076_v59  ;;  %v4400_v50 = vld [vmem:[#allocation3 + $0x88] sm:$0xff] }
 0x82b   :  { %6222 = vmatprep.subr.bf16.mxu1 %v9028_v1 }
 0x82d   :  { %4209 = vmatmul.mubr.f32.gmra.mrb[106].mxu1 %v4074_v34  ;;  %v4402_v34 = vld [vmem:[#allocation3 + $0x98] sm:$0xff] }
 0x82e   :  { %6224 = vmatpush1.bf16.msra.mxu1 %v6223_v51  ;;  %5698 = vmatprep.mubr.msk.f32.mxu1 %vm2332_vm10, %v4390_v39  ;;  %v4846_v51 = vld [vmem:[#allocation7 + $0x6a0] sm:$0xff] }
 0x82f   :  { %6225 = vmatprep.subr.bf16.mxu1 %v9028_v1  ;;  %v6289_v4 = vpack.c.bf16 %v4847_v26, %v4846_v51  ;;  %v4829_v26 = vld [vmem:[#allocation3 + $0x30] sm:$0xf0] }
 0x832   :  { %6227 = vmatpush1.bf16.msra.mxu1 %v6226_v62 }
 0x833   :  { %6228 = vmatprep.subr.bf16.mxu1 %v9028_v1 }
 0x836   :  { %6230 = vmatpush1.bf16.msra.mxu1 %v6229_v42 }
 0x837   :  { %6231 = vmatprep.subr.bf16.mxu1 %v9028_v1 }
 0x83a   :  { %6233 = vmatpush1.bf16.msra.mxu1 %v6232_v60 }
 0x83b   :  { %4508 = vmatprep.subr.mxu1 %v8568_v3 }
 0x83e   :  { %4509 = vmatpush1.msra.mxu1 %v4432_v27 }
 0x83f   :  { %4525 = vmatmul.mubr.f32.vlgmr.msra.gmra.mrb[108].mxu1 %v4389_v16  ;;  %6270 = vmatprep.subr.bf16.mxu1 %v9028_v1  ;;  %v4830_v16 = vld [vmem:[#allocation3 + $0x38] sm:$0xf0] }
 0x840   :  { %5699 = vmatprep.mubr.msk.f32.mxu1 %vm2332_vm10, %v4392_v29  ;;  %6272 = vmatpush1.bf16.msra.mxu1 %v6271_v23 }
 0x841   :  { %6273 = vmatprep.subr.bf16.mxu1 %v9028_v1 }
 0x843   :  { %4530 = vmatmul.mubr.f32.gmra.mrb[110].mxu1 %v4391_v33 }
 0x844   :  { %5700 = vmatprep.mubr.msk.f32.mxu1 %vm2332_vm10, %v4394_v32  ;;  %6275 = vmatpush1.bf16.msra.mxu1 %v6274_v14  ;;  %v4866_v32 = vrot.slane %v4830_v16, 4 }
 0x845   :  { %6276 = vmatprep.subr.bf16.mxu1 %v9028_v1 }
 0x847   :  { %4535 = vmatmul.mubr.f32.gmra.mrb[112].mxu1 %v4393_v52  ;;  %v4868_v52 = vsel %vm3570_vm4, %v4866_v32, %v9052_v0 }
 0x848   :  { %5701 = vmatprep.mubr.msk.f32.mxu1 %vm2332_vm10, %v4396_v56  ;;  %6278 = vmatpush1.bf16.msra.mxu1 %v6277_v17  ;;  %v8732_v44 = vpop.f32.mrb[36].mxu1  ;;  %v4852_v17 = vld [vmem:[#allocation7 + $0x6d0] sm:$0xff] }
 0x849   :  { %6279 = vmatprep.subr.bf16.mxu1 %v9028_v1  ;;  %v3365_v54 = vpop.f32.mrb[37].mxu1 }
 0x84a   :  { %v6298_v54 = vpack.c.bf16 %v4853_v47, %v4852_v17 }
 0x84b   :  { %4540 = vmatmul.mubr.f32.gmra.mrb[114].mxu1 %v4395_v10  ;;  %v4854_v10 = vld [vmem:[#allocation7 + $0x6e0] sm:$0xff] }
 0x84c   :  { %5702 = vmatprep.mubr.msk.f32.mxu1 %vm2332_vm10, %v4398_v22  ;;  %6281 = vmatpush1.bf16.msra.mxu1 %v6280_v24  ;;  %v8736_v18 = vpop.f32.mrb[38].mxu1  ;;  %v8738_v8 = vpop.f32.mrb[54].mxu0  ;;  %v4855_v22 = vld [vmem:[#allocation7 + $0x6e8] sm:$0xff] }
 0x84d   :  { %6282 = vmatprep.subr.bf16.mxu1 %v9028_v1  ;;  %v3370_v2 = vpop.f32.mrb[39].mxu1  ;;  %v3954_v43 = vpop.f32.mrb[55].mxu0 }
 0x84e   :  { %v6301_v43 = vpack.c.bf16 %v4855_v22, %v4854_v10 }
 0x84f   :  { %4545 = vmatmul.mubr.f32.gmra.mrb[116].mxu1 %v4397_v37  ;;  %v4856_v37 = vld [vmem:[#allocation7 + $0x6f0] sm:$0xff] }
 0x850   :  { %5703 = vmatprep.mubr.msk.f32.mxu1 %vm2332_vm10, %v4400_v50  ;;  %6284 = vmatpush1.bf16.msra.mxu1 %v6283_v11  ;;  %v8742_v40 = vpop.f32.mrb[40].mxu1  ;;  %v8744_v59 = vpop.f32.mrb[56].mxu0  ;;  %v4857_v50 = vld [vmem:[#allocation7 + $0x6f8] sm:$0xff] }
 0x851   :  { %6285 = vmatprep.subr.bf16.mxu1 %v9028_v1  ;;  %v3375_v5 = vpop.f32.mrb[41].mxu1  ;;  %v3959_v25 = vpop.f32.mrb[57].mxu0 }
 0x852   :  { %v6304_v25 = vpack.c.bf16 %v4857_v50, %v4856_v37 }
 0x853   :  { %4550 = vmatmul.mubr.f32.gmra.mrb[118].mxu1 %v4399_v20  ;;  %v4863_v20 = vrot.slane %v4829_v26, 4 }
 0x854   :  { %6287 = vmatpush1.bf16.msra.mxu1 %v6286_v41  ;;  %5704 = vmatprep.mubr.msk.f32.mxu1 %vm2332_vm10, %v4402_v34  ;;  %v3378_v39 = vpop.f32.mrb[42].mxu1  ;;  %v8748_v62 = vpop.f32.mrb[58].mxu0 }
 0x855   :  { %6288 = vmatprep.subr.bf16.mxu1 %v9028_v1  ;;  %v3380_v9 = vpop.f32.mrb[43].mxu1  ;;  %v3964_v42 = vpop.f32.mrb[59].mxu0 }
 0x856   :  { %v4864_v42 = vrot.slane %v8676_v55, 4 }
 0x857   :  { %4555 = vmatmul.mubr.f32.gmra.mrb[120].mxu1 %v8568_v3 }
 0x858   :  { %6290 = vmatpush1.bf16.msra.mxu1 %v6289_v4  ;;  %5705 = vmatprep.mubr.msk.f32.mxu1 %vm2332_vm10, %v8564_v49  ;;  %v3383_v60 = vpop.f32.mrb[44].mxu1  ;;  %v3967_v38 = vpop.f32.mrb[60].mxu0  ;;  %v4858_v4 = vld [vmem:[#allocation7 + $0x700] sm:$0xff]  ;;  %v4865_v15 = vsel %vm3570_vm4, %v4863_v20, %v4864_v42 }
 0x859   :  { %6291 = vmatprep.subr.bf16.mxu1 %v9028_v1  ;;  %v3385_v27 = vpop.f32.mrb[45].mxu1  ;;  %v3969_v23 = vpop.f32.mrb[61].mxu0  ;;  %v4870_v60 = vsel %vm3570_vm4, %v4864_v42, %v4869_v53  ;;  %v4873_v38 = vrot.slane %v8690_v61, 4  ;;  %v6439_v61 = vld [vmem:[#allocation3 + $0x80] sm:$0xff] }
 0x85a   :  { %v4881_v12 = vrot.slane %v6439_v61, 4 }
 0x85b   :  { %4560 = vmatmul.mubr.f32.gmra.mrb[122].mxu1 %v8568_v3  ;;  %v4874_v55 = vsel %vm3570_vm4, %v4869_v53, %v4873_v38 }
 0x85c   :  { %6293 = vmatpush1.bf16.msra.mxu1 %v6292_v13  ;;  %5706 = vmatprep.mubr.msk.f32.mxu1 %vm2332_vm10, %v8631_v28  ;;  %v3388_v29 = vpop.f32.mrb[46].mxu1  ;;  %v3972_v14 = vpop.f32.mrb[62].mxu0  ;;  %v4877_v13 = vrot.slane %v8697_v35, 4 }
 0x85d   :  { %6294 = vmatprep.subr.bf16.mxu1 %v9028_v1  ;;  %v3390_v31 = vpop.f32.mrb[47].mxu1  ;;  %v3974_v33 = vpop.f32.mrb[63].mxu0 }
 0x85e   :  { %v4878_v23 = vsel %vm3570_vm4, %v4873_v38, %v4877_v13  ;;  %v4885_v31 = vrot.slane %v8568_v3, 4 }
 0x85f   :  { %4565 = vmatmul.mubr.f32.gmra.mrb[124].mxu1 %v8568_v3 }
 0x860   :  { %6296 = vmatpush1.bf16.msra.mxu1 %v6295_v21  ;;  %5716 = vmatprep.mubr.msk.f32.mxu1 %vm2332_vm10, %v4868_v52  ;;  %v3393_v56 = vpop.f32.mrb[48].mxu1  ;;  %v3977_v24 = vpop.f32.mrb[64].mxu0  ;;  %v4882_v21 = vsel %vm3570_vm4, %v4877_v13, %v4881_v12  ;;  %v4886_v52 = vsel %vm3570_vm4, %v4881_v12, %v4885_v31 }
 0x861   :  { %6297 = vmatprep.subr.bf16.mxu1 %v9028_v1  ;;  %v3395_v57 = vpop.f32.mrb[49].mxu1  ;;  %v3979_v63 = vpop.f32.mrb[65].mxu0 }
 0x862   :  { %v4831_v63 = vld [vmem:[#allocation3 + $0xc0] sm:$0xf] }
 0x864   :  { %6299 = vmatpush1.bf16.msra.mxu1 %v6298_v54  ;;  %v3398_v11 = vpop.f32.mrb[50].mxu1  ;;  %v3982_v2 = vpop.f32.mrb[66].mxu0 }
 0x865   :  { %6300 = vmatprep.subr.bf16.mxu1 %v9028_v1  ;;  %v3400_v30 = vpop.f32.mrb[51].mxu1  ;;  %v3984_v45 = vpop.f32.mrb[67].mxu0 }
 0x868   :  { %6302 = vmatpush1.bf16.msra.mxu1 %v6301_v43  ;;  %v3403_v41 = vpop.f32.mrb[52].mxu1  ;;  %v3987_v5 = vpop.f32.mrb[68].mxu0 }
 0x869   :  { %6303 = vmatprep.subr.bf16.mxu1 %v9028_v1  ;;  %v3405_v34 = vpop.f32.mrb[53].mxu1  ;;  %v3989_v51 = vpop.f32.mrb[69].mxu0 }
 0x86c   :  { %6305 = vmatpush1.bf16.msra.mxu1 %v6304_v25  ;;  %v3992_v39 = vpop.f32.mrb[70].mxu0 }
 0x86d   :  { %4976 = vmatprep.subr.mxu1 %v8568_v3  ;;  %v3994_v9 = vpop.f32.mrb[71].mxu0  ;;  %v4832_v3 = vld [vmem:[#allocation3 + $0xc8] sm:$0xf] }
 0x870   :  { %4977 = vmatpush1.msra.mxu1 %v4858_v4 }
 0x871   :  { %4993 = vmatmul.mubr.f32.vlgmr.msra.gmra.mrb[126].mxu1 %v4865_v15  ;;  %6306 = vmatprep.subr.bf16.mxu1 %v9028_v1 }
 0x872   :  { %5717 = vmatprep.mubr.msk.f32.mxu1 %vm2332_vm10, %v8321_v6 }
 0x875   :  { %4998 = vmatmul.mubr.f32.gmra.mrb[128].mxu1 %v4870_v60 }
 0x876   :  { %5718 = vmatprep.mubr.msk.f32.mxu1 %vm2332_vm10, %v8364_v7  ;;  %v4887_v7 = vrot.slane %v6440_v36, 4 }
 0x878   :  { %v4888_v33 = vsel %vm3570_vm4, %v9043_v58, %v4887_v7 }
 0x879   :  { %5003 = vmatmul.mubr.f32.gmra.mrb[130].mxu1 %v4874_v55 }
 0x87a   :  { %5719 = vmatprep.mubr.msk.f32.mxu1 %vm2332_vm10, %v9039_v19  ;;  %v3492_v48 = vpop.f32.mrb[54].mxu1 }
 0x87b   :  { %v8782_v27 = vadd.f32 %v3492_v48, %v8732_v44  ;;  %v3494_v6 = vpop.f32.mrb[55].mxu1  ;;  %v4891_v44 = vrot.slane %v8564_v49, 4  ;;  %v4895_v49 = vrot.slane %v8631_v28, 4  ;;  %v4897_v28 = vrot.slane %v4831_v63, 4 }
 0x87d   :  { %5008 = vmatmul.mubr.f32.gmra.mrb[132].mxu1 %v4878_v23  ;;  %v4892_v0 = vsel %vm3570_vm4, %v4887_v7, %v4891_v44  ;;  %v4896_v57 = vsel %vm3570_vm4, %v4891_v44, %v4895_v49  ;;  %v4898_v37 = vsel %vm3570_vm4, %v4885_v31, %v4897_v28  ;;  %v8828_v28 = vld [vmem:[#allocation3 + $0x90] sm:$0xff] }
 0x87e   :  { %5720 = vmatprep.mubr.msk.f32.mxu1 %vm2332_vm10, %v9041_v46  ;;  %v3497_v35 = vpop.f32.mrb[56].mxu1  ;;  %v8787_v16 = vpop.f32.mrb[72].mxu0 }
 0x87f   :  { %v3498_v19 = vadd.f32 %v3497_v35, %v8736_v18  ;;  %v3499_v29 = vpop.f32.mrb[57].mxu1  ;;  %v4338_v14 = vpop.f32.mrb[73].mxu0  ;;  %v5727_v35 = vld [vmem:[%s8990_s13 + $0x18] sm:$0x3f] }
 0x880   :  { %5728 = vmatprep.subr.msk.mxu0 %vm3231_vm3, %v5727_v35 }
 0x881   :  { %5013 = vmatmul.mubr.f32.gmra.mrb[134].mxu1 %v4882_v21 }
 0x882   :  { %5721 = vmatprep.mubr.msk.f32.mxu1 %vm2332_vm10, %v4888_v33  ;;  %v3502_v46 = vpop.f32.mrb[58].mxu1  ;;  %v8796_v32 = vpop.f32.mrb[74].mxu0 }
 0x883   :  { %v3503_v17 = vadd.f32 %v3502_v46, %v8742_v40  ;;  %v3504_v18 = vpop.f32.mrb[59].mxu1  ;;  %v4343_v47 = vpop.f32.mrb[75].mxu0  ;;  %v4899_v40 = vrot.slane %v4832_v3, 4 }
 0x885   :  { %5018 = vmatmul.mubr.f32.gmra.mrb[136].mxu1 %v4886_v52  ;;  %v4900_v43 = vsel %vm3570_vm4, %v4895_v49, %v4899_v40 }
 0x886   :  { %v3507_v56 = vpop.f32.mrb[60].mxu1  ;;  %v8802_v24 = vpop.f32.mrb[76].mxu0  ;;  %5722 = vmatprep.mubr.msk.f32.mxu1 %vm2332_vm10, %v4892_v0 }
 0x887   :  { %v3509_v58 = vpop.f32.mrb[61].mxu1  ;;  %v4348_v54 = vpop.f32.mrb[77].mxu0 }
 0x889   :  { %5023 = vmatmul.mubr.f32.gmra.mrb[138].mxu1 %v4885_v31 }
 0x88a   :  { %v3512_v10 = vpop.f32.mrb[62].mxu1  ;;  %v4351_v22 = vpop.f32.mrb[78].mxu0  ;;  %5723 = vmatprep.mubr.msk.f32.mxu1 %vm2332_vm10, %v4896_v57 }
 0x88b   :  { %v3514_v11 = vpop.f32.mrb[63].mxu1  ;;  %v4353_v2 = vpop.f32.mrb[79].mxu0 }
 0x88d   :  { %5028 = vmatmul.mubr.f32.gmra.mrb[140].mxu1 %v4885_v31 }
 0x88e   :  { %v3517_v30 = vpop.f32.mrb[64].mxu1  ;;  %v4356_v45 = vpop.f32.mrb[80].mxu0  ;;  %5724 = vmatprep.mubr.msk.f32.mxu1 %vm2332_vm10, %v4900_v43 }
 0x88f   :  { %v3519_v50 = vpop.f32.mrb[65].mxu1  ;;  %v4358_v41 = vpop.f32.mrb[81].mxu0 }
 0x890   :  { %v5088_v41 = vld [vmem:[%s8990_s13 + $0x8] sm:$0x3f] }
 0x891   :  { %5033 = vmatmul.mubr.f32.gmra.mrb[142].mxu1 %v4898_v37 }
 0x892   :  { %v3522_v5 = vpop.f32.mrb[66].mxu1  ;;  %v4361_v25 = vpop.f32.mrb[82].mxu0 }
 0x893   :  { %v3524_v34 = vpop.f32.mrb[67].mxu1  ;;  %v4363_v51 = vpop.f32.mrb[83].mxu0 }
 0x896   :  { %v3527_v26 = vpop.f32.mrb[68].mxu1  ;;  %v4366_v20 = vpop.f32.mrb[84].mxu0 }
 0x897   :  { %v3529_v39 = vpop.f32.mrb[69].mxu1  ;;  %v4368_v4 = vpop.f32.mrb[85].mxu0 }
 0x89a   :  { %v3532_v9 = vpop.f32.mrb[70].mxu1  ;;  %v4371_v42 = vpop.f32.mrb[86].mxu0 }
 0x89b   :  { %v3534_v15 = vpop.f32.mrb[71].mxu1  ;;  %v4373_v53 = vpop.f32.mrb[87].mxu0 }
 0x89e   :  { %v4376_v60 = vpop.f32.mrb[88].mxu0 }
 0x89f   :  { %v4378_v38 = vpop.f32.mrb[89].mxu0 }
 0x8ad   :  { %v3702_v55 = vpop.f32.mrb[72].mxu1 }
 0x8ae   :  { %v3746_v13 = vadd.f32 %v3702_v55, %v8782_v27  ;;  %v3704_v48 = vpop.f32.mrb[73].mxu1  ;;  %v5726_v27 = vld [vmem:[%s8990_s13 + $0x10] sm:$0x3f]  ;;  %v5441_v55 = vld [vmem:[%s8992_s15] sm:$0xff] }
 0x8af   :  { %5729 = vmatpush1.msk.msra.mxu0 %vm3231_vm3, %v5726_v27  ;;  %v5448_v27 = vld [vmem:[%s8992_s15 + $0x38] sm:$0xff] }
 0x8b0   :  { %v3996_v6 = vadd.f32 %v8738_v8, %v3746_v13  ;;  %5731 = vmatprep.subr.msk.mxu0 %vm3231_vm3, %v5088_v41 }
 0x8b1   :  { %v3707_v23 = vpop.f32.mrb[74].mxu1 }
 0x8b2   :  { %v3747_v61 = vadd.f32 %v3707_v23, %v3498_v19  ;;  %v8812_v12 = vpop.f32.mrb[90].mxu0  ;;  %v3709_v36 = vpop.f32.mrb[75].mxu1 }
 0x8b3   :  { %v4778_v7 = vpop.f32.mrb[91].mxu0  ;;  %v5446_v36 = vld [vmem:[%s8992_s15 + $0x28] sm:$0xff] }
 0x8b4   :  { %v3997_v29 = vadd.f32 %v8744_v59, %v3747_v61  ;;  %v5445_v61 = vld [vmem:[%s8992_s15 + $0x20] sm:$0xff] }
 0x8b5   :  { %v3712_v14 = vpop.f32.mrb[76].mxu1 }
 0x8b6   :  { %v3748_v8 = vadd.f32 %v3712_v14, %v3503_v17  ;;  %v8822_v44 = vpop.f32.mrb[92].mxu0  ;;  %v3714_v19 = vpop.f32.mrb[77].mxu1  ;;  %v5447_v14 = vld [vmem:[%s8992_s15 + $0x30] sm:$0xff] }
 0x8b7   :  { %v4783_v21 = vpop.f32.mrb[93].mxu0 }
 0x8b8   :  { %v3998_v31 = vadd.f32 %v8748_v62, %v3748_v8  ;;  %v6316_v21 = vpack.c.bf16 %v5448_v27, %v5447_v14 }
 0x8b9   :  { %v3717_v33 = vpop.f32.mrb[78].mxu1 }
 0x8ba   :  { %v8826_v46 = vpop.f32.mrb[94].mxu0  ;;  %v3719_v59 = vpop.f32.mrb[79].mxu1  ;;  %v5450_v33 = vld [vmem:[%s8992_s15 + $0x48] sm:$0xff] }
 0x8bb   :  { %v4788_v18 = vpop.f32.mrb[95].mxu0 }
 0x8bd   :  { %v3722_v47 = vpop.f32.mrb[80].mxu1 }
 0x8be   :  { %v4791_v0 = vpop.f32.mrb[96].mxu0  ;;  %v3724_v49 = vpop.f32.mrb[81].mxu1 }
 0x8bf   :  { %v4793_v52 = vpop.f32.mrb[97].mxu0  ;;  %v5451_v0 = vld [vmem:[%s8992_s15 + $0x50] sm:$0xff]  ;;  %v5452_v49 = vld [vmem:[%s8992_s15 + $0x58] sm:$0xff] }
 0x8c1   :  { %v3727_v3 = vpop.f32.mrb[82].mxu1 }
 0x8c2   :  { %v4796_v56 = vpop.f32.mrb[98].mxu0  ;;  %v3729_v17 = vpop.f32.mrb[83].mxu1 }
 0x8c3   :  { %v4798_v58 = vpop.f32.mrb[99].mxu0  ;;  %v6322_v56 = vpack.c.bf16 %v5452_v49, %v5451_v0  ;;  %v5453_v17 = vld [vmem:[%s8992_s15 + $0x60] sm:$0xff]  ;;  %v5735_v49 = vld [vmem:[%s8990_s13 + $0x28] sm:$0x3f] }
 0x8c4   :  { %v5454_v58 = vld [vmem:[%s8992_s15 + $0x68] sm:$0xff] }
 0x8c5   :  { %v3732_v54 = vpop.f32.mrb[84].mxu1 }
 0x8c6   :  { %v4801_v57 = vpop.f32.mrb[100].mxu0  ;;  %v3734_v40 = vpop.f32.mrb[85].mxu1  ;;  %v6325_v54 = vpack.c.bf16 %v5454_v58, %v5453_v17  ;;  %v5734_v58 = vld [vmem:[%s8990_s13 + $0x20] sm:$0x3f] }
 0x8c7   :  { %v4803_v63 = vpop.f32.mrb[101].mxu0  ;;  %v5455_v57 = vld [vmem:[%s8992_s15 + $0x70] sm:$0xff]  ;;  %v5456_v40 = vld [vmem:[%s8992_s15 + $0x78] sm:$0xff] }
 0x8c8   :  { %v6328_v63 = vpack.c.bf16 %v5456_v40, %v5455_v57  ;;  %v5740_v57 = vld [vmem:[%s8990_s13 + $0x38] sm:$0x3f] }
 0x8c9   :  { %v3737_v10 = vpop.f32.mrb[86].mxu1 }
 0x8ca   :  { %v3739_v62 = vpop.f32.mrb[87].mxu1  ;;  %v4806_v22 = vpop.f32.mrb[102].mxu0  ;;  %v5457_v10 = vld [vmem:[%s8992_s15 + $0x80] sm:$0xff] }
 0x8cb   :  { %v4808_v11 = vpop.f32.mrb[103].mxu0  ;;  %v5458_v62 = vld [vmem:[%s8992_s15 + $0x88] sm:$0xff] }
 0x8cc   :  { %v6331_v22 = vpack.c.bf16 %v5458_v62, %v5457_v10  ;;  %v5459_v11 = vld [vmem:[%s8992_s15 + $0x90] sm:$0xff] }
 0x8cd   :  { %v3742_v2 = vpop.f32.mrb[88].mxu1  ;;  %v5739_v62 = vld [vmem:[%s8990_s13 + $0x30] sm:$0x3f] }
 0x8ce   :  { %v3744_v43 = vpop.f32.mrb[89].mxu1  ;;  %v4811_v30 = vpop.f32.mrb[104].mxu0  ;;  %v5460_v2 = vld [vmem:[%s8992_s15 + $0x98] sm:$0xff] }
 0x8cf   :  { %v4813_v45 = vpop.f32.mrb[105].mxu0  ;;  %v6334_v30 = vpack.c.bf16 %v5460_v2, %v5459_v11 }
 0x8d2   :  { %v4816_v37 = vpop.f32.mrb[106].mxu0 }
 0x8d3   :  { %v4818_v50 = vpop.f32.mrb[107].mxu0 }
 0x8e0   :  { %v4170_v5 = vpop.f32.mrb[90].mxu1 }
 0x8e1   :  { %v4214_v25 = vadd.f32 %v4170_v5, %v3996_v6  ;;  %v4172_v34 = vpop.f32.mrb[91].mxu1 }
 0x8e3   :  { %v8835_v51 = vadd.f32 %v8787_v16, %v4214_v25  ;;  %v5442_v16 = vld [vmem:[%s8992_s15 + $0x8] sm:$0xff] }
 0x8e4   :  { %v4175_v26 = vpop.f32.mrb[92].mxu1  ;;  %v6307_v48 = vpack.c.bf16 %v5442_v16, %v5441_v55 }
 0x8e5   :  { %v4215_v20 = vadd.f32 %v4175_v26, %v3997_v29  ;;  %v4177_v39 = vpop.f32.mrb[93].mxu1  ;;  %v6313_v29 = vpack.c.bf16 %v5446_v36, %v5445_v61 }
 0x8e6   :  { %6308 = vmatpush1.bf16.msra.mxu1 %v6307_v48 }
 0x8e7   :  { %v8838_v4 = vadd.f32 %v8796_v32, %v4215_v20  ;;  %v5443_v32 = vld [vmem:[%s8992_s15 + $0x10] sm:$0xff]  ;;  %6309 = vmatprep.subr.bf16.mxu1 %v9028_v1 }
 0x8e8   :  { %v4180_v9 = vpop.f32.mrb[94].mxu1 }
 0x8e9   :  { %v4216_v42 = vadd.f32 %v4180_v9, %v3998_v31  ;;  %v4182_v15 = vpop.f32.mrb[95].mxu1  ;;  %v5449_v31 = vld [vmem:[%s8992_s15 + $0x40] sm:$0xff] }
 0x8ea   :  { %v6319_v47 = vpack.c.bf16 %v5450_v33, %v5449_v31 }
 0x8eb   :  { %v8841_v53 = vadd.f32 %v8802_v24, %v4216_v42  ;;  %v5444_v24 = vld [vmem:[%s8992_s15 + $0x18] sm:$0xff] }
 0x8ec   :  { %v4185_v60 = vpop.f32.mrb[96].mxu1  ;;  %v6310_v23 = vpack.c.bf16 %v5444_v24, %v5443_v32 }
 0x8ed   :  { %v4187_v38 = vpop.f32.mrb[97].mxu1 }
 0x8ee   :  { %6311 = vmatpush1.bf16.msra.mxu1 %v6310_v23 }
 0x8ef   :  { %6312 = vmatprep.subr.bf16.mxu1 %v9028_v1 }
 0x8f0   :  { %v4190_v13 = vpop.f32.mrb[98].mxu1 }
 0x8f1   :  { %v4192_v6 = vpop.f32.mrb[99].mxu1 }
 0x8f2   :  { %6314 = vmatpush1.bf16.msra.mxu1 %v6313_v29 }
 0x8f3   :  { %6315 = vmatprep.subr.bf16.mxu1 %v9028_v1 }
 0x8f4   :  { %v4195_v7 = vpop.f32.mrb[100].mxu1 }
 0x8f5   :  { %v4197_v35 = vpop.f32.mrb[101].mxu1 }
 0x8f6   :  { %6317 = vmatpush1.bf16.msra.mxu1 %v6316_v21 }
 0x8f7   :  { %6318 = vmatprep.subr.bf16.mxu1 %v9028_v1 }
 0x8f8   :  { %v4200_v8 = vpop.f32.mrb[102].mxu1 }
 0x8f9   :  { %v4202_v19 = vpop.f32.mrb[103].mxu1 }
 0x8fa   :  { %6320 = vmatpush1.bf16.msra.mxu1 %v6319_v47  ;;  %v5087_v47 = vld [vmem:[%s8990_s13] sm:$0x3f] }
 0x8fb   :  { %6321 = vmatprep.subr.bf16.mxu1 %v9028_v1 }
 0x8fc   :  { %v4205_v59 = vpop.f32.mrb[104].mxu1 }
 0x8fd   :  { %v4207_v18 = vpop.f32.mrb[105].mxu1 }
 0x8fe   :  { %6323 = vmatpush1.bf16.msra.mxu1 %v6322_v56 }
 0x8ff   :  { %6324 = vmatprep.subr.bf16.mxu1 %v9028_v1 }
 0x900   :  { %v4210_v52 = vpop.f32.mrb[106].mxu1 }
 0x901   :  { %v4212_v3 = vpop.f32.mrb[107].mxu1 }
 0x902   :  { %6326 = vmatpush1.bf16.msra.mxu1 %v6325_v54 }
 0x903   :  { %6327 = vmatprep.subr.bf16.mxu1 %v9028_v1 }
 0x906   :  { %6329 = vmatpush1.bf16.msra.mxu1 %v6328_v63 }
 0x907   :  { %6330 = vmatprep.subr.bf16.mxu1 %v9028_v1 }
 0x90a   :  { %6332 = vmatpush1.bf16.msra.mxu1 %v6331_v22 }
 0x90b   :  { %6333 = vmatprep.subr.bf16.mxu1 %v9028_v1 }
 0x90e   :  { %6335 = vmatpush1.bf16.msra.mxu1 %v6334_v30  ;;  %v5462_v30 = vld [vmem:[%s8992_s15 + $0xa8] sm:$0xff] }
 0x90f   :  { %6336 = vmatprep.subr.bf16.mxu1 %v9028_v1 }
 0x912   :  { %v4526_v43 = vpop.f32.mrb[108].mxu1 }
 0x913   :  { %v4570_v45 = vadd.f32 %v4526_v43, %v8835_v51  ;;  %v4528_v37 = vpop.f32.mrb[109].mxu1  ;;  %v5461_v43 = vld [vmem:[%s8992_s15 + $0xa0] sm:$0xff] }
 0x914   :  { %v5463_v37 = vld [vmem:[%s8992_s15 + $0xb0] sm:$0xff] }
 0x915   :  { %v4820_v50 = vadd.f32 %v8812_v12, %v4570_v45  ;;  %v6337_v45 = vpack.c.bf16 %v5462_v30, %v5461_v43 }
 0x916   :  { %v4531_v41 = vpop.f32.mrb[110].mxu1 }
 0x917   :  { %v4571_v5 = vadd.f32 %v4531_v41, %v8838_v4  ;;  %v4533_v25 = vpop.f32.mrb[111].mxu1  ;;  %6338 = vmatpush1.bf16.msra.mxu1 %v6337_v45  ;;  %v5425_v41 = vld [vmem:[%s8991_s14] sm:$0x3] }
 0x918   :  { %6339 = vmatprep.subr.bf16.mxu1 %v9028_v1  ;;  %v5744_v1 = vld [vmem:[%s8993_s16] ss:$0 sm:$0xff] }
 0x919   :  { %v4821_v34 = vadd.f32 %v8822_v44, %v4571_v5  ;;  %v5725_v44 = vld [vmem:[%s8989_s12] ss:$0 sm:$0xff]  ;;  %v9053_v5 = vld [vmem:[#allocation12_spill] sm:$0xff] }
 0x91a   :  { %v4536_v26 = vpop.f32.mrb[112].mxu1  ;;  %v5430_v25 = vrot.slane %v5425_v41, %v9053_v5 }
 0x91b   :  { %v4572_v20 = vadd.f32 %v4536_v26, %v8841_v53  ;;  %v4538_v39 = vpop.f32.mrb[113].mxu1 }
 0x91d   :  { %v4822_v51 = vadd.f32 %v8826_v46, %v4572_v20 }
 0x91e   :  { %v4541_v9 = vpop.f32.mrb[114].mxu1 }
 0x91f   :  { %v4543_v42 = vpop.f32.mrb[115].mxu1 }
 0x922   :  { %v4546_v15 = vpop.f32.mrb[116].mxu1 }
 0x923   :  { %v4548_v60 = vpop.f32.mrb[117].mxu1 }
 0x926   :  { %v4551_v12 = vpop.f32.mrb[118].mxu1 }
 0x927   :  { %v4553_v38 = vpop.f32.mrb[119].mxu1 }
 0x92a   :  { %v4556_v55 = vpop.f32.mrb[120].mxu1 }
 0x92b   :  { %v4558_v16 = vpop.f32.mrb[121].mxu1 }
 0x92e   :  { %v4561_v4 = vpop.f32.mrb[122].mxu1 }
 0x92f   :  { %v4563_v32 = vpop.f32.mrb[123].mxu1 }
 0x932   :  { %v4566_v13 = vpop.f32.mrb[124].mxu1 }
 0x933   :  { %v4568_v48 = vpop.f32.mrb[125].mxu1 }
 0x944   :  { %v4994_v24 = vpop.f32.mrb[126].mxu1 }
 0x945   :  { %v5038_v53 = vadd.f32 %v4994_v24, %v4820_v50  ;;  %v4996_v6 = vpop.f32.mrb[127].mxu1 }
 0x947   :  { %v5054_v46 = vadd.f32 %v5725_v44, %v5038_v53 }
 0x948   :  { %v4999_v23 = vpop.f32.mrb[128].mxu1 }
 0x949   :  { %v5063_v61 = vmax.f32 %v5054_v46, 0.0  ;;  %v5039_v36 = vadd.f32 %v4999_v23, %v4821_v34  ;;  %v5001_v7 = vpop.f32.mrb[129].mxu1  ;;  %v9054_v34 = vld [vmem:[#allocation11_spill] sm:$0xff] }
 0x94a   :  { %v9055_v26 = vsub.s32 1, %v9054_v34 }
 0x94b   :  { %5073 = vst.msk [vmem:[#allocation4] sm:$0xff] %vm5072_vm2, %v5063_v61  ;;  %v5055_v35 = vadd.f32 %v5725_v44, %v5039_v36 }
 0x94c   :  { %v5004_v29 = vpop.f32.mrb[130].mxu1  ;;  %v5434_v20 = vrot.slane %v5425_v41, %v9055_v26 }
 0x94d   :  { %v5064_v14 = vmax.f32 %v5055_v35, 0.0  ;;  %v5040_v27 = vadd.f32 %v5004_v29, %v4822_v51  ;;  %v5006_v8 = vpop.f32.mrb[131].mxu1 }
 0x94f   :  { %5074 = vst.msk [vmem:[#allocation4 + $0x8] sm:$0xff] %vm5072_vm2, %v5064_v14  ;;  %v5056_v19 = vadd.f32 %v5725_v44, %v5040_v27 }
 0x950   :  { %v5009_v21 = vpop.f32.mrb[132].mxu1 }
 0x951   :  { %v5065_v31 = vmax.f32 %v5056_v19, 0.0  ;;  %v5011_v33 = vpop.f32.mrb[133].mxu1 }
 0x952   :  { %v5086_v54 = vld [vmem:[#allocation4] sm:$0xff] }
 0x953   :  { %5075 = vst.msk [vmem:[#allocation4 + $0x10] sm:$0xff] %vm5072_vm2, %v5065_v31 }
 0x954   :  { %v5014_v59 = vpop.f32.mrb[134].mxu1 }
 0x955   :  { %v5016_v18 = vpop.f32.mrb[135].mxu1 }
 0x956   :  { %v5089_v0 = vld [vmem:[#allocation4 + $0x2] sm:$0xff] }
 0x957   :  { %5730 = vmatmul.mubr.msk.f32.vlgmr.msra.gmra.mrb[108].mxu0 %vm5072_vm2, %v5089_v0 }
 0x958   :  { %v5019_v52 = vpop.f32.mrb[136].mxu1  ;;  %5732 = vmatpush1.msk.msra.mxu0 %vm3231_vm3, %v5087_v47  ;;  %5246 = vmatprep.mubr.f32.mxu0 %v8828_v28 }
 0x959   :  { %v5021_v3 = vpop.f32.mrb[137].mxu1  ;;  %5736 = vmatprep.subr.msk.mxu0 %vm3231_vm3, %v5735_v49 }
 0x95a   :  { %v5253_v11 = vld [vmem:[#allocation4 + $0xc] sm:$0xff] }
 0x95b   :  { %v5339_v2 = vld [vmem:[#allocation4 + $0xe] sm:$0xff] }
 0x95c   :  { %v5024_v56 = vpop.f32.mrb[138].mxu1 }
 0x95d   :  { %v5026_v17 = vpop.f32.mrb[139].mxu1 }
 0x95f   :  { %5733 = vmatmul.mubr.msk.f32.vlgmr.msra.gmra.mrb[108].mxu0 %vm5072_vm2, %v5086_v54 }
 0x960   :  { %v5029_v40 = vpop.f32.mrb[140].mxu1  ;;  %5737 = vmatpush1.msk.msra.mxu0 %vm3231_vm3, %v5734_v58  ;;  %5330 = vmatprep.mubr.f32.mxu0 %v8828_v28 }
 0x961   :  { %v5031_v63 = vpop.f32.mrb[141].mxu1  ;;  %5741 = vmatprep.subr.msk.mxu0 %vm3231_vm3, %v5740_v57 }
 0x964   :  { %v5034_v10 = vpop.f32.mrb[142].mxu1 }
 0x965   :  { %v5036_v22 = vpop.f32.mrb[143].mxu1 }
 0x967   :  { %5738 = vmatmul.mubr.msk.f32.vlgmr.msra.gmra.mrb[108].mxu0 %vm5072_vm2, %v5253_v11 }
 0x968   :  { %5742 = vmatpush1.msk.msra.mxu0 %vm3231_vm3, %v5739_v62  ;;  %5416 = vmatprep.mubr.f32.mxu0 %v8828_v28  ;;  %v5464_v28 = vld [vmem:[%s8992_s15 + $0xb8] sm:$0xff] }
 0x969   :  { %v6340_v50 = vpack.c.bf16 %v5464_v28, %v5463_v37 }
 0x96b   :  { %6341 = vmatpush1.bf16.msra.mxu1 %v6340_v50 }
 0x96f   :  { %5743 = vmatmul.mubr.msk.f32.vlgmr.msra.gmra.mrb[108].mxu0 %vm5072_vm2, %v5339_v2 }
 0xa42   :  { %v5418_v39 = vpop.f32.mrb[108].mxu0 }
 0xa43   :  { %v5437_v51 = vadd.f32 %v5430_v25, %v5418_v39  ;;  %v5420_v9 = vpop.f32.mrb[109].mxu0 }
 0xa44   :  { %v5438_v42 = vadd.f32 %v5434_v20, %v5420_v9 }
 0xa45   :  { %v5439_v60 = vmax.f32 %v5437_v51, 0.0 }
 0xa46   :  { %v5440_v15 = vmax.f32 %v5438_v42, 0.0 }
 0xa48   :  { %5745 = vmatprep.mubr.msk.f32.mxu1 %vm5472_vm5, %v5440_v15 }
 0xa49   :  { %5541 = vmatmul.mubr.f32.vlgmr.msra.gmra.mrb[144].mxu1 %v5439_v60 }
 0xb1c   :  { %v5542_v12 = vpop.f32.mrb[144].mxu1 }
 0xb1d   :  { %v5543_v38 = vadd.f32 %v5744_v1, %v5542_v12  ;;  %v5544_v55 = vpop.f32.mrb[145].mxu1 }
 0xb1f   :  { %5547 = vst.msk [vmem:[%s8994_s17] sm:$0x3] %vm5546_vm6, %v5543_v38 }
 0xb20   :  { %5552 = vsyncpa [#allocation6], 1 }
 0xb21   :  { %5553 = vsyncpa [#allocation8], 1 }

</bundles_post_ra>
